<compile_context>
chip_gen: v7x
topology: tpu7x:2x2x1
jax: 0.10.0
libtpu: 0.0.40
codegen_flags: <defaults>
</compile_context>

<pallas_src>
import functools

import numpy as np
import jax
import jax.numpy as jnp
from jax.experimental import pallas as pl
from jax.experimental.pallas import tpu as pltpu

IGNORE_INDEX = 255
THRESH = 0.7
MIN_KEPT = 100000      # PyTorch default of CriterionOhemDSN / OhemCrossEntropy2d
HIST_BINS = 64         # cumulative-histogram resolution for the OHEM threshold
KEEP_ALL_THR = 1.5     # > any softmax prob (<=1.0), < invalid sentinel (2.0)
INVALID_PROB = 2.0     # sentinel written at ignore / padded pixels


# ----------------------------------------------------------------------------
# Small helpers
# ----------------------------------------------------------------------------
def _cdiv(a, b):
    return -(-a // b)


def _round_up(a, b):
    return _cdiv(a, b) * b


def _interp_matrix(out_size, in_size):
    """Separable bilinear (align_corners=True) interpolation matrix."""
    if out_size == 1:
        src = jnp.zeros((1,), jnp.float32)
    else:
        src = jnp.arange(out_size, dtype=jnp.float32) * (in_size - 1) / (out_size - 1)
    i0 = jnp.clip(jnp.floor(src).astype(jnp.int32), 0, in_size - 1)
    i1 = jnp.clip(i0 + 1, 0, in_size - 1)
    w1 = src - i0.astype(jnp.float32)
    w0 = 1.0 - w1
    cols = jnp.arange(in_size, dtype=jnp.int32)[None, :]
    mat = (w0[:, None] * (cols == i0[:, None]).astype(jnp.float32)
           + w1[:, None] * (cols == i1[:, None]).astype(jnp.float32))
    return mat  # (out_size, in_size) float32


def _hist_edges(thresh, nbins):
    """Ascending prob edges spanning [thresh, 1]; edges[0]==thresh (exact common case)."""
    step = (1.0 - float(thresh)) / (nbins - 1)
    edges = [float(thresh) + j * step for j in range(nbins - 1)] + [1.0 + 1e-3]
    return tuple(edges)


def _sum2d(x):
    """(R, C) -> (1, 1) staged reduction (keeps everything 2D for Mosaic)."""
    return jnp.sum(jnp.sum(x, axis=1, keepdims=True), axis=0, keepdims=True)


def _put(acc, row, col, r, c, val):
    """Place the (1,1) scalar `val` at position (r, c) of the (8,128) block."""
    return jnp.where((row == r) & (col == c), jnp.broadcast_to(val, acc.shape), acc)


def _vmem_capacity_bytes():
    try:
        return int(pltpu.get_tpu_info().vmem_capacity_bytes)
    except Exception:
        return 64 << 20     # conservative (v7x-sized) default


def _vmem_limit(vmem_cap):
    return int(vmem_cap) * 3 // 4


def _estimate_vmem_bytes(tH, W_pad, C, w_pad, h):
    f = 4
    t_buf = 2 * tH * C * w_pad * f                  # stage-1 row-upsampled logits (2 heads)
    state = 12 * tH * W_pad * f                     # softmax state + live temporaries
    io = 6 * tH * W_pad * f                         # double-buffered ce/prob outputs + target
    weights = 4 * h * C * w_pad * f + 2 * tH * h * f + 2 * w_pad * W_pad * f
    return t_buf + state + io + weights


def _row_tiles(H, vmem_cap, W_pad, C, w_pad, h):
    """Generation-aware row tile. Never a single full-H tile; fits ~45% of VMEM."""
    target = 256 if vmem_cap >= (100 << 20) else 128
    while target > 16 and _estimate_vmem_bytes(target, W_pad, C, w_pad, h) > int(0.45 * vmem_cap):
        target //= 2
    ntiles = _cdiv(H, target)
    tH = _round_up(_cdiv(H, ntiles), 8)
    return tH, ntiles


# ----------------------------------------------------------------------------
# Kernel A: fused bilinear upsample + two-pass softmax CE for BOTH heads,
# plus head-1 valid reduction and OHEM probability histogram partials.
# Grid (N, Hpad//tH), both "parallel".
# ----------------------------------------------------------------------------
def _fused_upsample_ce_kernel(p0_ref, p1_ref, wh_ref, wwt_ref, tgt_ref,
                              ce1_ref, prob1_ref, stats_ref,
                              *, num_classes, w_pad, ignore_index, mm_dtype, edges):
    wh = wh_ref[...]        # (tH, h)
    wwt = wwt_ref[...]      # (w_pad, W_pad)
    tgt = tgt_ref[0]        # (tH, W_pad) int32

    # Stage 1: row upsample — ONE batched matmul per head across all classes.
    # Cast once afterwards (no per-class casts when running bf16 matmuls).
    t0 = jnp.dot(wh, p0_ref[0], preferred_element_type=jnp.float32)
    t1 = jnp.dot(wh, p1_ref[0], preferred_element_type=jnp.float32)
    if np.dtype(mm_dtype) != np.dtype(jnp.float32):
        t0 = t0.astype(mm_dtype)
        t1 = t1.astype(mm_dtype)

    def col_up(t, c):
        # lane-aligned static view (w_pad is a multiple of 128)
        return jnp.dot(t[:, c * w_pad:(c + 1) * w_pad], wwt,
                       preferred_element_type=jnp.float32)

    # Pass 1: running max over classes, both heads fused in one loop.
    m0 = col_up(t0, 0)
    m1 = col_up(t1, 0)
    for c in range(1, num_classes):
        m0 = jnp.maximum(m0, col_up(t0, c))
        m1 = jnp.maximum(m1, col_up(t1, c))

    # Pass 2: recompute the column-upsample matmuls (MXU slack), accumulate
    # sumexp and the GT logit; (tgt == c) mask shared by both heads.
    se0 = jnp.zeros_like(m0)
    se1 = jnp.zeros_like(m1)
    gt0 = jnp.zeros_like(m0)
    gt1 = jnp.zeros_like(m1)
    for c in range(num_classes):
        l0 = col_up(t0, c)
        l1 = col_up(t1, c)
        se0 = se0 + jnp.exp(l0 - m0)
        se1 = se1 + jnp.exp(l1 - m1)
        isc = tgt == c
        gt0 = gt0 + jnp.where(isc, l0, 0.0)
        gt1 = gt1 + jnp.where(isc, l1, 0.0)

    lse0 = m0 + jnp.log(se0)
    lse1 = m1 + jnp.log(se1)

    valid = tgt != ignore_index
    validf = valid.astype(jnp.float32)

    # Head 0: per-pixel CE and validity-encoded GT probability (sentinel 2.0
    # at ignore/pad pixels so Kernel B / threshold glue never reload target).
    ce1_ref[0] = lse0 - gt0
    prob1 = jnp.where(valid, jnp.exp(gt0 - lse0), jnp.float32(INVALID_PROB))
    prob1_ref[0] = prob1

    # Head 1: valid-masked CE reduction done entirely in-kernel.
    s2 = _sum2d((lse1 - gt1) * validf)
    c2 = _sum2d(validf)

    # Lane-dense (8,128) stats block:
    #   [0,0] = sum(ce2 * valid)    [0,1] = count(valid)
    #   row 1, col j = #(valid & prob1 <= edges[j])   (cumulative histogram)
    row = jax.lax.broadcasted_iota(jnp.int32, (8, 128), 0)
    col = jax.lax.broadcasted_iota(jnp.int32, (8, 128), 1)
    stats = jnp.zeros((8, 128), jnp.float32)
    stats = _put(stats, row, col, 0, 0, s2)
    stats = _put(stats, row, col, 0, 1, c2)
    for j, e in enumerate(edges):
        cnt = _sum2d(jnp.where(prob1 <= e, 1.0, 0.0))  # sentinel (2.0) auto-excluded
        stats = _put(stats, row, col, 1, j, cnt)
    stats_ref[0, 0] = stats


def _fused_upsample_ce(p0r, p1r, wh, wwt, tgt, *, num_classes, w_pad, tH,
                       ignore_index, mm_dtype, edges, vmem_cap):
    N, h, Cwp = p0r.shape
    H_pad = wh.shape[0]
    W_pad = wwt.shape[1]
    nTH = H_pad // tH
    kernel = functools.partial(_fused_upsample_ce_kernel,
                               num_classes=num_classes, w_pad=w_pad,
                               ignore_index=ignore_index, mm_dtype=mm_dtype,
                               edges=edges)
    return pl.pallas_call(
        kernel,
        out_shape=(jax.ShapeDtypeStruct((N, H_pad, W_pad), jnp.float32),
                   jax.ShapeDtypeStruct((N, H_pad, W_pad), jnp.float32),
                   jax.ShapeDtypeStruct((N, nTH, 8, 128), jnp.float32)),
        grid_spec=pltpu.PrefetchScalarGridSpec(
            num_scalar_prefetch=0,
            grid=(N, nTH),
            in_specs=[pl.BlockSpec((1, h, Cwp), lambda n, i: (n, 0, 0)),
                      pl.BlockSpec((1, h, Cwp), lambda n, i: (n, 0, 0)),
                      pl.BlockSpec((tH, h), lambda n, i: (i, 0)),
                      pl.BlockSpec((w_pad, W_pad), lambda n, i: (0, 0)),
                      pl.BlockSpec((1, tH, W_pad), lambda n, i: (n, i, 0))],
            out_specs=[pl.BlockSpec((1, tH, W_pad), lambda n, i: (n, i, 0)),
                       pl.BlockSpec((1, tH, W_pad), lambda n, i: (n, i, 0)),
                       pl.BlockSpec((1, 1, 8, 128), lambda n, i: (n, i, 0, 0))]),
        compiler_params=pltpu.CompilerParams(
            dimension_semantics=("parallel", "parallel"),
            vmem_limit_bytes=_vmem_limit(vmem_cap)),
    )(p0r, p1r, wh, wwt, tgt)


# ----------------------------------------------------------------------------
# Kernel B: OHEM-kept masked reduction for head 0 (parallel lane-dense partials).
# Reads only ce1 and the validity-encoded prob1; the threshold comes in via SMEM.
# ----------------------------------------------------------------------------
def _ohem_reduce_kernel(thr_ref, ce1_ref, prob1_ref, out_ref):
    thr = thr_ref[0]
    ce1 = ce1_ref[0]
    p1 = prob1_ref[0]
    keptf = jnp.where(p1 <= thr, 1.0, 0.0)   # sentinel 2.0 (ignore/pad) never kept
    s1 = _sum2d(ce1 * keptf)
    c1 = _sum2d(keptf)
    row = jax.lax.broadcasted_iota(jnp.int32, (8, 128), 0)
    col = jax.lax.broadcasted_iota(jnp.int32, (8, 128), 1)
    out = jnp.zeros((8, 128), jnp.float32)
    out = _put(out, row, col, 0, 0, s1)
    out = _put(out, row, col, 0, 1, c1)
    out_ref[0, 0] = out


def _ohem_reduce(thr, ce1, prob1, tH, vmem_cap):
    N, H_pad, W_pad = ce1.shape
    nTH = H_pad // tH
    data_spec = lambda: pl.BlockSpec((1, tH, W_pad), lambda n, i: (n, i, 0))
    return pl.pallas_call(
        _ohem_reduce_kernel,
        out_shape=jax.ShapeDtypeStruct((N, nTH, 8, 128), jnp.float32),
        grid_spec=pltpu.PrefetchScalarGridSpec(
            num_scalar_prefetch=0,
            grid=(N, nTH),
            in_specs=[pl.BlockSpec(memory_space=pltpu.MemorySpace.SMEM),
                      data_spec(), data_spec()],
            out_specs=pl.BlockSpec((1, 1, 8, 128), lambda n, i: (n, i, 0, 0))),
        compiler_params=pltpu.CompilerParams(
            dimension_semantics=("parallel", "parallel"),
            vmem_limit_bytes=_vmem_limit(vmem_cap)),
    )(thr, ce1, prob1)


# ----------------------------------------------------------------------------
# OHEM threshold selection (glue on tiny arrays).
# ----------------------------------------------------------------------------
def _threshold_from_cum(cum, num_valid, edges, thresh, min_kept):
    """Threshold from the global cumulative histogram (no sort / top_k)."""
    edges_arr = jnp.asarray(edges, jnp.float32)
    if min_kept <= 0:
        thr = jnp.float32(thresh)
    else:
        k = jnp.minimum(jnp.float32(min_kept), num_valid)
        idx = jnp.argmax(cum >= k)               # first bin reaching rank k
        thr = jnp.maximum(edges_arr[idx], jnp.float32(thresh))
    return jnp.where(jnp.float32(min_kept) >= num_valid,
                     jnp.float32(KEEP_ALL_THR), thr)


def _threshold_topk(prob_flat, num_valid, thresh, min_kept):
    """Exact kth-smallest GT prob via lax.top_k (slower; kept behind a flag)."""
    total = int(prob_flat.shape[0])
    if min_kept <= 0:
        thr = jnp.float32(thresh)
    else:
        k_static = min(int(min_kept), total)
        smallest = -jax.lax.top_k(-prob_flat, k_static)[0]     # ascending
        nv = num_valid.astype(jnp.int32)
        k_dyn = jnp.clip(jnp.minimum(nv, min_kept) - 1, 0, k_static - 1)
        thr = jnp.maximum(jnp.float32(thresh), smallest[k_dyn])
    return jnp.where(jnp.float32(min_kept) >= num_valid,
                     jnp.float32(KEEP_ALL_THR), thr)


# ----------------------------------------------------------------------------
# CriterionOhemDSN forward: loss1(OHEM CE on preds[0]) + 0.4 * loss2(CE on preds[1])
# ----------------------------------------------------------------------------
def criterion_ohem_dsn(preds, target, ignore_index=IGNORE_INDEX, thresh=THRESH,
                       min_kept=MIN_KEPT, matmul_dtype=jnp.float32,
                       exact_threshold=False, hist_bins=HIST_BINS):
    assert hist_bins <= 128
    pred0, pred1 = preds
    N, C, h, w = map(int, pred0.shape)
    H, W = int(target.shape[1]), int(target.shape[2])
    target = target.astype(jnp.int32)

    w_pad = _round_up(w, 128)         # lane-aligned per-class stride
    W_pad = _round_up(W, 128)         # lane-dense full-resolution tiles

    vmem_cap = _vmem_capacity_bytes()
    tH, ntiles = _row_tiles(H, vmem_cap, W_pad, C, w_pad, h)
    H_pad = tH * ntiles

    # Bilinear (align_corners=True) interpolation matrices, zero-padded.
    wh = jnp.zeros((H_pad, h), jnp.float32).at[:H].set(_interp_matrix(H, h))
    wwt = jnp.zeros((w_pad, W_pad), jnp.float32).at[:w, :W].set(_interp_matrix(W, w).T)
    wh = wh.astype(matmul_dtype)
    wwt = wwt.astype(matmul_dtype)

    # (N, C, h, w) -> (N, h, C*w_pad): per-class slices are lane-aligned views.
    def pack(p):
        p = jnp.transpose(p, (0, 2, 1, 3))                        # (N, h, C, w)
        p = jnp.pad(p, ((0, 0), (0, 0), (0, 0), (0, w_pad - w)))
        return p.reshape(N, h, C * w_pad).astype(matmul_dtype)

    p0r, p1r = pack(pred0), pack(pred1)

    # Pad target to the tiled resolution with ignore_index (masked everywhere).
    tgt_p = jnp.pad(target, ((0, 0), (0, H_pad - H), (0, W_pad - W)),
                    constant_values=ignore_index)

    edges = _hist_edges(thresh, hist_bins)
    ce1, prob1, stats_a = _fused_upsample_ce(
        p0r, p1r, wh, wwt, tgt_p, num_classes=C, w_pad=w_pad, tH=tH,
        ignore_index=ignore_index, mm_dtype=matmul_dtype, edges=edges,
        vmem_cap=vmem_cap)

    s2 = jnp.sum(stats_a[:, :, 0, 0])
    c2 = jnp.sum(stats_a[:, :, 0, 1])          # == num_valid (no extra glue pass)
    cum = jnp.sum(stats_a[:, :, 1, :hist_bins], axis=(0, 1))

    if exact_threshold:
        thr = _threshold_topk(prob1.reshape(-1), c2, thresh, min_kept)
    else:
        thr = _threshold_from_cum(cum, c2, edges, thresh, min_kept)
    thr = thr.reshape(1).astype(jnp.float32)

    stats_b = _ohem_reduce(thr, ce1, prob1, tH, vmem_cap)
    s1 = jnp.sum(stats_b[:, :, 0, 0])
    c1 = jnp.sum(stats_b[:, :, 0, 1])

    loss1 = jnp.where(c1 > 0, s1 / jnp.maximum(c1, 1.0), 0.0)
    loss2 = jnp.where(c2 > 0, s2 / jnp.maximum(c2, 1.0), 0.0)
    # TODO(synk): Cityscapes per-class weight vector (use_weight=True in
    # OhemCrossEntropy2d) is omitted; equivalent to all class weights == 1.
    return loss1 + 0.4 * loss2


# ----------------------------------------------------------------------------
# Pure-JAX reference (same math, no Pallas) for the correctness check.
# ----------------------------------------------------------------------------
def _reference_loss(preds, target, ignore_index=IGNORE_INDEX, thresh=THRESH,
                    min_kept=MIN_KEPT, exact_threshold=False, hist_bins=HIST_BINS):
    pred0, pred1 = preds
    N, C, h, w = pred0.shape
    H, W = int(target.shape[1]), int(target.shape[2])
    wh = _interp_matrix(H, h)
    ww = _interp_matrix(W, w)

    def upsample(p):
        t = jnp.einsum('Hh,nchw->ncHw', wh, p)
        return jnp.einsum('ncHw,Ww->ncHW', t, ww)

    def ce_prob(logits):
        m = jnp.max(logits, axis=1, keepdims=True)
        lse = m[:, 0] + jnp.log(jnp.sum(jnp.exp(logits - m), axis=1))
        cls = jnp.arange(C, dtype=target.dtype).reshape(1, C, 1, 1)
        gt = jnp.sum(jnp.where(target[:, None] == cls, logits, 0.0), axis=1)
        return lse - gt, jnp.exp(gt - lse)

    ce1, p1 = ce_prob(upsample(pred0))
    ce2, _ = ce_prob(upsample(pred1))
    valid = target != ignore_index
    num_valid = jnp.sum(valid).astype(jnp.float32)
    p1m = jnp.where(valid, p1, jnp.float32(INVALID_PROB))

    if exact_threshold:
        thr = _threshold_topk(p1m.reshape(-1), num_valid, thresh, min_kept)
    else:
        edges = _hist_edges(thresh, hist_bins)
        cum = jnp.sum((p1m.reshape(-1, 1) <=
                       jnp.asarray(edges, jnp.float32)[None, :]).astype(jnp.float32),
                      axis=0)
        thr = _threshold_from_cum(cum, num_valid, edges, thresh, min_kept)

    keptf = jnp.logical_and(valid, p1 <= thr).astype(jnp.float32)
    validf = valid.astype(jnp.float32)
    s1, c1 = jnp.sum(ce1 * keptf), jnp.sum(keptf)
    s2, c2 = jnp.sum(ce2 * validf), jnp.sum(validf)
    loss1 = jnp.where(c1 > 0, s1 / jnp.maximum(c1, 1.0), 0.0)
    loss2 = jnp.where(c2 > 0, s2 / jnp.maximum(c2, 1.0), 0.0)
    return loss1 + 0.4 * loss2


if __name__ == "__main__":
    N, C, h, w, H, W = 2, 5, 8, 8, 16, 16
    key = jax.random.PRNGKey(0)
    k1, k2, k3, k4 = jax.random.split(key, 4)
    pred0 = jax.random.normal(k1, (N, C, h, w), dtype=jnp.float32)
    pred1 = jax.random.normal(k2, (N, C, h, w), dtype=jnp.float32)
    target = jax.random.randint(k3, (N, H, W), 0, C, dtype=jnp.int32)
    ignore_mask = jax.random.bernoulli(k4, 0.1, (N, H, W))
    target = jnp.where(ignore_mask, jnp.int32(IGNORE_INDEX), target)

    # Two min_kept configs (keep-all branch and active kth-smallest branch),
    # each with the histogram (default, fast) and exact top_k threshold paths.
    for mk in (MIN_KEPT, 100):
        for exact in (False, True):
            loss = jax.block_until_ready(
                criterion_ohem_dsn((pred0, pred1), target, min_kept=mk,
                                   exact_threshold=exact))
            ref = jax.block_until_ready(
                _reference_loss((pred0, pred1), target, min_kept=mk,
                                exact_threshold=exact))
            np.testing.assert_allclose(np.array(loss), np.array(ref),
                                       rtol=1e-4, atol=1e-5)

    print("KERNEL_OK")
</pallas_src>

<mosaic_0001>
module attributes {stable_mosaic.version = 11 : i64} {
  func.func @_fused_upsample_ce_kernel(%arg0: i32, %arg1: i32, %arg2: memref<1x8x640xf32, #tpu.memory_space<vmem>>, %arg3: memref<1x8x640xf32, #tpu.memory_space<vmem>>, %arg4: memref<16x8xf32, #tpu.memory_space<vmem>>, %arg5: memref<128x128xf32, #tpu.memory_space<vmem>>, %arg6: memref<1x16x128xi32, #tpu.memory_space<vmem>>, %arg7: memref<1x16x128xf32, #tpu.memory_space<vmem>>, %arg8: memref<1x16x128xf32, #tpu.memory_space<vmem>>, %arg9: memref<1x1x8x128xf32, #tpu.memory_space<vmem>>) attributes {dimension_semantics = [#tpu.dimension_semantics<parallel>, #tpu.dimension_semantics<parallel>], iteration_bounds = array<i64: 2, 1>, scalar_prefetch = 0 : i64, scratch_operands = 0 : i64, tpu.core_type = #tpu.core_type<tc>, window_params = [{transform_indices = @transform_0, window_bounds = array<i64: 1, 8, 640>}, {transform_indices = @transform_1, window_bounds = array<i64: 1, 8, 640>}, {transform_indices = @transform_2, window_bounds = array<i64: 16, 8>}, {pipeline_mode = #tpu.pipeline_mode<synchronous>, transform_indices = @transform_3, window_bounds = array<i64: 128, 128>}, {transform_indices = @transform_4, window_bounds = array<i64: 1, 16, 128>}, {transform_indices = @transform_5, window_bounds = array<i64: 1, 16, 128>}, {transform_indices = @transform_6, window_bounds = array<i64: 1, 16, 128>}, {transform_indices = @transform_7, window_bounds = array<i64: 1, 1, 8, 128>}]} {
    %c0 = arith.constant 0 : index
    %c0_0 = arith.constant 0 : index
    %0 = vector.load %arg4[%c0, %c0_0] : memref<16x8xf32, #tpu.memory_space<vmem>>, vector<16x8xf32>
    %c0_1 = arith.constant 0 : index
    %c0_2 = arith.constant 0 : index
    %1 = vector.load %arg5[%c0_1, %c0_2] : memref<128x128xf32, #tpu.memory_space<vmem>>, vector<128x128xf32>
    %c0_3 = arith.constant 0 : index
    %c0_4 = arith.constant 0 : index
    %c0_5 = arith.constant 0 : index
    %2 = vector.load %arg6[%c0_3, %c0_4, %c0_5] : memref<1x16x128xi32, #tpu.memory_space<vmem>>, vector<1x16x128xi32>
    %3 = vector.shape_cast %2 : vector<1x16x128xi32> to vector<16x128xi32>
    %c0_6 = arith.constant 0 : index
    %c0_7 = arith.constant 0 : index
    %c0_8 = arith.constant 0 : index
    %4 = vector.load %arg2[%c0_6, %c0_7, %c0_8] : memref<1x8x640xf32, #tpu.memory_space<vmem>>, vector<1x8x640xf32>
    %5 = vector.shape_cast %4 : vector<1x8x640xf32> to vector<8x640xf32>
    %cst = arith.constant dense<0.000000e+00> : vector<16x640xf32>
    %6 = tpu.matmul %0, %5, %cst {dimension_numbers = #tpu.dot_dimension_numbers<[1], [0], [0], [1], [0, 0, 1, 1], [], []>} : vector<16x8xf32>, vector<8x640xf32>, vector<16x640xf32> -> vector<16x640xf32>
    %c0_9 = arith.constant 0 : index
    %c0_10 = arith.constant 0 : index
    %c0_11 = arith.constant 0 : index
    %7 = vector.load %arg3[%c0_9, %c0_10, %c0_11] : memref<1x8x640xf32, #tpu.memory_space<vmem>>, vector<1x8x640xf32>
    %8 = vector.shape_cast %7 : vector<1x8x640xf32> to vector<8x640xf32>
    %cst_12 = arith.constant dense<0.000000e+00> : vector<16x640xf32>
    %9 = tpu.matmul %0, %8, %cst_12 {dimension_numbers = #tpu.dot_dimension_numbers<[1], [0], [0], [1], [0, 0, 1, 1], [], []>} : vector<16x8xf32>, vector<8x640xf32>, vector<16x640xf32> -> vector<16x640xf32>
    %10 = vector.extract_strided_slice %6 {offsets = [0, 0], sizes = [16, 128], strides = [1, 1]} : vector<16x640xf32> to vector<16x128xf32>
    %cst_13 = arith.constant dense<0.000000e+00> : vector<16x128xf32>
    %11 = tpu.matmul %10, %1, %cst_13 {dimension_numbers = #tpu.dot_dimension_numbers<[1], [0], [0], [1], [0, 0, 1, 1], [], []>} : vector<16x128xf32>, vector<128x128xf32>, vector<16x128xf32> -> vector<16x128xf32>
    %12 = vector.extract_strided_slice %9 {offsets = [0, 0], sizes = [16, 128], strides = [1, 1]} : vector<16x640xf32> to vector<16x128xf32>
    %cst_14 = arith.constant dense<0.000000e+00> : vector<16x128xf32>
    %13 = tpu.matmul %12, %1, %cst_14 {dimension_numbers = #tpu.dot_dimension_numbers<[1], [0], [0], [1], [0, 0, 1, 1], [], []>} : vector<16x128xf32>, vector<128x128xf32>, vector<16x128xf32> -> vector<16x128xf32>
    %14 = vector.extract_strided_slice %6 {offsets = [0, 128], sizes = [16, 128], strides = [1, 1]} : vector<16x640xf32> to vector<16x128xf32>
    %cst_15 = arith.constant dense<0.000000e+00> : vector<16x128xf32>
    %15 = tpu.matmul %14, %1, %cst_15 {dimension_numbers = #tpu.dot_dimension_numbers<[1], [0], [0], [1], [0, 0, 1, 1], [], []>} : vector<16x128xf32>, vector<128x128xf32>, vector<16x128xf32> -> vector<16x128xf32>
    %16 = arith.maximumf %11, %15 : vector<16x128xf32>
    %17 = vector.extract_strided_slice %9 {offsets = [0, 128], sizes = [16, 128], strides = [1, 1]} : vector<16x640xf32> to vector<16x128xf32>
    %cst_16 = arith.constant dense<0.000000e+00> : vector<16x128xf32>
    %18 = tpu.matmul %17, %1, %cst_16 {dimension_numbers = #tpu.dot_dimension_numbers<[1], [0], [0], [1], [0, 0, 1, 1], [], []>} : vector<16x128xf32>, vector<128x128xf32>, vector<16x128xf32> -> vector<16x128xf32>
    %19 = arith.maximumf %13, %18 : vector<16x128xf32>
    %20 = vector.extract_strided_slice %6 {offsets = [0, 256], sizes = [16, 128], strides = [1, 1]} : vector<16x640xf32> to vector<16x128xf32>
    %cst_17 = arith.constant dense<0.000000e+00> : vector<16x128xf32>
    %21 = tpu.matmul %20, %1, %cst_17 {dimension_numbers = #tpu.dot_dimension_numbers<[1], [0], [0], [1], [0, 0, 1, 1], [], []>} : vector<16x128xf32>, vector<128x128xf32>, vector<16x128xf32> -> vector<16x128xf32>
    %22 = arith.maximumf %16, %21 : vector<16x128xf32>
    %23 = vector.extract_strided_slice %9 {offsets = [0, 256], sizes = [16, 128], strides = [1, 1]} : vector<16x640xf32> to vector<16x128xf32>
    %cst_18 = arith.constant dense<0.000000e+00> : vector<16x128xf32>
    %24 = tpu.matmul %23, %1, %cst_18 {dimension_numbers = #tpu.dot_dimension_numbers<[1], [0], [0], [1], [0, 0, 1, 1], [], []>} : vector<16x128xf32>, vector<128x128xf32>, vector<16x128xf32> -> vector<16x128xf32>
    %25 = arith.maximumf %19, %24 : vector<16x128xf32>
    %26 = vector.extract_strided_slice %6 {offsets = [0, 384], sizes = [16, 128], strides = [1, 1]} : vector<16x640xf32> to vector<16x128xf32>
    %cst_19 = arith.constant dense<0.000000e+00> : vector<16x128xf32>
    %27 = tpu.matmul %26, %1, %cst_19 {dimension_numbers = #tpu.dot_dimension_numbers<[1], [0], [0], [1], [0, 0, 1, 1], [], []>} : vector<16x128xf32>, vector<128x128xf32>, vector<16x128xf32> -> vector<16x128xf32>
    %28 = arith.maximumf %22, %27 : vector<16x128xf32>
    %29 = vector.extract_strided_slice %9 {offsets = [0, 384], sizes = [16, 128], strides = [1, 1]} : vector<16x640xf32> to vector<16x128xf32>
    %cst_20 = arith.constant dense<0.000000e+00> : vector<16x128xf32>
    %30 = tpu.matmul %29, %1, %cst_20 {dimension_numbers = #tpu.dot_dimension_numbers<[1], [0], [0], [1], [0, 0, 1, 1], [], []>} : vector<16x128xf32>, vector<128x128xf32>, vector<16x128xf32> -> vector<16x128xf32>
    %31 = arith.maximumf %25, %30 : vector<16x128xf32>
    %32 = vector.extract_strided_slice %6 {offsets = [0, 512], sizes = [16, 128], strides = [1, 1]} : vector<16x640xf32> to vector<16x128xf32>
    %cst_21 = arith.constant dense<0.000000e+00> : vector<16x128xf32>
    %33 = tpu.matmul %32, %1, %cst_21 {dimension_numbers = #tpu.dot_dimension_numbers<[1], [0], [0], [1], [0, 0, 1, 1], [], []>} : vector<16x128xf32>, vector<128x128xf32>, vector<16x128xf32> -> vector<16x128xf32>
    %34 = arith.maximumf %28, %33 : vector<16x128xf32>
    %35 = vector.extract_strided_slice %9 {offsets = [0, 512], sizes = [16, 128], strides = [1, 1]} : vector<16x640xf32> to vector<16x128xf32>
    %cst_22 = arith.constant dense<0.000000e+00> : vector<16x128xf32>
    %36 = tpu.matmul %35, %1, %cst_22 {dimension_numbers = #tpu.dot_dimension_numbers<[1], [0], [0], [1], [0, 0, 1, 1], [], []>} : vector<16x128xf32>, vector<128x128xf32>, vector<16x128xf32> -> vector<16x128xf32>
    %37 = arith.maximumf %31, %36 : vector<16x128xf32>
    %cst_23 = arith.constant 0.000000e+00 : f32
    %38 = vector.broadcast %cst_23 : f32 to vector<16x128xf32>
    %cst_24 = arith.constant 0.000000e+00 : f32
    %39 = vector.broadcast %cst_24 : f32 to vector<16x128xf32>
    %cst_25 = arith.constant 0.000000e+00 : f32
    %40 = vector.broadcast %cst_25 : f32 to vector<16x128xf32>
    %cst_26 = arith.constant 0.000000e+00 : f32
    %41 = vector.broadcast %cst_26 : f32 to vector<16x128xf32>
    %42 = vector.extract_strided_slice %6 {offsets = [0, 0], sizes = [16, 128], strides = [1, 1]} : vector<16x640xf32> to vector<16x128xf32>
    %cst_27 = arith.constant dense<0.000000e+00> : vector<16x128xf32>
    %43 = tpu.matmul %42, %1, %cst_27 {dimension_numbers = #tpu.dot_dimension_numbers<[1], [0], [0], [1], [0, 0, 1, 1], [], []>} : vector<16x128xf32>, vector<128x128xf32>, vector<16x128xf32> -> vector<16x128xf32>
    %44 = vector.extract_strided_slice %9 {offsets = [0, 0], sizes = [16, 128], strides = [1, 1]} : vector<16x640xf32> to vector<16x128xf32>
    %cst_28 = arith.constant dense<0.000000e+00> : vector<16x128xf32>
    %45 = tpu.matmul %44, %1, %cst_28 {dimension_numbers = #tpu.dot_dimension_numbers<[1], [0], [0], [1], [0, 0, 1, 1], [], []>} : vector<16x128xf32>, vector<128x128xf32>, vector<16x128xf32> -> vector<16x128xf32>
    %46 = arith.subf %43, %34 : vector<16x128xf32>
    %47 = math.exp %46 : vector<16x128xf32>
    %48 = arith.addf %38, %47 : vector<16x128xf32>
    %49 = arith.subf %45, %37 : vector<16x128xf32>
    %50 = math.exp %49 : vector<16x128xf32>
    %51 = arith.addf %39, %50 : vector<16x128xf32>
    %c0_i32 = arith.constant 0 : i32
    %52 = vector.broadcast %c0_i32 : i32 to vector<16x128xi32>
    %53 = arith.cmpi eq, %3, %52 : vector<16x128xi32>
    %cst_29 = arith.constant 0.000000e+00 : f32
    %54 = vector.broadcast %cst_29 : f32 to vector<16x128xf32>
    %55 = arith.select %53, %43, %54 : vector<16x128xi1>, vector<16x128xf32>
    %56 = arith.addf %40, %55 : vector<16x128xf32>
    %cst_30 = arith.constant 0.000000e+00 : f32
    %57 = vector.broadcast %cst_30 : f32 to vector<16x128xf32>
    %58 = arith.select %53, %45, %57 : vector<16x128xi1>, vector<16x128xf32>
    %59 = arith.addf %41, %58 : vector<16x128xf32>
    %60 = vector.extract_strided_slice %6 {offsets = [0, 128], sizes = [16, 128], strides = [1, 1]} : vector<16x640xf32> to vector<16x128xf32>
    %cst_31 = arith.constant dense<0.000000e+00> : vector<16x128xf32>
    %61 = tpu.matmul %60, %1, %cst_31 {dimension_numbers = #tpu.dot_dimension_numbers<[1], [0], [0], [1], [0, 0, 1, 1], [], []>} : vector<16x128xf32>, vector<128x128xf32>, vector<16x128xf32> -> vector<16x128xf32>
    %62 = vector.extract_strided_slice %9 {offsets = [0, 128], sizes = [16, 128], strides = [1, 1]} : vector<16x640xf32> to vector<16x128xf32>
    %cst_32 = arith.constant dense<0.000000e+00> : vector<16x128xf32>
    %63 = tpu.matmul %62, %1, %cst_32 {dimension_numbers = #tpu.dot_dimension_numbers<[1], [0], [0], [1], [0, 0, 1, 1], [], []>} : vector<16x128xf32>, vector<128x128xf32>, vector<16x128xf32> -> vector<16x128xf32>
    %64 = arith.subf %61, %34 : vector<16x128xf32>
    %65 = math.exp %64 : vector<16x128xf32>
    %66 = arith.addf %48, %65 : vector<16x128xf32>
    %67 = arith.subf %63, %37 : vector<16x128xf32>
    %68 = math.exp %67 : vector<16x128xf32>
    %69 = arith.addf %51, %68 : vector<16x128xf32>
    %c1_i32 = arith.constant 1 : i32
    %70 = vector.broadcast %c1_i32 : i32 to vector<16x128xi32>
    %71 = arith.cmpi eq, %3, %70 : vector<16x128xi32>
    %cst_33 = arith.constant 0.000000e+00 : f32
    %72 = vector.broadcast %cst_33 : f32 to vector<16x128xf32>
    %73 = arith.select %71, %61, %72 : vector<16x128xi1>, vector<16x128xf32>
    %74 = arith.addf %56, %73 : vector<16x128xf32>
    %cst_34 = arith.constant 0.000000e+00 : f32
    %75 = vector.broadcast %cst_34 : f32 to vector<16x128xf32>
    %76 = arith.select %71, %63, %75 : vector<16x128xi1>, vector<16x128xf32>
    %77 = arith.addf %59, %76 : vector<16x128xf32>
    %78 = vector.extract_strided_slice %6 {offsets = [0, 256], sizes = [16, 128], strides = [1, 1]} : vector<16x640xf32> to vector<16x128xf32>
    %cst_35 = arith.constant dense<0.000000e+00> : vector<16x128xf32>
    %79 = tpu.matmul %78, %1, %cst_35 {dimension_numbers = #tpu.dot_dimension_numbers<[1], [0], [0], [1], [0, 0, 1, 1], [], []>} : vector<16x128xf32>, vector<128x128xf32>, vector<16x128xf32> -> vector<16x128xf32>
    %80 = vector.extract_strided_slice %9 {offsets = [0, 256], sizes = [16, 128], strides = [1, 1]} : vector<16x640xf32> to vector<16x128xf32>
    %cst_36 = arith.constant dense<0.000000e+00> : vector<16x128xf32>
    %81 = tpu.matmul %80, %1, %cst_36 {dimension_numbers = #tpu.dot_dimension_numbers<[1], [0], [0], [1], [0, 0, 1, 1], [], []>} : vector<16x128xf32>, vector<128x128xf32>, vector<16x128xf32> -> vector<16x128xf32>
    %82 = arith.subf %79, %34 : vector<16x128xf32>
    %83 = math.exp %82 : vector<16x128xf32>
    %84 = arith.addf %66, %83 : vector<16x128xf32>
    %85 = arith.subf %81, %37 : vector<16x128xf32>
    %86 = math.exp %85 : vector<16x128xf32>
    %87 = arith.addf %69, %86 : vector<16x128xf32>
    %c2_i32 = arith.constant 2 : i32
    %88 = vector.broadcast %c2_i32 : i32 to vector<16x128xi32>
    %89 = arith.cmpi eq, %3, %88 : vector<16x128xi32>
    %cst_37 = arith.constant 0.000000e+00 : f32
    %90 = vector.broadcast %cst_37 : f32 to vector<16x128xf32>
    %91 = arith.select %89, %79, %90 : vector<16x128xi1>, vector<16x128xf32>
    %92 = arith.addf %74, %91 : vector<16x128xf32>
    %cst_38 = arith.constant 0.000000e+00 : f32
    %93 = vector.broadcast %cst_38 : f32 to vector<16x128xf32>
    %94 = arith.select %89, %81, %93 : vector<16x128xi1>, vector<16x128xf32>
    %95 = arith.addf %77, %94 : vector<16x128xf32>
    %96 = vector.extract_strided_slice %6 {offsets = [0, 384], sizes = [16, 128], strides = [1, 1]} : vector<16x640xf32> to vector<16x128xf32>
    %cst_39 = arith.constant dense<0.000000e+00> : vector<16x128xf32>
    %97 = tpu.matmul %96, %1, %cst_39 {dimension_numbers = #tpu.dot_dimension_numbers<[1], [0], [0], [1], [0, 0, 1, 1], [], []>} : vector<16x128xf32>, vector<128x128xf32>, vector<16x128xf32> -> vector<16x128xf32>
    %98 = vector.extract_strided_slice %9 {offsets = [0, 384], sizes = [16, 128], strides = [1, 1]} : vector<16x640xf32> to vector<16x128xf32>
    %cst_40 = arith.constant dense<0.000000e+00> : vector<16x128xf32>
    %99 = tpu.matmul %98, %1, %cst_40 {dimension_numbers = #tpu.dot_dimension_numbers<[1], [0], [0], [1], [0, 0, 1, 1], [], []>} : vector<16x128xf32>, vector<128x128xf32>, vector<16x128xf32> -> vector<16x128xf32>
    %100 = arith.subf %97, %34 : vector<16x128xf32>
    %101 = math.exp %100 : vector<16x128xf32>
    %102 = arith.addf %84, %101 : vector<16x128xf32>
    %103 = arith.subf %99, %37 : vector<16x128xf32>
    %104 = math.exp %103 : vector<16x128xf32>
    %105 = arith.addf %87, %104 : vector<16x128xf32>
    %c3_i32 = arith.constant 3 : i32
    %106 = vector.broadcast %c3_i32 : i32 to vector<16x128xi32>
    %107 = arith.cmpi eq, %3, %106 : vector<16x128xi32>
    %cst_41 = arith.constant 0.000000e+00 : f32
    %108 = vector.broadcast %cst_41 : f32 to vector<16x128xf32>
    %109 = arith.select %107, %97, %108 : vector<16x128xi1>, vector<16x128xf32>
    %110 = arith.addf %92, %109 : vector<16x128xf32>
    %cst_42 = arith.constant 0.000000e+00 : f32
    %111 = vector.broadcast %cst_42 : f32 to vector<16x128xf32>
    %112 = arith.select %107, %99, %111 : vector<16x128xi1>, vector<16x128xf32>
    %113 = arith.addf %95, %112 : vector<16x128xf32>
    %114 = vector.extract_strided_slice %6 {offsets = [0, 512], sizes = [16, 128], strides = [1, 1]} : vector<16x640xf32> to vector<16x128xf32>
    %cst_43 = arith.constant dense<0.000000e+00> : vector<16x128xf32>
    %115 = tpu.matmul %114, %1, %cst_43 {dimension_numbers = #tpu.dot_dimension_numbers<[1], [0], [0], [1], [0, 0, 1, 1], [], []>} : vector<16x128xf32>, vector<128x128xf32>, vector<16x128xf32> -> vector<16x128xf32>
    %116 = vector.extract_strided_slice %9 {offsets = [0, 512], sizes = [16, 128], strides = [1, 1]} : vector<16x640xf32> to vector<16x128xf32>
    %cst_44 = arith.constant dense<0.000000e+00> : vector<16x128xf32>
    %117 = tpu.matmul %116, %1, %cst_44 {dimension_numbers = #tpu.dot_dimension_numbers<[1], [0], [0], [1], [0, 0, 1, 1], [], []>} : vector<16x128xf32>, vector<128x128xf32>, vector<16x128xf32> -> vector<16x128xf32>
    %118 = arith.subf %115, %34 : vector<16x128xf32>
    %119 = math.exp %118 : vector<16x128xf32>
    %120 = arith.addf %102, %119 : vector<16x128xf32>
    %121 = arith.subf %117, %37 : vector<16x128xf32>
    %122 = math.exp %121 : vector<16x128xf32>
    %123 = arith.addf %105, %122 : vector<16x128xf32>
    %c4_i32 = arith.constant 4 : i32
    %124 = vector.broadcast %c4_i32 : i32 to vector<16x128xi32>
    %125 = arith.cmpi eq, %3, %124 : vector<16x128xi32>
    %cst_45 = arith.constant 0.000000e+00 : f32
    %126 = vector.broadcast %cst_45 : f32 to vector<16x128xf32>
    %127 = arith.select %125, %115, %126 : vector<16x128xi1>, vector<16x128xf32>
    %128 = arith.addf %110, %127 : vector<16x128xf32>
    %cst_46 = arith.constant 0.000000e+00 : f32
    %129 = vector.broadcast %cst_46 : f32 to vector<16x128xf32>
    %130 = arith.select %125, %117, %129 : vector<16x128xi1>, vector<16x128xf32>
    %131 = arith.addf %113, %130 : vector<16x128xf32>
    %132 = math.log %120 : vector<16x128xf32>
    %133 = arith.addf %34, %132 : vector<16x128xf32>
    %134 = math.log %123 : vector<16x128xf32>
    %135 = arith.addf %37, %134 : vector<16x128xf32>
    %c255_i32 = arith.constant 255 : i32
    %136 = vector.broadcast %c255_i32 : i32 to vector<16x128xi32>
    %137 = arith.cmpi ne, %3, %136 : vector<16x128xi32>
    %138 = arith.extui %137 : vector<16x128xi1> to vector<16x128xi32>
    %139 = arith.sitofp %138 : vector<16x128xi32> to vector<16x128xf32>
    %140 = arith.subf %133, %128 : vector<16x128xf32>
    %c0_47 = arith.constant 0 : index
    %c0_48 = arith.constant 0 : index
    %c0_49 = arith.constant 0 : index
    %141 = vector.load %arg7[%c0_47, %c0_48, %c0_49] : memref<1x16x128xf32, #tpu.memory_space<vmem>>, vector<1x16x128xf32>
    %142 = vector.shape_cast %141 : vector<1x16x128xf32> to vector<16x128xf32>
    %143 = vector.shape_cast %140 : vector<16x128xf32> to vector<1x16x128xf32>
    tpu.vector_store %arg7[%c0_47, %c0_48, %c0_49], %143 {strides = array<i32>} : memref<1x16x128xf32, #tpu.memory_space<vmem>>, vector<1x16x128xf32>,
    %144 = arith.subf %128, %133 : vector<16x128xf32>
    %145 = math.exp %144 : vector<16x128xf32>
    %cst_50 = arith.constant 2.000000e+00 : f32
    %146 = vector.broadcast %cst_50 : f32 to vector<16x128xf32>
    %147 = arith.select %137, %145, %146 : vector<16x128xi1>, vector<16x128xf32>
    %c0_51 = arith.constant 0 : index
    %c0_52 = arith.constant 0 : index
    %c0_53 = arith.constant 0 : index
    %148 = vector.load %arg8[%c0_51, %c0_52, %c0_53] : memref<1x16x128xf32, #tpu.memory_space<vmem>>, vector<1x16x128xf32>
    %149 = vector.shape_cast %148 : vector<1x16x128xf32> to vector<16x128xf32>
    %150 = vector.shape_cast %147 : vector<16x128xf32> to vector<1x16x128xf32>
    tpu.vector_store %arg8[%c0_51, %c0_52, %c0_53], %150 {strides = array<i32>} : memref<1x16x128xf32, #tpu.memory_space<vmem>>, vector<1x16x128xf32>,
    %151 = arith.subf %135, %131 : vector<16x128xf32>
    %152 = arith.mulf %151, %139 : vector<16x128xf32>
    %cst_54 = arith.constant dense<0.000000e+00> : vector<16xf32>
    %153 = vector.multi_reduction <add>, %152, %cst_54 [1] : vector<16x128xf32> to vector<16xf32>
    %154 = vector.shape_cast %153 : vector<16xf32> to vector<16x1xf32>
    %cst_55 = arith.constant dense<0.000000e+00> : vector<1xf32>
    %155 = vector.multi_reduction <add>, %154, %cst_55 [0] : vector<16x1xf32> to vector<1xf32>
    %156 = vector.shape_cast %155 : vector<1xf32> to vector<1x1xf32>
    %cst_56 = arith.constant dense<0.000000e+00> : vector<16xf32>
    %157 = vector.multi_reduction <add>, %139, %cst_56 [1] : vector<16x128xf32> to vector<16xf32>
    %158 = vector.shape_cast %157 : vector<16xf32> to vector<16x1xf32>
    %cst_57 = arith.constant dense<0.000000e+00> : vector<1xf32>
    %159 = vector.multi_reduction <add>, %158, %cst_57 [0] : vector<16x1xf32> to vector<1xf32>
    %160 = vector.shape_cast %159 : vector<1xf32> to vector<1x1xf32>
    %161 = tpu.iota {dimensions = array<i32: 0>} : vector<8x128xi32>
    %162 = tpu.iota {dimensions = array<i32: 1>} : vector<8x128xi32>
    %cst_58 = arith.constant 0.000000e+00 : f32
    %163 = vector.broadcast %cst_58 : f32 to vector<8x128xf32>
    %c0_i32_59 = arith.constant 0 : i32
    %164 = vector.broadcast %c0_i32_59 : i32 to vector<8x128xi32>
    %165 = arith.cmpi eq, %161, %164 : vector<8x128xi32>
    %c0_i32_60 = arith.constant 0 : i32
    %166 = vector.broadcast %c0_i32_60 : i32 to vector<8x128xi32>
    %167 = arith.cmpi eq, %162, %166 : vector<8x128xi32>
    %168 = arith.andi %165, %167 : vector<8x128xi1>
    %169 = vector.shape_cast %156 : vector<1x1xf32> to vector<1x1xf32>
    %170 = vector.broadcast %169 : vector<1x1xf32> to vector<8x128xf32>
    %171 = arith.select %168, %170, %163 : vector<8x128xi1>, vector<8x128xf32>
    %c0_i32_61 = arith.constant 0 : i32
    %172 = vector.broadcast %c0_i32_61 : i32 to vector<8x128xi32>
    %173 = arith.cmpi eq, %161, %172 : vector<8x128xi32>
    %c1_i32_62 = arith.constant 1 : i32
    %174 = vector.broadcast %c1_i32_62 : i32 to vector<8x128xi32>
    %175 = arith.cmpi eq, %162, %174 : vector<8x128xi32>
    %176 = arith.andi %173, %175 : vector<8x128xi1>
    %177 = vector.shape_cast %160 : vector<1x1xf32> to vector<1x1xf32>
    %178 = vector.broadcast %177 : vector<1x1xf32> to vector<8x128xf32>
    %179 = arith.select %176, %178, %171 : vector<8x128xi1>, vector<8x128xf32>
    %cst_63 = arith.constant 0.699999988 : f32
    %180 = vector.broadcast %cst_63 : f32 to vector<16x128xf32>
    %181 = arith.cmpf ole, %147, %180 : vector<16x128xf32>
    %cst_64 = arith.constant 1.000000e+00 : f32
    %cst_65 = arith.constant 0.000000e+00 : f32
    %182 = vector.broadcast %cst_64 : f32 to vector<16x128xf32>
    %183 = vector.broadcast %cst_65 : f32 to vector<16x128xf32>
    %184 = arith.select %181, %182, %183 : vector<16x128xi1>, vector<16x128xf32>
    %cst_66 = arith.constant dense<0.000000e+00> : vector<16xf32>
    %185 = vector.multi_reduction <add>, %184, %cst_66 [1] : vector<16x128xf32> to vector<16xf32>
    %186 = vector.shape_cast %185 : vector<16xf32> to vector<16x1xf32>
    %cst_67 = arith.constant dense<0.000000e+00> : vector<1xf32>
    %187 = vector.multi_reduction <add>, %186, %cst_67 [0] : vector<16x1xf32> to vector<1xf32>
    %188 = vector.shape_cast %187 : vector<1xf32> to vector<1x1xf32>
    %c1_i32_68 = arith.constant 1 : i32
    %189 = vector.broadcast %c1_i32_68 : i32 to vector<8x128xi32>
    %190 = arith.cmpi eq, %161, %189 : vector<8x128xi32>
    %c0_i32_69 = arith.constant 0 : i32
    %191 = vector.broadcast %c0_i32_69 : i32 to vector<8x128xi32>
    %192 = arith.cmpi eq, %162, %191 : vector<8x128xi32>
    %193 = arith.andi %190, %192 : vector<8x128xi1>
    %194 = vector.shape_cast %188 : vector<1x1xf32> to vector<1x1xf32>
    %195 = vector.broadcast %194 : vector<1x1xf32> to vector<8x128xf32>
    %196 = arith.select %193, %195, %179 : vector<8x128xi1>, vector<8x128xf32>
    %cst_70 = arith.constant 0.704761922 : f32
    %197 = vector.broadcast %cst_70 : f32 to vector<16x128xf32>
    %198 = arith.cmpf ole, %147, %197 : vector<16x128xf32>
    %cst_71 = arith.constant 1.000000e+00 : f32
    %cst_72 = arith.constant 0.000000e+00 : f32
    %199 = vector.broadcast %cst_71 : f32 to vector<16x128xf32>
    %200 = vector.broadcast %cst_72 : f32 to vector<16x128xf32>
    %201 = arith.select %198, %199, %200 : vector<16x128xi1>, vector<16x128xf32>
    %cst_73 = arith.constant dense<0.000000e+00> : vector<16xf32>
    %202 = vector.multi_reduction <add>, %201, %cst_73 [1] : vector<16x128xf32> to vector<16xf32>
    %203 = vector.shape_cast %202 : vector<16xf32> to vector<16x1xf32>
    %cst_74 = arith.constant dense<0.000000e+00> : vector<1xf32>
    %204 = vector.multi_reduction <add>, %203, %cst_74 [0] : vector<16x1xf32> to vector<1xf32>
    %205 = vector.shape_cast %204 : vector<1xf32> to vector<1x1xf32>
    %c1_i32_75 = arith.constant 1 : i32
    %206 = vector.broadcast %c1_i32_75 : i32 to vector<8x128xi32>
    %207 = arith.cmpi eq, %161, %206 : vector<8x128xi32>
    %c1_i32_76 = arith.constant 1 : i32
    %208 = vector.broadcast %c1_i32_76 : i32 to vector<8x128xi32>
    %209 = arith.cmpi eq, %162, %208 : vector<8x128xi32>
    %210 = arith.andi %207, %209 : vector<8x128xi1>
    %211 = vector.shape_cast %205 : vector<1x1xf32> to vector<1x1xf32>
    %212 = vector.broadcast %211 : vector<1x1xf32> to vector<8x128xf32>
    %213 = arith.select %210, %212, %196 : vector<8x128xi1>, vector<8x128xf32>
    %cst_77 = arith.constant 0.709523797 : f32
    %214 = vector.broadcast %cst_77 : f32 to vector<16x128xf32>
    %215 = arith.cmpf ole, %147, %214 : vector<16x128xf32>
    %cst_78 = arith.constant 1.000000e+00 : f32
    %cst_79 = arith.constant 0.000000e+00 : f32
    %216 = vector.broadcast %cst_78 : f32 to vector<16x128xf32>
    %217 = vector.broadcast %cst_79 : f32 to vector<16x128xf32>
    %218 = arith.select %215, %216, %217 : vector<16x128xi1>, vector<16x128xf32>
    %cst_80 = arith.constant dense<0.000000e+00> : vector<16xf32>
    %219 = vector.multi_reduction <add>, %218, %cst_80 [1] : vector<16x128xf32> to vector<16xf32>
    %220 = vector.shape_cast %219 : vector<16xf32> to vector<16x1xf32>
    %cst_81 = arith.constant dense<0.000000e+00> : vector<1xf32>
    %221 = vector.multi_reduction <add>, %220, %cst_81 [0] : vector<16x1xf32> to vector<1xf32>
    %222 = vector.shape_cast %221 : vector<1xf32> to vector<1x1xf32>
    %c1_i32_82 = arith.constant 1 : i32
    %223 = vector.broadcast %c1_i32_82 : i32 to vector<8x128xi32>
    %224 = arith.cmpi eq, %161, %223 : vector<8x128xi32>
    %c2_i32_83 = arith.constant 2 : i32
    %225 = vector.broadcast %c2_i32_83 : i32 to vector<8x128xi32>
    %226 = arith.cmpi eq, %162, %225 : vector<8x128xi32>
    %227 = arith.andi %224, %226 : vector<8x128xi1>
    %228 = vector.shape_cast %222 : vector<1x1xf32> to vector<1x1xf32>
    %229 = vector.broadcast %228 : vector<1x1xf32> to vector<8x128xf32>
    %230 = arith.select %227, %229, %213 : vector<8x128xi1>, vector<8x128xf32>
    %cst_84 = arith.constant 0.714285731 : f32
    %231 = vector.broadcast %cst_84 : f32 to vector<16x128xf32>
    %232 = arith.cmpf ole, %147, %231 : vector<16x128xf32>
    %cst_85 = arith.constant 1.000000e+00 : f32
    %cst_86 = arith.constant 0.000000e+00 : f32
    %233 = vector.broadcast %cst_85 : f32 to vector<16x128xf32>
    %234 = vector.broadcast %cst_86 : f32 to vector<16x128xf32>
    %235 = arith.select %232, %233, %234 : vector<16x128xi1>, vector<16x128xf32>
    %cst_87 = arith.constant dense<0.000000e+00> : vector<16xf32>
    %236 = vector.multi_reduction <add>, %235, %cst_87 [1] : vector<16x128xf32> to vector<16xf32>
    %237 = vector.shape_cast %236 : vector<16xf32> to vector<16x1xf32>
    %cst_88 = arith.constant dense<0.000000e+00> : vector<1xf32>
    %238 = vector.multi_reduction <add>, %237, %cst_88 [0] : vector<16x1xf32> to vector<1xf32>
    %239 = vector.shape_cast %238 : vector<1xf32> to vector<1x1xf32>
    %c1_i32_89 = arith.constant 1 : i32
    %240 = vector.broadcast %c1_i32_89 : i32 to vector<8x128xi32>
    %241 = arith.cmpi eq, %161, %240 : vector<8x128xi32>
    %c3_i32_90 = arith.constant 3 : i32
    %242 = vector.broadcast %c3_i32_90 : i32 to vector<8x128xi32>
    %243 = arith.cmpi eq, %162, %242 : vector<8x128xi32>
    %244 = arith.andi %241, %243 : vector<8x128xi1>
    %245 = vector.shape_cast %239 : vector<1x1xf32> to vector<1x1xf32>
    %246 = vector.broadcast %245 : vector<1x1xf32> to vector<8x128xf32>
    %247 = arith.select %244, %246, %230 : vector<8x128xi1>, vector<8x128xf32>
    %cst_91 = arith.constant 0.719047605 : f32
    %248 = vector.broadcast %cst_91 : f32 to vector<16x128xf32>
    %249 = arith.cmpf ole, %147, %248 : vector<16x128xf32>
    %cst_92 = arith.constant 1.000000e+00 : f32
    %cst_93 = arith.constant 0.000000e+00 : f32
    %250 = vector.broadcast %cst_92 : f32 to vector<16x128xf32>
    %251 = vector.broadcast %cst_93 : f32 to vector<16x128xf32>
    %252 = arith.select %249, %250, %251 : vector<16x128xi1>, vector<16x128xf32>
    %cst_94 = arith.constant dense<0.000000e+00> : vector<16xf32>
    %253 = vector.multi_reduction <add>, %252, %cst_94 [1] : vector<16x128xf32> to vector<16xf32>
    %254 = vector.shape_cast %253 : vector<16xf32> to vector<16x1xf32>
    %cst_95 = arith.constant dense<0.000000e+00> : vector<1xf32>
    %255 = vector.multi_reduction <add>, %254, %cst_95 [0] : vector<16x1xf32> to vector<1xf32>
    %256 = vector.shape_cast %255 : vector<1xf32> to vector<1x1xf32>
    %c1_i32_96 = arith.constant 1 : i32
    %257 = vector.broadcast %c1_i32_96 : i32 to vector<8x128xi32>
    %258 = arith.cmpi eq, %161, %257 : vector<8x128xi32>
    %c4_i32_97 = arith.constant 4 : i32
    %259 = vector.broadcast %c4_i32_97 : i32 to vector<8x128xi32>
    %260 = arith.cmpi eq, %162, %259 : vector<8x128xi32>
    %261 = arith.andi %258, %260 : vector<8x128xi1>
    %262 = vector.shape_cast %256 : vector<1x1xf32> to vector<1x1xf32>
    %263 = vector.broadcast %262 : vector<1x1xf32> to vector<8x128xf32>
    %264 = arith.select %261, %263, %247 : vector<8x128xi1>, vector<8x128xf32>
    %cst_98 = arith.constant 0.72380954 : f32
    %265 = vector.broadcast %cst_98 : f32 to vector<16x128xf32>
    %266 = arith.cmpf ole, %147, %265 : vector<16x128xf32>
    %cst_99 = arith.constant 1.000000e+00 : f32
    %cst_100 = arith.constant 0.000000e+00 : f32
    %267 = vector.broadcast %cst_99 : f32 to vector<16x128xf32>
    %268 = vector.broadcast %cst_100 : f32 to vector<16x128xf32>
    %269 = arith.select %266, %267, %268 : vector<16x128xi1>, vector<16x128xf32>
    %cst_101 = arith.constant dense<0.000000e+00> : vector<16xf32>
    %270 = vector.multi_reduction <add>, %269, %cst_101 [1] : vector<16x128xf32> to vector<16xf32>
    %271 = vector.shape_cast %270 : vector<16xf32> to vector<16x1xf32>
    %cst_102 = arith.constant dense<0.000000e+00> : vector<1xf32>
    %272 = vector.multi_reduction <add>, %271, %cst_102 [0] : vector<16x1xf32> to vector<1xf32>
    %273 = vector.shape_cast %272 : vector<1xf32> to vector<1x1xf32>
    %c1_i32_103 = arith.constant 1 : i32
    %274 = vector.broadcast %c1_i32_103 : i32 to vector<8x128xi32>
    %275 = arith.cmpi eq, %161, %274 : vector<8x128xi32>
    %c5_i32 = arith.constant 5 : i32
    %276 = vector.broadcast %c5_i32 : i32 to vector<8x128xi32>
    %277 = arith.cmpi eq, %162, %276 : vector<8x128xi32>
    %278 = arith.andi %275, %277 : vector<8x128xi1>
    %279 = vector.shape_cast %273 : vector<1x1xf32> to vector<1x1xf32>
    %280 = vector.broadcast %279 : vector<1x1xf32> to vector<8x128xf32>
    %281 = arith.select %278, %280, %264 : vector<8x128xi1>, vector<8x128xf32>
    %cst_104 = arith.constant 0.728571414 : f32
    %282 = vector.broadcast %cst_104 : f32 to vector<16x128xf32>
    %283 = arith.cmpf ole, %147, %282 : vector<16x128xf32>
    %cst_105 = arith.constant 1.000000e+00 : f32
    %cst_106 = arith.constant 0.000000e+00 : f32
    %284 = vector.broadcast %cst_105 : f32 to vector<16x128xf32>
    %285 = vector.broadcast %cst_106 : f32 to vector<16x128xf32>
    %286 = arith.select %283, %284, %285 : vector<16x128xi1>, vector<16x128xf32>
    %cst_107 = arith.constant dense<0.000000e+00> : vector<16xf32>
    %287 = vector.multi_reduction <add>, %286, %cst_107 [1] : vector<16x128xf32> to vector<16xf32>
    %288 = vector.shape_cast %287 : vector<16xf32> to vector<16x1xf32>
    %cst_108 = arith.constant dense<0.000000e+00> : vector<1xf32>
    %289 = vector.multi_reduction <add>, %288, %cst_108 [0] : vector<16x1xf32> to vector<1xf32>
    %290 = vector.shape_cast %289 : vector<1xf32> to vector<1x1xf32>
    %c1_i32_109 = arith.constant 1 : i32
    %291 = vector.broadcast %c1_i32_109 : i32 to vector<8x128xi32>
    %292 = arith.cmpi eq, %161, %291 : vector<8x128xi32>
    %c6_i32 = arith.constant 6 : i32
    %293 = vector.broadcast %c6_i32 : i32 to vector<8x128xi32>
    %294 = arith.cmpi eq, %162, %293 : vector<8x128xi32>
    %295 = arith.andi %292, %294 : vector<8x128xi1>
    %296 = vector.shape_cast %290 : vector<1x1xf32> to vector<1x1xf32>
    %297 = vector.broadcast %296 : vector<1x1xf32> to vector<8x128xf32>
    %298 = arith.select %295, %297, %281 : vector<8x128xi1>, vector<8x128xf32>
    %cst_110 = arith.constant 0.733333349 : f32
    %299 = vector.broadcast %cst_110 : f32 to vector<16x128xf32>
    %300 = arith.cmpf ole, %147, %299 : vector<16x128xf32>
    %cst_111 = arith.constant 1.000000e+00 : f32
    %cst_112 = arith.constant 0.000000e+00 : f32
    %301 = vector.broadcast %cst_111 : f32 to vector<16x128xf32>
    %302 = vector.broadcast %cst_112 : f32 to vector<16x128xf32>
    %303 = arith.select %300, %301, %302 : vector<16x128xi1>, vector<16x128xf32>
    %cst_113 = arith.constant dense<0.000000e+00> : vector<16xf32>
    %304 = vector.multi_reduction <add>, %303, %cst_113 [1] : vector<16x128xf32> to vector<16xf32>
    %305 = vector.shape_cast %304 : vector<16xf32> to vector<16x1xf32>
    %cst_114 = arith.constant dense<0.000000e+00> : vector<1xf32>
    %306 = vector.multi_reduction <add>, %305, %cst_114 [0] : vector<16x1xf32> to vector<1xf32>
    %307 = vector.shape_cast %306 : vector<1xf32> to vector<1x1xf32>
    %c1_i32_115 = arith.constant 1 : i32
    %308 = vector.broadcast %c1_i32_115 : i32 to vector<8x128xi32>
    %309 = arith.cmpi eq, %161, %308 : vector<8x128xi32>
    %c7_i32 = arith.constant 7 : i32
    %310 = vector.broadcast %c7_i32 : i32 to vector<8x128xi32>
    %311 = arith.cmpi eq, %162, %310 : vector<8x128xi32>
    %312 = arith.andi %309, %311 : vector<8x128xi1>
    %313 = vector.shape_cast %307 : vector<1x1xf32> to vector<1x1xf32>
    %314 = vector.broadcast %313 : vector<1x1xf32> to vector<8x128xf32>
    %315 = arith.select %312, %314, %298 : vector<8x128xi1>, vector<8x128xf32>
    %cst_116 = arith.constant 0.738095223 : f32
    %316 = vector.broadcast %cst_116 : f32 to vector<16x128xf32>
    %317 = arith.cmpf ole, %147, %316 : vector<16x128xf32>
    %cst_117 = arith.constant 1.000000e+00 : f32
    %cst_118 = arith.constant 0.000000e+00 : f32
    %318 = vector.broadcast %cst_117 : f32 to vector<16x128xf32>
    %319 = vector.broadcast %cst_118 : f32 to vector<16x128xf32>
    %320 = arith.select %317, %318, %319 : vector<16x128xi1>, vector<16x128xf32>
    %cst_119 = arith.constant dense<0.000000e+00> : vector<16xf32>
    %321 = vector.multi_reduction <add>, %320, %cst_119 [1] : vector<16x128xf32> to vector<16xf32>
    %322 = vector.shape_cast %321 : vector<16xf32> to vector<16x1xf32>
    %cst_120 = arith.constant dense<0.000000e+00> : vector<1xf32>
    %323 = vector.multi_reduction <add>, %322, %cst_120 [0] : vector<16x1xf32> to vector<1xf32>
    %324 = vector.shape_cast %323 : vector<1xf32> to vector<1x1xf32>
    %c1_i32_121 = arith.constant 1 : i32
    %325 = vector.broadcast %c1_i32_121 : i32 to vector<8x128xi32>
    %326 = arith.cmpi eq, %161, %325 : vector<8x128xi32>
    %c8_i32 = arith.constant 8 : i32
    %327 = vector.broadcast %c8_i32 : i32 to vector<8x128xi32>
    %328 = arith.cmpi eq, %162, %327 : vector<8x128xi32>
    %329 = arith.andi %326, %328 : vector<8x128xi1>
    %330 = vector.shape_cast %324 : vector<1x1xf32> to vector<1x1xf32>
    %331 = vector.broadcast %330 : vector<1x1xf32> to vector<8x128xf32>
    %332 = arith.select %329, %331, %315 : vector<8x128xi1>, vector<8x128xf32>
    %cst_122 = arith.constant 0.742857158 : f32
    %333 = vector.broadcast %cst_122 : f32 to vector<16x128xf32>
    %334 = arith.cmpf ole, %147, %333 : vector<16x128xf32>
    %cst_123 = arith.constant 1.000000e+00 : f32
    %cst_124 = arith.constant 0.000000e+00 : f32
    %335 = vector.broadcast %cst_123 : f32 to vector<16x128xf32>
    %336 = vector.broadcast %cst_124 : f32 to vector<16x128xf32>
    %337 = arith.select %334, %335, %336 : vector<16x128xi1>, vector<16x128xf32>
    %cst_125 = arith.constant dense<0.000000e+00> : vector<16xf32>
    %338 = vector.multi_reduction <add>, %337, %cst_125 [1] : vector<16x128xf32> to vector<16xf32>
    %339 = vector.shape_cast %338 : vector<16xf32> to vector<16x1xf32>
    %cst_126 = arith.constant dense<0.000000e+00> : vector<1xf32>
    %340 = vector.multi_reduction <add>, %339, %cst_126 [0] : vector<16x1xf32> to vector<1xf32>
    %341 = vector.shape_cast %340 : vector<1xf32> to vector<1x1xf32>
    %c1_i32_127 = arith.constant 1 : i32
    %342 = vector.broadcast %c1_i32_127 : i32 to vector<8x128xi32>
    %343 = arith.cmpi eq, %161, %342 : vector<8x128xi32>
    %c9_i32 = arith.constant 9 : i32
    %344 = vector.broadcast %c9_i32 : i32 to vector<8x128xi32>
    %345 = arith.cmpi eq, %162, %344 : vector<8x128xi32>
    %346 = arith.andi %343, %345 : vector<8x128xi1>
    %347 = vector.shape_cast %341 : vector<1x1xf32> to vector<1x1xf32>
    %348 = vector.broadcast %347 : vector<1x1xf32> to vector<8x128xf32>
    %349 = arith.select %346, %348, %332 : vector<8x128xi1>, vector<8x128xf32>
    %cst_128 = arith.constant 0.747619033 : f32
    %350 = vector.broadcast %cst_128 : f32 to vector<16x128xf32>
    %351 = arith.cmpf ole, %147, %350 : vector<16x128xf32>
    %cst_129 = arith.constant 1.000000e+00 : f32
    %cst_130 = arith.constant 0.000000e+00 : f32
    %352 = vector.broadcast %cst_129 : f32 to vector<16x128xf32>
    %353 = vector.broadcast %cst_130 : f32 to vector<16x128xf32>
    %354 = arith.select %351, %352, %353 : vector<16x128xi1>, vector<16x128xf32>
    %cst_131 = arith.constant dense<0.000000e+00> : vector<16xf32>
    %355 = vector.multi_reduction <add>, %354, %cst_131 [1] : vector<16x128xf32> to vector<16xf32>
    %356 = vector.shape_cast %355 : vector<16xf32> to vector<16x1xf32>
    %cst_132 = arith.constant dense<0.000000e+00> : vector<1xf32>
    %357 = vector.multi_reduction <add>, %356, %cst_132 [0] : vector<16x1xf32> to vector<1xf32>
    %358 = vector.shape_cast %357 : vector<1xf32> to vector<1x1xf32>
    %c1_i32_133 = arith.constant 1 : i32
    %359 = vector.broadcast %c1_i32_133 : i32 to vector<8x128xi32>
    %360 = arith.cmpi eq, %161, %359 : vector<8x128xi32>
    %c10_i32 = arith.constant 10 : i32
    %361 = vector.broadcast %c10_i32 : i32 to vector<8x128xi32>
    %362 = arith.cmpi eq, %162, %361 : vector<8x128xi32>
    %363 = arith.andi %360, %362 : vector<8x128xi1>
    %364 = vector.shape_cast %358 : vector<1x1xf32> to vector<1x1xf32>
    %365 = vector.broadcast %364 : vector<1x1xf32> to vector<8x128xf32>
    %366 = arith.select %363, %365, %349 : vector<8x128xi1>, vector<8x128xf32>
    %cst_134 = arith.constant 0.752380967 : f32
    %367 = vector.broadcast %cst_134 : f32 to vector<16x128xf32>
    %368 = arith.cmpf ole, %147, %367 : vector<16x128xf32>
    %cst_135 = arith.constant 1.000000e+00 : f32
    %cst_136 = arith.constant 0.000000e+00 : f32
    %369 = vector.broadcast %cst_135 : f32 to vector<16x128xf32>
    %370 = vector.broadcast %cst_136 : f32 to vector<16x128xf32>
    %371 = arith.select %368, %369, %370 : vector<16x128xi1>, vector<16x128xf32>
    %cst_137 = arith.constant dense<0.000000e+00> : vector<16xf32>
    %372 = vector.multi_reduction <add>, %371, %cst_137 [1] : vector<16x128xf32> to vector<16xf32>
    %373 = vector.shape_cast %372 : vector<16xf32> to vector<16x1xf32>
    %cst_138 = arith.constant dense<0.000000e+00> : vector<1xf32>
    %374 = vector.multi_reduction <add>, %373, %cst_138 [0] : vector<16x1xf32> to vector<1xf32>
    %375 = vector.shape_cast %374 : vector<1xf32> to vector<1x1xf32>
    %c1_i32_139 = arith.constant 1 : i32
    %376 = vector.broadcast %c1_i32_139 : i32 to vector<8x128xi32>
    %377 = arith.cmpi eq, %161, %376 : vector<8x128xi32>
    %c11_i32 = arith.constant 11 : i32
    %378 = vector.broadcast %c11_i32 : i32 to vector<8x128xi32>
    %379 = arith.cmpi eq, %162, %378 : vector<8x128xi32>
    %380 = arith.andi %377, %379 : vector<8x128xi1>
    %381 = vector.shape_cast %375 : vector<1x1xf32> to vector<1x1xf32>
    %382 = vector.broadcast %381 : vector<1x1xf32> to vector<8x128xf32>
    %383 = arith.select %380, %382, %366 : vector<8x128xi1>, vector<8x128xf32>
    %cst_140 = arith.constant 0.757142841 : f32
    %384 = vector.broadcast %cst_140 : f32 to vector<16x128xf32>
    %385 = arith.cmpf ole, %147, %384 : vector<16x128xf32>
    %cst_141 = arith.constant 1.000000e+00 : f32
    %cst_142 = arith.constant 0.000000e+00 : f32
    %386 = vector.broadcast %cst_141 : f32 to vector<16x128xf32>
    %387 = vector.broadcast %cst_142 : f32 to vector<16x128xf32>
    %388 = arith.select %385, %386, %387 : vector<16x128xi1>, vector<16x128xf32>
    %cst_143 = arith.constant dense<0.000000e+00> : vector<16xf32>
    %389 = vector.multi_reduction <add>, %388, %cst_143 [1] : vector<16x128xf32> to vector<16xf32>
    %390 = vector.shape_cast %389 : vector<16xf32> to vector<16x1xf32>
    %cst_144 = arith.constant dense<0.000000e+00> : vector<1xf32>
    %391 = vector.multi_reduction <add>, %390, %cst_144 [0] : vector<16x1xf32> to vector<1xf32>
    %392 = vector.shape_cast %391 : vector<1xf32> to vector<1x1xf32>
    %c1_i32_145 = arith.constant 1 : i32
    %393 = vector.broadcast %c1_i32_145 : i32 to vector<8x128xi32>
    %394 = arith.cmpi eq, %161, %393 : vector<8x128xi32>
    %c12_i32 = arith.constant 12 : i32
    %395 = vector.broadcast %c12_i32 : i32 to vector<8x128xi32>
    %396 = arith.cmpi eq, %162, %395 : vector<8x128xi32>
    %397 = arith.andi %394, %396 : vector<8x128xi1>
    %398 = vector.shape_cast %392 : vector<1x1xf32> to vector<1x1xf32>
    %399 = vector.broadcast %398 : vector<1x1xf32> to vector<8x128xf32>
    %400 = arith.select %397, %399, %383 : vector<8x128xi1>, vector<8x128xf32>
    %cst_146 = arith.constant 0.761904776 : f32
    %401 = vector.broadcast %cst_146 : f32 to vector<16x128xf32>
    %402 = arith.cmpf ole, %147, %401 : vector<16x128xf32>
    %cst_147 = arith.constant 1.000000e+00 : f32
    %cst_148 = arith.constant 0.000000e+00 : f32
    %403 = vector.broadcast %cst_147 : f32 to vector<16x128xf32>
    %404 = vector.broadcast %cst_148 : f32 to vector<16x128xf32>
    %405 = arith.select %402, %403, %404 : vector<16x128xi1>, vector<16x128xf32>
    %cst_149 = arith.constant dense<0.000000e+00> : vector<16xf32>
    %406 = vector.multi_reduction <add>, %405, %cst_149 [1] : vector<16x128xf32> to vector<16xf32>
    %407 = vector.shape_cast %406 : vector<16xf32> to vector<16x1xf32>
    %cst_150 = arith.constant dense<0.000000e+00> : vector<1xf32>
    %408 = vector.multi_reduction <add>, %407, %cst_150 [0] : vector<16x1xf32> to vector<1xf32>
    %409 = vector.shape_cast %408 : vector<1xf32> to vector<1x1xf32>
    %c1_i32_151 = arith.constant 1 : i32
    %410 = vector.broadcast %c1_i32_151 : i32 to vector<8x128xi32>
    %411 = arith.cmpi eq, %161, %410 : vector<8x128xi32>
    %c13_i32 = arith.constant 13 : i32
    %412 = vector.broadcast %c13_i32 : i32 to vector<8x128xi32>
    %413 = arith.cmpi eq, %162, %412 : vector<8x128xi32>
    %414 = arith.andi %411, %413 : vector<8x128xi1>
    %415 = vector.shape_cast %409 : vector<1x1xf32> to vector<1x1xf32>
    %416 = vector.broadcast %415 : vector<1x1xf32> to vector<8x128xf32>
    %417 = arith.select %414, %416, %400 : vector<8x128xi1>, vector<8x128xf32>
    %cst_152 = arith.constant 0.766666651 : f32
    %418 = vector.broadcast %cst_152 : f32 to vector<16x128xf32>
    %419 = arith.cmpf ole, %147, %418 : vector<16x128xf32>
    %cst_153 = arith.constant 1.000000e+00 : f32
    %cst_154 = arith.constant 0.000000e+00 : f32
    %420 = vector.broadcast %cst_153 : f32 to vector<16x128xf32>
    %421 = vector.broadcast %cst_154 : f32 to vector<16x128xf32>
    %422 = arith.select %419, %420, %421 : vector<16x128xi1>, vector<16x128xf32>
    %cst_155 = arith.constant dense<0.000000e+00> : vector<16xf32>
    %423 = vector.multi_reduction <add>, %422, %cst_155 [1] : vector<16x128xf32> to vector<16xf32>
    %424 = vector.shape_cast %423 : vector<16xf32> to vector<16x1xf32>
    %cst_156 = arith.constant dense<0.000000e+00> : vector<1xf32>
    %425 = vector.multi_reduction <add>, %424, %cst_156 [0] : vector<16x1xf32> to vector<1xf32>
    %426 = vector.shape_cast %425 : vector<1xf32> to vector<1x1xf32>
    %c1_i32_157 = arith.constant 1 : i32
    %427 = vector.broadcast %c1_i32_157 : i32 to vector<8x128xi32>
    %428 = arith.cmpi eq, %161, %427 : vector<8x128xi32>
    %c14_i32 = arith.constant 14 : i32
    %429 = vector.broadcast %c14_i32 : i32 to vector<8x128xi32>
    %430 = arith.cmpi eq, %162, %429 : vector<8x128xi32>
    %431 = arith.andi %428, %430 : vector<8x128xi1>
    %432 = vector.shape_cast %426 : vector<1x1xf32> to vector<1x1xf32>
    %433 = vector.broadcast %432 : vector<1x1xf32> to vector<8x128xf32>
    %434 = arith.select %431, %433, %417 : vector<8x128xi1>, vector<8x128xf32>
    %cst_158 = arith.constant 0.771428585 : f32
    %435 = vector.broadcast %cst_158 : f32 to vector<16x128xf32>
    %436 = arith.cmpf ole, %147, %435 : vector<16x128xf32>
    %cst_159 = arith.constant 1.000000e+00 : f32
    %cst_160 = arith.constant 0.000000e+00 : f32
    %437 = vector.broadcast %cst_159 : f32 to vector<16x128xf32>
    %438 = vector.broadcast %cst_160 : f32 to vector<16x128xf32>
    %439 = arith.select %436, %437, %438 : vector<16x128xi1>, vector<16x128xf32>
    %cst_161 = arith.constant dense<0.000000e+00> : vector<16xf32>
    %440 = vector.multi_reduction <add>, %439, %cst_161 [1] : vector<16x128xf32> to vector<16xf32>
    %441 = vector.shape_cast %440 : vector<16xf32> to vector<16x1xf32>
    %cst_162 = arith.constant dense<0.000000e+00> : vector<1xf32>
    %442 = vector.multi_reduction <add>, %441, %cst_162 [0] : vector<16x1xf32> to vector<1xf32>
    %443 = vector.shape_cast %442 : vector<1xf32> to vector<1x1xf32>
    %c1_i32_163 = arith.constant 1 : i32
    %444 = vector.broadcast %c1_i32_163 : i32 to vector<8x128xi32>
    %445 = arith.cmpi eq, %161, %444 : vector<8x128xi32>
    %c15_i32 = arith.constant 15 : i32
    %446 = vector.broadcast %c15_i32 : i32 to vector<8x128xi32>
    %447 = arith.cmpi eq, %162, %446 : vector<8x128xi32>
    %448 = arith.andi %445, %447 : vector<8x128xi1>
    %449 = vector.shape_cast %443 : vector<1x1xf32> to vector<1x1xf32>
    %450 = vector.broadcast %449 : vector<1x1xf32> to vector<8x128xf32>
    %451 = arith.select %448, %450, %434 : vector<8x128xi1>, vector<8x128xf32>
    %cst_164 = arith.constant 0.776190459 : f32
    %452 = vector.broadcast %cst_164 : f32 to vector<16x128xf32>
    %453 = arith.cmpf ole, %147, %452 : vector<16x128xf32>
    %cst_165 = arith.constant 1.000000e+00 : f32
    %cst_166 = arith.constant 0.000000e+00 : f32
    %454 = vector.broadcast %cst_165 : f32 to vector<16x128xf32>
    %455 = vector.broadcast %cst_166 : f32 to vector<16x128xf32>
    %456 = arith.select %453, %454, %455 : vector<16x128xi1>, vector<16x128xf32>
    %cst_167 = arith.constant dense<0.000000e+00> : vector<16xf32>
    %457 = vector.multi_reduction <add>, %456, %cst_167 [1] : vector<16x128xf32> to vector<16xf32>
    %458 = vector.shape_cast %457 : vector<16xf32> to vector<16x1xf32>
    %cst_168 = arith.constant dense<0.000000e+00> : vector<1xf32>
    %459 = vector.multi_reduction <add>, %458, %cst_168 [0] : vector<16x1xf32> to vector<1xf32>
    %460 = vector.shape_cast %459 : vector<1xf32> to vector<1x1xf32>
    %c1_i32_169 = arith.constant 1 : i32
    %461 = vector.broadcast %c1_i32_169 : i32 to vector<8x128xi32>
    %462 = arith.cmpi eq, %161, %461 : vector<8x128xi32>
    %c16_i32 = arith.constant 16 : i32
    %463 = vector.broadcast %c16_i32 : i32 to vector<8x128xi32>
    %464 = arith.cmpi eq, %162, %463 : vector<8x128xi32>
    %465 = arith.andi %462, %464 : vector<8x128xi1>
    %466 = vector.shape_cast %460 : vector<1x1xf32> to vector<1x1xf32>
    %467 = vector.broadcast %466 : vector<1x1xf32> to vector<8x128xf32>
    %468 = arith.select %465, %467, %451 : vector<8x128xi1>, vector<8x128xf32>
    %cst_170 = arith.constant 0.780952394 : f32
    %469 = vector.broadcast %cst_170 : f32 to vector<16x128xf32>
    %470 = arith.cmpf ole, %147, %469 : vector<16x128xf32>
    %cst_171 = arith.constant 1.000000e+00 : f32
    %cst_172 = arith.constant 0.000000e+00 : f32
    %471 = vector.broadcast %cst_171 : f32 to vector<16x128xf32>
    %472 = vector.broadcast %cst_172 : f32 to vector<16x128xf32>
    %473 = arith.select %470, %471, %472 : vector<16x128xi1>, vector<16x128xf32>
    %cst_173 = arith.constant dense<0.000000e+00> : vector<16xf32>
    %474 = vector.multi_reduction <add>, %473, %cst_173 [1] : vector<16x128xf32> to vector<16xf32>
    %475 = vector.shape_cast %474 : vector<16xf32> to vector<16x1xf32>
    %cst_174 = arith.constant dense<0.000000e+00> : vector<1xf32>
    %476 = vector.multi_reduction <add>, %475, %cst_174 [0] : vector<16x1xf32> to vector<1xf32>
    %477 = vector.shape_cast %476 : vector<1xf32> to vector<1x1xf32>
    %c1_i32_175 = arith.constant 1 : i32
    %478 = vector.broadcast %c1_i32_175 : i32 to vector<8x128xi32>
    %479 = arith.cmpi eq, %161, %478 : vector<8x128xi32>
    %c17_i32 = arith.constant 17 : i32
    %480 = vector.broadcast %c17_i32 : i32 to vector<8x128xi32>
    %481 = arith.cmpi eq, %162, %480 : vector<8x128xi32>
    %482 = arith.andi %479, %481 : vector<8x128xi1>
    %483 = vector.shape_cast %477 : vector<1x1xf32> to vector<1x1xf32>
    %484 = vector.broadcast %483 : vector<1x1xf32> to vector<8x128xf32>
    %485 = arith.select %482, %484, %468 : vector<8x128xi1>, vector<8x128xf32>
    %cst_176 = arith.constant 0.785714268 : f32
    %486 = vector.broadcast %cst_176 : f32 to vector<16x128xf32>
    %487 = arith.cmpf ole, %147, %486 : vector<16x128xf32>
    %cst_177 = arith.constant 1.000000e+00 : f32
    %cst_178 = arith.constant 0.000000e+00 : f32
    %488 = vector.broadcast %cst_177 : f32 to vector<16x128xf32>
    %489 = vector.broadcast %cst_178 : f32 to vector<16x128xf32>
    %490 = arith.select %487, %488, %489 : vector<16x128xi1>, vector<16x128xf32>
    %cst_179 = arith.constant dense<0.000000e+00> : vector<16xf32>
    %491 = vector.multi_reduction <add>, %490, %cst_179 [1] : vector<16x128xf32> to vector<16xf32>
    %492 = vector.shape_cast %491 : vector<16xf32> to vector<16x1xf32>
    %cst_180 = arith.constant dense<0.000000e+00> : vector<1xf32>
    %493 = vector.multi_reduction <add>, %492, %cst_180 [0] : vector<16x1xf32> to vector<1xf32>
    %494 = vector.shape_cast %493 : vector<1xf32> to vector<1x1xf32>
    %c1_i32_181 = arith.constant 1 : i32
    %495 = vector.broadcast %c1_i32_181 : i32 to vector<8x128xi32>
    %496 = arith.cmpi eq, %161, %495 : vector<8x128xi32>
    %c18_i32 = arith.constant 18 : i32
    %497 = vector.broadcast %c18_i32 : i32 to vector<8x128xi32>
    %498 = arith.cmpi eq, %162, %497 : vector<8x128xi32>
    %499 = arith.andi %496, %498 : vector<8x128xi1>
    %500 = vector.shape_cast %494 : vector<1x1xf32> to vector<1x1xf32>
    %501 = vector.broadcast %500 : vector<1x1xf32> to vector<8x128xf32>
    %502 = arith.select %499, %501, %485 : vector<8x128xi1>, vector<8x128xf32>
    %cst_182 = arith.constant 0.790476202 : f32
    %503 = vector.broadcast %cst_182 : f32 to vector<16x128xf32>
    %504 = arith.cmpf ole, %147, %503 : vector<16x128xf32>
    %cst_183 = arith.constant 1.000000e+00 : f32
    %cst_184 = arith.constant 0.000000e+00 : f32
    %505 = vector.broadcast %cst_183 : f32 to vector<16x128xf32>
    %506 = vector.broadcast %cst_184 : f32 to vector<16x128xf32>
    %507 = arith.select %504, %505, %506 : vector<16x128xi1>, vector<16x128xf32>
    %cst_185 = arith.constant dense<0.000000e+00> : vector<16xf32>
    %508 = vector.multi_reduction <add>, %507, %cst_185 [1] : vector<16x128xf32> to vector<16xf32>
    %509 = vector.shape_cast %508 : vector<16xf32> to vector<16x1xf32>
    %cst_186 = arith.constant dense<0.000000e+00> : vector<1xf32>
    %510 = vector.multi_reduction <add>, %509, %cst_186 [0] : vector<16x1xf32> to vector<1xf32>
    %511 = vector.shape_cast %510 : vector<1xf32> to vector<1x1xf32>
    %c1_i32_187 = arith.constant 1 : i32
    %512 = vector.broadcast %c1_i32_187 : i32 to vector<8x128xi32>
    %513 = arith.cmpi eq, %161, %512 : vector<8x128xi32>
    %c19_i32 = arith.constant 19 : i32
    %514 = vector.broadcast %c19_i32 : i32 to vector<8x128xi32>
    %515 = arith.cmpi eq, %162, %514 : vector<8x128xi32>
    %516 = arith.andi %513, %515 : vector<8x128xi1>
    %517 = vector.shape_cast %511 : vector<1x1xf32> to vector<1x1xf32>
    %518 = vector.broadcast %517 : vector<1x1xf32> to vector<8x128xf32>
    %519 = arith.select %516, %518, %502 : vector<8x128xi1>, vector<8x128xf32>
    %cst_188 = arith.constant 0.795238077 : f32
    %520 = vector.broadcast %cst_188 : f32 to vector<16x128xf32>
    %521 = arith.cmpf ole, %147, %520 : vector<16x128xf32>
    %cst_189 = arith.constant 1.000000e+00 : f32
    %cst_190 = arith.constant 0.000000e+00 : f32
    %522 = vector.broadcast %cst_189 : f32 to vector<16x128xf32>
    %523 = vector.broadcast %cst_190 : f32 to vector<16x128xf32>
    %524 = arith.select %521, %522, %523 : vector<16x128xi1>, vector<16x128xf32>
    %cst_191 = arith.constant dense<0.000000e+00> : vector<16xf32>
    %525 = vector.multi_reduction <add>, %524, %cst_191 [1] : vector<16x128xf32> to vector<16xf32>
    %526 = vector.shape_cast %525 : vector<16xf32> to vector<16x1xf32>
    %cst_192 = arith.constant dense<0.000000e+00> : vector<1xf32>
    %527 = vector.multi_reduction <add>, %526, %cst_192 [0] : vector<16x1xf32> to vector<1xf32>
    %528 = vector.shape_cast %527 : vector<1xf32> to vector<1x1xf32>
    %c1_i32_193 = arith.constant 1 : i32
    %529 = vector.broadcast %c1_i32_193 : i32 to vector<8x128xi32>
    %530 = arith.cmpi eq, %161, %529 : vector<8x128xi32>
    %c20_i32 = arith.constant 20 : i32
    %531 = vector.broadcast %c20_i32 : i32 to vector<8x128xi32>
    %532 = arith.cmpi eq, %162, %531 : vector<8x128xi32>
    %533 = arith.andi %530, %532 : vector<8x128xi1>
    %534 = vector.shape_cast %528 : vector<1x1xf32> to vector<1x1xf32>
    %535 = vector.broadcast %534 : vector<1x1xf32> to vector<8x128xf32>
    %536 = arith.select %533, %535, %519 : vector<8x128xi1>, vector<8x128xf32>
    %cst_194 = arith.constant 8.000000e-01 : f32
    %537 = vector.broadcast %cst_194 : f32 to vector<16x128xf32>
    %538 = arith.cmpf ole, %147, %537 : vector<16x128xf32>
    %cst_195 = arith.constant 1.000000e+00 : f32
    %cst_196 = arith.constant 0.000000e+00 : f32
    %539 = vector.broadcast %cst_195 : f32 to vector<16x128xf32>
    %540 = vector.broadcast %cst_196 : f32 to vector<16x128xf32>
    %541 = arith.select %538, %539, %540 : vector<16x128xi1>, vector<16x128xf32>
    %cst_197 = arith.constant dense<0.000000e+00> : vector<16xf32>
    %542 = vector.multi_reduction <add>, %541, %cst_197 [1] : vector<16x128xf32> to vector<16xf32>
    %543 = vector.shape_cast %542 : vector<16xf32> to vector<16x1xf32>
    %cst_198 = arith.constant dense<0.000000e+00> : vector<1xf32>
    %544 = vector.multi_reduction <add>, %543, %cst_198 [0] : vector<16x1xf32> to vector<1xf32>
    %545 = vector.shape_cast %544 : vector<1xf32> to vector<1x1xf32>
    %c1_i32_199 = arith.constant 1 : i32
    %546 = vector.broadcast %c1_i32_199 : i32 to vector<8x128xi32>
    %547 = arith.cmpi eq, %161, %546 : vector<8x128xi32>
    %c21_i32 = arith.constant 21 : i32
    %548 = vector.broadcast %c21_i32 : i32 to vector<8x128xi32>
    %549 = arith.cmpi eq, %162, %548 : vector<8x128xi32>
    %550 = arith.andi %547, %549 : vector<8x128xi1>
    %551 = vector.shape_cast %545 : vector<1x1xf32> to vector<1x1xf32>
    %552 = vector.broadcast %551 : vector<1x1xf32> to vector<8x128xf32>
    %553 = arith.select %550, %552, %536 : vector<8x128xi1>, vector<8x128xf32>
    %cst_200 = arith.constant 0.804761887 : f32
    %554 = vector.broadcast %cst_200 : f32 to vector<16x128xf32>
    %555 = arith.cmpf ole, %147, %554 : vector<16x128xf32>
    %cst_201 = arith.constant 1.000000e+00 : f32
    %cst_202 = arith.constant 0.000000e+00 : f32
    %556 = vector.broadcast %cst_201 : f32 to vector<16x128xf32>
    %557 = vector.broadcast %cst_202 : f32 to vector<16x128xf32>
    %558 = arith.select %555, %556, %557 : vector<16x128xi1>, vector<16x128xf32>
    %cst_203 = arith.constant dense<0.000000e+00> : vector<16xf32>
    %559 = vector.multi_reduction <add>, %558, %cst_203 [1] : vector<16x128xf32> to vector<16xf32>
    %560 = vector.shape_cast %559 : vector<16xf32> to vector<16x1xf32>
    %cst_204 = arith.constant dense<0.000000e+00> : vector<1xf32>
    %561 = vector.multi_reduction <add>, %560, %cst_204 [0] : vector<16x1xf32> to vector<1xf32>
    %562 = vector.shape_cast %561 : vector<1xf32> to vector<1x1xf32>
    %c1_i32_205 = arith.constant 1 : i32
    %563 = vector.broadcast %c1_i32_205 : i32 to vector<8x128xi32>
    %564 = arith.cmpi eq, %161, %563 : vector<8x128xi32>
    %c22_i32 = arith.constant 22 : i32
    %565 = vector.broadcast %c22_i32 : i32 to vector<8x128xi32>
    %566 = arith.cmpi eq, %162, %565 : vector<8x128xi32>
    %567 = arith.andi %564, %566 : vector<8x128xi1>
    %568 = vector.shape_cast %562 : vector<1x1xf32> to vector<1x1xf32>
    %569 = vector.broadcast %568 : vector<1x1xf32> to vector<8x128xf32>
    %570 = arith.select %567, %569, %553 : vector<8x128xi1>, vector<8x128xf32>
    %cst_206 = arith.constant 0.809523821 : f32
    %571 = vector.broadcast %cst_206 : f32 to vector<16x128xf32>
    %572 = arith.cmpf ole, %147, %571 : vector<16x128xf32>
    %cst_207 = arith.constant 1.000000e+00 : f32
    %cst_208 = arith.constant 0.000000e+00 : f32
    %573 = vector.broadcast %cst_207 : f32 to vector<16x128xf32>
    %574 = vector.broadcast %cst_208 : f32 to vector<16x128xf32>
    %575 = arith.select %572, %573, %574 : vector<16x128xi1>, vector<16x128xf32>
    %cst_209 = arith.constant dense<0.000000e+00> : vector<16xf32>
    %576 = vector.multi_reduction <add>, %575, %cst_209 [1] : vector<16x128xf32> to vector<16xf32>
    %577 = vector.shape_cast %576 : vector<16xf32> to vector<16x1xf32>
    %cst_210 = arith.constant dense<0.000000e+00> : vector<1xf32>
    %578 = vector.multi_reduction <add>, %577, %cst_210 [0] : vector<16x1xf32> to vector<1xf32>
    %579 = vector.shape_cast %578 : vector<1xf32> to vector<1x1xf32>
    %c1_i32_211 = arith.constant 1 : i32
    %580 = vector.broadcast %c1_i32_211 : i32 to vector<8x128xi32>
    %581 = arith.cmpi eq, %161, %580 : vector<8x128xi32>
    %c23_i32 = arith.constant 23 : i32
    %582 = vector.broadcast %c23_i32 : i32 to vector<8x128xi32>
    %583 = arith.cmpi eq, %162, %582 : vector<8x128xi32>
    %584 = arith.andi %581, %583 : vector<8x128xi1>
    %585 = vector.shape_cast %579 : vector<1x1xf32> to vector<1x1xf32>
    %586 = vector.broadcast %585 : vector<1x1xf32> to vector<8x128xf32>
    %587 = arith.select %584, %586, %570 : vector<8x128xi1>, vector<8x128xf32>
    %cst_212 = arith.constant 0.814285695 : f32
    %588 = vector.broadcast %cst_212 : f32 to vector<16x128xf32>
    %589 = arith.cmpf ole, %147, %588 : vector<16x128xf32>
    %cst_213 = arith.constant 1.000000e+00 : f32
    %cst_214 = arith.constant 0.000000e+00 : f32
    %590 = vector.broadcast %cst_213 : f32 to vector<16x128xf32>
    %591 = vector.broadcast %cst_214 : f32 to vector<16x128xf32>
    %592 = arith.select %589, %590, %591 : vector<16x128xi1>, vector<16x128xf32>
    %cst_215 = arith.constant dense<0.000000e+00> : vector<16xf32>
    %593 = vector.multi_reduction <add>, %592, %cst_215 [1] : vector<16x128xf32> to vector<16xf32>
    %594 = vector.shape_cast %593 : vector<16xf32> to vector<16x1xf32>
    %cst_216 = arith.constant dense<0.000000e+00> : vector<1xf32>
    %595 = vector.multi_reduction <add>, %594, %cst_216 [0] : vector<16x1xf32> to vector<1xf32>
    %596 = vector.shape_cast %595 : vector<1xf32> to vector<1x1xf32>
    %c1_i32_217 = arith.constant 1 : i32
    %597 = vector.broadcast %c1_i32_217 : i32 to vector<8x128xi32>
    %598 = arith.cmpi eq, %161, %597 : vector<8x128xi32>
    %c24_i32 = arith.constant 24 : i32
    %599 = vector.broadcast %c24_i32 : i32 to vector<8x128xi32>
    %600 = arith.cmpi eq, %162, %599 : vector<8x128xi32>
    %601 = arith.andi %598, %600 : vector<8x128xi1>
    %602 = vector.shape_cast %596 : vector<1x1xf32> to vector<1x1xf32>
    %603 = vector.broadcast %602 : vector<1x1xf32> to vector<8x128xf32>
    %604 = arith.select %601, %603, %587 : vector<8x128xi1>, vector<8x128xf32>
    %cst_218 = arith.constant 0.819047629 : f32
    %605 = vector.broadcast %cst_218 : f32 to vector<16x128xf32>
    %606 = arith.cmpf ole, %147, %605 : vector<16x128xf32>
    %cst_219 = arith.constant 1.000000e+00 : f32
    %cst_220 = arith.constant 0.000000e+00 : f32
    %607 = vector.broadcast %cst_219 : f32 to vector<16x128xf32>
    %608 = vector.broadcast %cst_220 : f32 to vector<16x128xf32>
    %609 = arith.select %606, %607, %608 : vector<16x128xi1>, vector<16x128xf32>
    %cst_221 = arith.constant dense<0.000000e+00> : vector<16xf32>
    %610 = vector.multi_reduction <add>, %609, %cst_221 [1] : vector<16x128xf32> to vector<16xf32>
    %611 = vector.shape_cast %610 : vector<16xf32> to vector<16x1xf32>
    %cst_222 = arith.constant dense<0.000000e+00> : vector<1xf32>
    %612 = vector.multi_reduction <add>, %611, %cst_222 [0] : vector<16x1xf32> to vector<1xf32>
    %613 = vector.shape_cast %612 : vector<1xf32> to vector<1x1xf32>
    %c1_i32_223 = arith.constant 1 : i32
    %614 = vector.broadcast %c1_i32_223 : i32 to vector<8x128xi32>
    %615 = arith.cmpi eq, %161, %614 : vector<8x128xi32>
    %c25_i32 = arith.constant 25 : i32
    %616 = vector.broadcast %c25_i32 : i32 to vector<8x128xi32>
    %617 = arith.cmpi eq, %162, %616 : vector<8x128xi32>
    %618 = arith.andi %615, %617 : vector<8x128xi1>
    %619 = vector.shape_cast %613 : vector<1x1xf32> to vector<1x1xf32>
    %620 = vector.broadcast %619 : vector<1x1xf32> to vector<8x128xf32>
    %621 = arith.select %618, %620, %604 : vector<8x128xi1>, vector<8x128xf32>
    %cst_224 = arith.constant 0.823809504 : f32
    %622 = vector.broadcast %cst_224 : f32 to vector<16x128xf32>
    %623 = arith.cmpf ole, %147, %622 : vector<16x128xf32>
    %cst_225 = arith.constant 1.000000e+00 : f32
    %cst_226 = arith.constant 0.000000e+00 : f32
    %624 = vector.broadcast %cst_225 : f32 to vector<16x128xf32>
    %625 = vector.broadcast %cst_226 : f32 to vector<16x128xf32>
    %626 = arith.select %623, %624, %625 : vector<16x128xi1>, vector<16x128xf32>
    %cst_227 = arith.constant dense<0.000000e+00> : vector<16xf32>
    %627 = vector.multi_reduction <add>, %626, %cst_227 [1] : vector<16x128xf32> to vector<16xf32>
    %628 = vector.shape_cast %627 : vector<16xf32> to vector<16x1xf32>
    %cst_228 = arith.constant dense<0.000000e+00> : vector<1xf32>
    %629 = vector.multi_reduction <add>, %628, %cst_228 [0] : vector<16x1xf32> to vector<1xf32>
    %630 = vector.shape_cast %629 : vector<1xf32> to vector<1x1xf32>
    %c1_i32_229 = arith.constant 1 : i32
    %631 = vector.broadcast %c1_i32_229 : i32 to vector<8x128xi32>
    %632 = arith.cmpi eq, %161, %631 : vector<8x128xi32>
    %c26_i32 = arith.constant 26 : i32
    %633 = vector.broadcast %c26_i32 : i32 to vector<8x128xi32>
    %634 = arith.cmpi eq, %162, %633 : vector<8x128xi32>
    %635 = arith.andi %632, %634 : vector<8x128xi1>
    %636 = vector.shape_cast %630 : vector<1x1xf32> to vector<1x1xf32>
    %637 = vector.broadcast %636 : vector<1x1xf32> to vector<8x128xf32>
    %638 = arith.select %635, %637, %621 : vector<8x128xi1>, vector<8x128xf32>
    %cst_230 = arith.constant 0.828571438 : f32
    %639 = vector.broadcast %cst_230 : f32 to vector<16x128xf32>
    %640 = arith.cmpf ole, %147, %639 : vector<16x128xf32>
    %cst_231 = arith.constant 1.000000e+00 : f32
    %cst_232 = arith.constant 0.000000e+00 : f32
    %641 = vector.broadcast %cst_231 : f32 to vector<16x128xf32>
    %642 = vector.broadcast %cst_232 : f32 to vector<16x128xf32>
    %643 = arith.select %640, %641, %642 : vector<16x128xi1>, vector<16x128xf32>
    %cst_233 = arith.constant dense<0.000000e+00> : vector<16xf32>
    %644 = vector.multi_reduction <add>, %643, %cst_233 [1] : vector<16x128xf32> to vector<16xf32>
    %645 = vector.shape_cast %644 : vector<16xf32> to vector<16x1xf32>
    %cst_234 = arith.constant dense<0.000000e+00> : vector<1xf32>
    %646 = vector.multi_reduction <add>, %645, %cst_234 [0] : vector<16x1xf32> to vector<1xf32>
    %647 = vector.shape_cast %646 : vector<1xf32> to vector<1x1xf32>
    %c1_i32_235 = arith.constant 1 : i32
    %648 = vector.broadcast %c1_i32_235 : i32 to vector<8x128xi32>
    %649 = arith.cmpi eq, %161, %648 : vector<8x128xi32>
    %c27_i32 = arith.constant 27 : i32
    %650 = vector.broadcast %c27_i32 : i32 to vector<8x128xi32>
    %651 = arith.cmpi eq, %162, %650 : vector<8x128xi32>
    %652 = arith.andi %649, %651 : vector<8x128xi1>
    %653 = vector.shape_cast %647 : vector<1x1xf32> to vector<1x1xf32>
    %654 = vector.broadcast %653 : vector<1x1xf32> to vector<8x128xf32>
    %655 = arith.select %652, %654, %638 : vector<8x128xi1>, vector<8x128xf32>
    %cst_236 = arith.constant 0.833333313 : f32
    %656 = vector.broadcast %cst_236 : f32 to vector<16x128xf32>
    %657 = arith.cmpf ole, %147, %656 : vector<16x128xf32>
    %cst_237 = arith.constant 1.000000e+00 : f32
    %cst_238 = arith.constant 0.000000e+00 : f32
    %658 = vector.broadcast %cst_237 : f32 to vector<16x128xf32>
    %659 = vector.broadcast %cst_238 : f32 to vector<16x128xf32>
    %660 = arith.select %657, %658, %659 : vector<16x128xi1>, vector<16x128xf32>
    %cst_239 = arith.constant dense<0.000000e+00> : vector<16xf32>
    %661 = vector.multi_reduction <add>, %660, %cst_239 [1] : vector<16x128xf32> to vector<16xf32>
    %662 = vector.shape_cast %661 : vector<16xf32> to vector<16x1xf32>
    %cst_240 = arith.constant dense<0.000000e+00> : vector<1xf32>
    %663 = vector.multi_reduction <add>, %662, %cst_240 [0] : vector<16x1xf32> to vector<1xf32>
    %664 = vector.shape_cast %663 : vector<1xf32> to vector<1x1xf32>
    %c1_i32_241 = arith.constant 1 : i32
    %665 = vector.broadcast %c1_i32_241 : i32 to vector<8x128xi32>
    %666 = arith.cmpi eq, %161, %665 : vector<8x128xi32>
    %c28_i32 = arith.constant 28 : i32
    %667 = vector.broadcast %c28_i32 : i32 to vector<8x128xi32>
    %668 = arith.cmpi eq, %162, %667 : vector<8x128xi32>
    %669 = arith.andi %666, %668 : vector<8x128xi1>
    %670 = vector.shape_cast %664 : vector<1x1xf32> to vector<1x1xf32>
    %671 = vector.broadcast %670 : vector<1x1xf32> to vector<8x128xf32>
    %672 = arith.select %669, %671, %655 : vector<8x128xi1>, vector<8x128xf32>
    %cst_242 = arith.constant 0.838095247 : f32
    %673 = vector.broadcast %cst_242 : f32 to vector<16x128xf32>
    %674 = arith.cmpf ole, %147, %673 : vector<16x128xf32>
    %cst_243 = arith.constant 1.000000e+00 : f32
    %cst_244 = arith.constant 0.000000e+00 : f32
    %675 = vector.broadcast %cst_243 : f32 to vector<16x128xf32>
    %676 = vector.broadcast %cst_244 : f32 to vector<16x128xf32>
    %677 = arith.select %674, %675, %676 : vector<16x128xi1>, vector<16x128xf32>
    %cst_245 = arith.constant dense<0.000000e+00> : vector<16xf32>
    %678 = vector.multi_reduction <add>, %677, %cst_245 [1] : vector<16x128xf32> to vector<16xf32>
    %679 = vector.shape_cast %678 : vector<16xf32> to vector<16x1xf32>
    %cst_246 = arith.constant dense<0.000000e+00> : vector<1xf32>
    %680 = vector.multi_reduction <add>, %679, %cst_246 [0] : vector<16x1xf32> to vector<1xf32>
    %681 = vector.shape_cast %680 : vector<1xf32> to vector<1x1xf32>
    %c1_i32_247 = arith.constant 1 : i32
    %682 = vector.broadcast %c1_i32_247 : i32 to vector<8x128xi32>
    %683 = arith.cmpi eq, %161, %682 : vector<8x128xi32>
    %c29_i32 = arith.constant 29 : i32
    %684 = vector.broadcast %c29_i32 : i32 to vector<8x128xi32>
    %685 = arith.cmpi eq, %162, %684 : vector<8x128xi32>
    %686 = arith.andi %683, %685 : vector<8x128xi1>
    %687 = vector.shape_cast %681 : vector<1x1xf32> to vector<1x1xf32>
    %688 = vector.broadcast %687 : vector<1x1xf32> to vector<8x128xf32>
    %689 = arith.select %686, %688, %672 : vector<8x128xi1>, vector<8x128xf32>
    %cst_248 = arith.constant 0.842857122 : f32
    %690 = vector.broadcast %cst_248 : f32 to vector<16x128xf32>
    %691 = arith.cmpf ole, %147, %690 : vector<16x128xf32>
    %cst_249 = arith.constant 1.000000e+00 : f32
    %cst_250 = arith.constant 0.000000e+00 : f32
    %692 = vector.broadcast %cst_249 : f32 to vector<16x128xf32>
    %693 = vector.broadcast %cst_250 : f32 to vector<16x128xf32>
    %694 = arith.select %691, %692, %693 : vector<16x128xi1>, vector<16x128xf32>
    %cst_251 = arith.constant dense<0.000000e+00> : vector<16xf32>
    %695 = vector.multi_reduction <add>, %694, %cst_251 [1] : vector<16x128xf32> to vector<16xf32>
    %696 = vector.shape_cast %695 : vector<16xf32> to vector<16x1xf32>
    %cst_252 = arith.constant dense<0.000000e+00> : vector<1xf32>
    %697 = vector.multi_reduction <add>, %696, %cst_252 [0] : vector<16x1xf32> to vector<1xf32>
    %698 = vector.shape_cast %697 : vector<1xf32> to vector<1x1xf32>
    %c1_i32_253 = arith.constant 1 : i32
    %699 = vector.broadcast %c1_i32_253 : i32 to vector<8x128xi32>
    %700 = arith.cmpi eq, %161, %699 : vector<8x128xi32>
    %c30_i32 = arith.constant 30 : i32
    %701 = vector.broadcast %c30_i32 : i32 to vector<8x128xi32>
    %702 = arith.cmpi eq, %162, %701 : vector<8x128xi32>
    %703 = arith.andi %700, %702 : vector<8x128xi1>
    %704 = vector.shape_cast %698 : vector<1x1xf32> to vector<1x1xf32>
    %705 = vector.broadcast %704 : vector<1x1xf32> to vector<8x128xf32>
    %706 = arith.select %703, %705, %689 : vector<8x128xi1>, vector<8x128xf32>
    %cst_254 = arith.constant 0.847619056 : f32
    %707 = vector.broadcast %cst_254 : f32 to vector<16x128xf32>
    %708 = arith.cmpf ole, %147, %707 : vector<16x128xf32>
    %cst_255 = arith.constant 1.000000e+00 : f32
    %cst_256 = arith.constant 0.000000e+00 : f32
    %709 = vector.broadcast %cst_255 : f32 to vector<16x128xf32>
    %710 = vector.broadcast %cst_256 : f32 to vector<16x128xf32>
    %711 = arith.select %708, %709, %710 : vector<16x128xi1>, vector<16x128xf32>
    %cst_257 = arith.constant dense<0.000000e+00> : vector<16xf32>
    %712 = vector.multi_reduction <add>, %711, %cst_257 [1] : vector<16x128xf32> to vector<16xf32>
    %713 = vector.shape_cast %712 : vector<16xf32> to vector<16x1xf32>
    %cst_258 = arith.constant dense<0.000000e+00> : vector<1xf32>
    %714 = vector.multi_reduction <add>, %713, %cst_258 [0] : vector<16x1xf32> to vector<1xf32>
    %715 = vector.shape_cast %714 : vector<1xf32> to vector<1x1xf32>
    %c1_i32_259 = arith.constant 1 : i32
    %716 = vector.broadcast %c1_i32_259 : i32 to vector<8x128xi32>
    %717 = arith.cmpi eq, %161, %716 : vector<8x128xi32>
    %c31_i32 = arith.constant 31 : i32
    %718 = vector.broadcast %c31_i32 : i32 to vector<8x128xi32>
    %719 = arith.cmpi eq, %162, %718 : vector<8x128xi32>
    %720 = arith.andi %717, %719 : vector<8x128xi1>
    %721 = vector.shape_cast %715 : vector<1x1xf32> to vector<1x1xf32>
    %722 = vector.broadcast %721 : vector<1x1xf32> to vector<8x128xf32>
    %723 = arith.select %720, %722, %706 : vector<8x128xi1>, vector<8x128xf32>
    %cst_260 = arith.constant 0.852380931 : f32
    %724 = vector.broadcast %cst_260 : f32 to vector<16x128xf32>
    %725 = arith.cmpf ole, %147, %724 : vector<16x128xf32>
    %cst_261 = arith.constant 1.000000e+00 : f32
    %cst_262 = arith.constant 0.000000e+00 : f32
    %726 = vector.broadcast %cst_261 : f32 to vector<16x128xf32>
    %727 = vector.broadcast %cst_262 : f32 to vector<16x128xf32>
    %728 = arith.select %725, %726, %727 : vector<16x128xi1>, vector<16x128xf32>
    %cst_263 = arith.constant dense<0.000000e+00> : vector<16xf32>
    %729 = vector.multi_reduction <add>, %728, %cst_263 [1] : vector<16x128xf32> to vector<16xf32>
    %730 = vector.shape_cast %729 : vector<16xf32> to vector<16x1xf32>
    %cst_264 = arith.constant dense<0.000000e+00> : vector<1xf32>
    %731 = vector.multi_reduction <add>, %730, %cst_264 [0] : vector<16x1xf32> to vector<1xf32>
    %732 = vector.shape_cast %731 : vector<1xf32> to vector<1x1xf32>
    %c1_i32_265 = arith.constant 1 : i32
    %733 = vector.broadcast %c1_i32_265 : i32 to vector<8x128xi32>
    %734 = arith.cmpi eq, %161, %733 : vector<8x128xi32>
    %c32_i32 = arith.constant 32 : i32
    %735 = vector.broadcast %c32_i32 : i32 to vector<8x128xi32>
    %736 = arith.cmpi eq, %162, %735 : vector<8x128xi32>
    %737 = arith.andi %734, %736 : vector<8x128xi1>
    %738 = vector.shape_cast %732 : vector<1x1xf32> to vector<1x1xf32>
    %739 = vector.broadcast %738 : vector<1x1xf32> to vector<8x128xf32>
    %740 = arith.select %737, %739, %723 : vector<8x128xi1>, vector<8x128xf32>
    %cst_266 = arith.constant 0.857142865 : f32
    %741 = vector.broadcast %cst_266 : f32 to vector<16x128xf32>
    %742 = arith.cmpf ole, %147, %741 : vector<16x128xf32>
    %cst_267 = arith.constant 1.000000e+00 : f32
    %cst_268 = arith.constant 0.000000e+00 : f32
    %743 = vector.broadcast %cst_267 : f32 to vector<16x128xf32>
    %744 = vector.broadcast %cst_268 : f32 to vector<16x128xf32>
    %745 = arith.select %742, %743, %744 : vector<16x128xi1>, vector<16x128xf32>
    %cst_269 = arith.constant dense<0.000000e+00> : vector<16xf32>
    %746 = vector.multi_reduction <add>, %745, %cst_269 [1] : vector<16x128xf32> to vector<16xf32>
    %747 = vector.shape_cast %746 : vector<16xf32> to vector<16x1xf32>
    %cst_270 = arith.constant dense<0.000000e+00> : vector<1xf32>
    %748 = vector.multi_reduction <add>, %747, %cst_270 [0] : vector<16x1xf32> to vector<1xf32>
    %749 = vector.shape_cast %748 : vector<1xf32> to vector<1x1xf32>
    %c1_i32_271 = arith.constant 1 : i32
    %750 = vector.broadcast %c1_i32_271 : i32 to vector<8x128xi32>
    %751 = arith.cmpi eq, %161, %750 : vector<8x128xi32>
    %c33_i32 = arith.constant 33 : i32
    %752 = vector.broadcast %c33_i32 : i32 to vector<8x128xi32>
    %753 = arith.cmpi eq, %162, %752 : vector<8x128xi32>
    %754 = arith.andi %751, %753 : vector<8x128xi1>
    %755 = vector.shape_cast %749 : vector<1x1xf32> to vector<1x1xf32>
    %756 = vector.broadcast %755 : vector<1x1xf32> to vector<8x128xf32>
    %757 = arith.select %754, %756, %740 : vector<8x128xi1>, vector<8x128xf32>
    %cst_272 = arith.constant 0.86190474 : f32
    %758 = vector.broadcast %cst_272 : f32 to vector<16x128xf32>
    %759 = arith.cmpf ole, %147, %758 : vector<16x128xf32>
    %cst_273 = arith.constant 1.000000e+00 : f32
    %cst_274 = arith.constant 0.000000e+00 : f32
    %760 = vector.broadcast %cst_273 : f32 to vector<16x128xf32>
    %761 = vector.broadcast %cst_274 : f32 to vector<16x128xf32>
    %762 = arith.select %759, %760, %761 : vector<16x128xi1>, vector<16x128xf32>
    %cst_275 = arith.constant dense<0.000000e+00> : vector<16xf32>
    %763 = vector.multi_reduction <add>, %762, %cst_275 [1] : vector<16x128xf32> to vector<16xf32>
    %764 = vector.shape_cast %763 : vector<16xf32> to vector<16x1xf32>
    %cst_276 = arith.constant dense<0.000000e+00> : vector<1xf32>
    %765 = vector.multi_reduction <add>, %764, %cst_276 [0] : vector<16x1xf32> to vector<1xf32>
    %766 = vector.shape_cast %765 : vector<1xf32> to vector<1x1xf32>
    %c1_i32_277 = arith.constant 1 : i32
    %767 = vector.broadcast %c1_i32_277 : i32 to vector<8x128xi32>
    %768 = arith.cmpi eq, %161, %767 : vector<8x128xi32>
    %c34_i32 = arith.constant 34 : i32
    %769 = vector.broadcast %c34_i32 : i32 to vector<8x128xi32>
    %770 = arith.cmpi eq, %162, %769 : vector<8x128xi32>
    %771 = arith.andi %768, %770 : vector<8x128xi1>
    %772 = vector.shape_cast %766 : vector<1x1xf32> to vector<1x1xf32>
    %773 = vector.broadcast %772 : vector<1x1xf32> to vector<8x128xf32>
    %774 = arith.select %771, %773, %757 : vector<8x128xi1>, vector<8x128xf32>
    %cst_278 = arith.constant 0.866666674 : f32
    %775 = vector.broadcast %cst_278 : f32 to vector<16x128xf32>
    %776 = arith.cmpf ole, %147, %775 : vector<16x128xf32>
    %cst_279 = arith.constant 1.000000e+00 : f32
    %cst_280 = arith.constant 0.000000e+00 : f32
    %777 = vector.broadcast %cst_279 : f32 to vector<16x128xf32>
    %778 = vector.broadcast %cst_280 : f32 to vector<16x128xf32>
    %779 = arith.select %776, %777, %778 : vector<16x128xi1>, vector<16x128xf32>
    %cst_281 = arith.constant dense<0.000000e+00> : vector<16xf32>
    %780 = vector.multi_reduction <add>, %779, %cst_281 [1] : vector<16x128xf32> to vector<16xf32>
    %781 = vector.shape_cast %780 : vector<16xf32> to vector<16x1xf32>
    %cst_282 = arith.constant dense<0.000000e+00> : vector<1xf32>
    %782 = vector.multi_reduction <add>, %781, %cst_282 [0] : vector<16x1xf32> to vector<1xf32>
    %783 = vector.shape_cast %782 : vector<1xf32> to vector<1x1xf32>
    %c1_i32_283 = arith.constant 1 : i32
    %784 = vector.broadcast %c1_i32_283 : i32 to vector<8x128xi32>
    %785 = arith.cmpi eq, %161, %784 : vector<8x128xi32>
    %c35_i32 = arith.constant 35 : i32
    %786 = vector.broadcast %c35_i32 : i32 to vector<8x128xi32>
    %787 = arith.cmpi eq, %162, %786 : vector<8x128xi32>
    %788 = arith.andi %785, %787 : vector<8x128xi1>
    %789 = vector.shape_cast %783 : vector<1x1xf32> to vector<1x1xf32>
    %790 = vector.broadcast %789 : vector<1x1xf32> to vector<8x128xf32>
    %791 = arith.select %788, %790, %774 : vector<8x128xi1>, vector<8x128xf32>
    %cst_284 = arith.constant 0.871428549 : f32
    %792 = vector.broadcast %cst_284 : f32 to vector<16x128xf32>
    %793 = arith.cmpf ole, %147, %792 : vector<16x128xf32>
    %cst_285 = arith.constant 1.000000e+00 : f32
    %cst_286 = arith.constant 0.000000e+00 : f32
    %794 = vector.broadcast %cst_285 : f32 to vector<16x128xf32>
    %795 = vector.broadcast %cst_286 : f32 to vector<16x128xf32>
    %796 = arith.select %793, %794, %795 : vector<16x128xi1>, vector<16x128xf32>
    %cst_287 = arith.constant dense<0.000000e+00> : vector<16xf32>
    %797 = vector.multi_reduction <add>, %796, %cst_287 [1] : vector<16x128xf32> to vector<16xf32>
    %798 = vector.shape_cast %797 : vector<16xf32> to vector<16x1xf32>
    %cst_288 = arith.constant dense<0.000000e+00> : vector<1xf32>
    %799 = vector.multi_reduction <add>, %798, %cst_288 [0] : vector<16x1xf32> to vector<1xf32>
    %800 = vector.shape_cast %799 : vector<1xf32> to vector<1x1xf32>
    %c1_i32_289 = arith.constant 1 : i32
    %801 = vector.broadcast %c1_i32_289 : i32 to vector<8x128xi32>
    %802 = arith.cmpi eq, %161, %801 : vector<8x128xi32>
    %c36_i32 = arith.constant 36 : i32
    %803 = vector.broadcast %c36_i32 : i32 to vector<8x128xi32>
    %804 = arith.cmpi eq, %162, %803 : vector<8x128xi32>
    %805 = arith.andi %802, %804 : vector<8x128xi1>
    %806 = vector.shape_cast %800 : vector<1x1xf32> to vector<1x1xf32>
    %807 = vector.broadcast %806 : vector<1x1xf32> to vector<8x128xf32>
    %808 = arith.select %805, %807, %791 : vector<8x128xi1>, vector<8x128xf32>
    %cst_290 = arith.constant 0.876190483 : f32
    %809 = vector.broadcast %cst_290 : f32 to vector<16x128xf32>
    %810 = arith.cmpf ole, %147, %809 : vector<16x128xf32>
    %cst_291 = arith.constant 1.000000e+00 : f32
    %cst_292 = arith.constant 0.000000e+00 : f32
    %811 = vector.broadcast %cst_291 : f32 to vector<16x128xf32>
    %812 = vector.broadcast %cst_292 : f32 to vector<16x128xf32>
    %813 = arith.select %810, %811, %812 : vector<16x128xi1>, vector<16x128xf32>
    %cst_293 = arith.constant dense<0.000000e+00> : vector<16xf32>
    %814 = vector.multi_reduction <add>, %813, %cst_293 [1] : vector<16x128xf32> to vector<16xf32>
    %815 = vector.shape_cast %814 : vector<16xf32> to vector<16x1xf32>
    %cst_294 = arith.constant dense<0.000000e+00> : vector<1xf32>
    %816 = vector.multi_reduction <add>, %815, %cst_294 [0] : vector<16x1xf32> to vector<1xf32>
    %817 = vector.shape_cast %816 : vector<1xf32> to vector<1x1xf32>
    %c1_i32_295 = arith.constant 1 : i32
    %818 = vector.broadcast %c1_i32_295 : i32 to vector<8x128xi32>
    %819 = arith.cmpi eq, %161, %818 : vector<8x128xi32>
    %c37_i32 = arith.constant 37 : i32
    %820 = vector.broadcast %c37_i32 : i32 to vector<8x128xi32>
    %821 = arith.cmpi eq, %162, %820 : vector<8x128xi32>
    %822 = arith.andi %819, %821 : vector<8x128xi1>
    %823 = vector.shape_cast %817 : vector<1x1xf32> to vector<1x1xf32>
    %824 = vector.broadcast %823 : vector<1x1xf32> to vector<8x128xf32>
    %825 = arith.select %822, %824, %808 : vector<8x128xi1>, vector<8x128xf32>
    %cst_296 = arith.constant 0.880952358 : f32
    %826 = vector.broadcast %cst_296 : f32 to vector<16x128xf32>
    %827 = arith.cmpf ole, %147, %826 : vector<16x128xf32>
    %cst_297 = arith.constant 1.000000e+00 : f32
    %cst_298 = arith.constant 0.000000e+00 : f32
    %828 = vector.broadcast %cst_297 : f32 to vector<16x128xf32>
    %829 = vector.broadcast %cst_298 : f32 to vector<16x128xf32>
    %830 = arith.select %827, %828, %829 : vector<16x128xi1>, vector<16x128xf32>
    %cst_299 = arith.constant dense<0.000000e+00> : vector<16xf32>
    %831 = vector.multi_reduction <add>, %830, %cst_299 [1] : vector<16x128xf32> to vector<16xf32>
    %832 = vector.shape_cast %831 : vector<16xf32> to vector<16x1xf32>
    %cst_300 = arith.constant dense<0.000000e+00> : vector<1xf32>
    %833 = vector.multi_reduction <add>, %832, %cst_300 [0] : vector<16x1xf32> to vector<1xf32>
    %834 = vector.shape_cast %833 : vector<1xf32> to vector<1x1xf32>
    %c1_i32_301 = arith.constant 1 : i32
    %835 = vector.broadcast %c1_i32_301 : i32 to vector<8x128xi32>
    %836 = arith.cmpi eq, %161, %835 : vector<8x128xi32>
    %c38_i32 = arith.constant 38 : i32
    %837 = vector.broadcast %c38_i32 : i32 to vector<8x128xi32>
    %838 = arith.cmpi eq, %162, %837 : vector<8x128xi32>
    %839 = arith.andi %836, %838 : vector<8x128xi1>
    %840 = vector.shape_cast %834 : vector<1x1xf32> to vector<1x1xf32>
    %841 = vector.broadcast %840 : vector<1x1xf32> to vector<8x128xf32>
    %842 = arith.select %839, %841, %825 : vector<8x128xi1>, vector<8x128xf32>
    %cst_302 = arith.constant 0.885714293 : f32
    %843 = vector.broadcast %cst_302 : f32 to vector<16x128xf32>
    %844 = arith.cmpf ole, %147, %843 : vector<16x128xf32>
    %cst_303 = arith.constant 1.000000e+00 : f32
    %cst_304 = arith.constant 0.000000e+00 : f32
    %845 = vector.broadcast %cst_303 : f32 to vector<16x128xf32>
    %846 = vector.broadcast %cst_304 : f32 to vector<16x128xf32>
    %847 = arith.select %844, %845, %846 : vector<16x128xi1>, vector<16x128xf32>
    %cst_305 = arith.constant dense<0.000000e+00> : vector<16xf32>
    %848 = vector.multi_reduction <add>, %847, %cst_305 [1] : vector<16x128xf32> to vector<16xf32>
    %849 = vector.shape_cast %848 : vector<16xf32> to vector<16x1xf32>
    %cst_306 = arith.constant dense<0.000000e+00> : vector<1xf32>
    %850 = vector.multi_reduction <add>, %849, %cst_306 [0] : vector<16x1xf32> to vector<1xf32>
    %851 = vector.shape_cast %850 : vector<1xf32> to vector<1x1xf32>
    %c1_i32_307 = arith.constant 1 : i32
    %852 = vector.broadcast %c1_i32_307 : i32 to vector<8x128xi32>
    %853 = arith.cmpi eq, %161, %852 : vector<8x128xi32>
    %c39_i32 = arith.constant 39 : i32
    %854 = vector.broadcast %c39_i32 : i32 to vector<8x128xi32>
    %855 = arith.cmpi eq, %162, %854 : vector<8x128xi32>
    %856 = arith.andi %853, %855 : vector<8x128xi1>
    %857 = vector.shape_cast %851 : vector<1x1xf32> to vector<1x1xf32>
    %858 = vector.broadcast %857 : vector<1x1xf32> to vector<8x128xf32>
    %859 = arith.select %856, %858, %842 : vector<8x128xi1>, vector<8x128xf32>
    %cst_308 = arith.constant 0.890476167 : f32
    %860 = vector.broadcast %cst_308 : f32 to vector<16x128xf32>
    %861 = arith.cmpf ole, %147, %860 : vector<16x128xf32>
    %cst_309 = arith.constant 1.000000e+00 : f32
    %cst_310 = arith.constant 0.000000e+00 : f32
    %862 = vector.broadcast %cst_309 : f32 to vector<16x128xf32>
    %863 = vector.broadcast %cst_310 : f32 to vector<16x128xf32>
    %864 = arith.select %861, %862, %863 : vector<16x128xi1>, vector<16x128xf32>
    %cst_311 = arith.constant dense<0.000000e+00> : vector<16xf32>
    %865 = vector.multi_reduction <add>, %864, %cst_311 [1] : vector<16x128xf32> to vector<16xf32>
    %866 = vector.shape_cast %865 : vector<16xf32> to vector<16x1xf32>
    %cst_312 = arith.constant dense<0.000000e+00> : vector<1xf32>
    %867 = vector.multi_reduction <add>, %866, %cst_312 [0] : vector<16x1xf32> to vector<1xf32>
    %868 = vector.shape_cast %867 : vector<1xf32> to vector<1x1xf32>
    %c1_i32_313 = arith.constant 1 : i32
    %869 = vector.broadcast %c1_i32_313 : i32 to vector<8x128xi32>
    %870 = arith.cmpi eq, %161, %869 : vector<8x128xi32>
    %c40_i32 = arith.constant 40 : i32
    %871 = vector.broadcast %c40_i32 : i32 to vector<8x128xi32>
    %872 = arith.cmpi eq, %162, %871 : vector<8x128xi32>
    %873 = arith.andi %870, %872 : vector<8x128xi1>
    %874 = vector.shape_cast %868 : vector<1x1xf32> to vector<1x1xf32>
    %875 = vector.broadcast %874 : vector<1x1xf32> to vector<8x128xf32>
    %876 = arith.select %873, %875, %859 : vector<8x128xi1>, vector<8x128xf32>
    %cst_314 = arith.constant 0.895238101 : f32
    %877 = vector.broadcast %cst_314 : f32 to vector<16x128xf32>
    %878 = arith.cmpf ole, %147, %877 : vector<16x128xf32>
    %cst_315 = arith.constant 1.000000e+00 : f32
    %cst_316 = arith.constant 0.000000e+00 : f32
    %879 = vector.broadcast %cst_315 : f32 to vector<16x128xf32>
    %880 = vector.broadcast %cst_316 : f32 to vector<16x128xf32>
    %881 = arith.select %878, %879, %880 : vector<16x128xi1>, vector<16x128xf32>
    %cst_317 = arith.constant dense<0.000000e+00> : vector<16xf32>
    %882 = vector.multi_reduction <add>, %881, %cst_317 [1] : vector<16x128xf32> to vector<16xf32>
    %883 = vector.shape_cast %882 : vector<16xf32> to vector<16x1xf32>
    %cst_318 = arith.constant dense<0.000000e+00> : vector<1xf32>
    %884 = vector.multi_reduction <add>, %883, %cst_318 [0] : vector<16x1xf32> to vector<1xf32>
    %885 = vector.shape_cast %884 : vector<1xf32> to vector<1x1xf32>
    %c1_i32_319 = arith.constant 1 : i32
    %886 = vector.broadcast %c1_i32_319 : i32 to vector<8x128xi32>
    %887 = arith.cmpi eq, %161, %886 : vector<8x128xi32>
    %c41_i32 = arith.constant 41 : i32
    %888 = vector.broadcast %c41_i32 : i32 to vector<8x128xi32>
    %889 = arith.cmpi eq, %162, %888 : vector<8x128xi32>
    %890 = arith.andi %887, %889 : vector<8x128xi1>
    %891 = vector.shape_cast %885 : vector<1x1xf32> to vector<1x1xf32>
    %892 = vector.broadcast %891 : vector<1x1xf32> to vector<8x128xf32>
    %893 = arith.select %890, %892, %876 : vector<8x128xi1>, vector<8x128xf32>
    %cst_320 = arith.constant 0.899999976 : f32
    %894 = vector.broadcast %cst_320 : f32 to vector<16x128xf32>
    %895 = arith.cmpf ole, %147, %894 : vector<16x128xf32>
    %cst_321 = arith.constant 1.000000e+00 : f32
    %cst_322 = arith.constant 0.000000e+00 : f32
    %896 = vector.broadcast %cst_321 : f32 to vector<16x128xf32>
    %897 = vector.broadcast %cst_322 : f32 to vector<16x128xf32>
    %898 = arith.select %895, %896, %897 : vector<16x128xi1>, vector<16x128xf32>
    %cst_323 = arith.constant dense<0.000000e+00> : vector<16xf32>
    %899 = vector.multi_reduction <add>, %898, %cst_323 [1] : vector<16x128xf32> to vector<16xf32>
    %900 = vector.shape_cast %899 : vector<16xf32> to vector<16x1xf32>
    %cst_324 = arith.constant dense<0.000000e+00> : vector<1xf32>
    %901 = vector.multi_reduction <add>, %900, %cst_324 [0] : vector<16x1xf32> to vector<1xf32>
    %902 = vector.shape_cast %901 : vector<1xf32> to vector<1x1xf32>
    %c1_i32_325 = arith.constant 1 : i32
    %903 = vector.broadcast %c1_i32_325 : i32 to vector<8x128xi32>
    %904 = arith.cmpi eq, %161, %903 : vector<8x128xi32>
    %c42_i32 = arith.constant 42 : i32
    %905 = vector.broadcast %c42_i32 : i32 to vector<8x128xi32>
    %906 = arith.cmpi eq, %162, %905 : vector<8x128xi32>
    %907 = arith.andi %904, %906 : vector<8x128xi1>
    %908 = vector.shape_cast %902 : vector<1x1xf32> to vector<1x1xf32>
    %909 = vector.broadcast %908 : vector<1x1xf32> to vector<8x128xf32>
    %910 = arith.select %907, %909, %893 : vector<8x128xi1>, vector<8x128xf32>
    %cst_326 = arith.constant 0.90476191 : f32
    %911 = vector.broadcast %cst_326 : f32 to vector<16x128xf32>
    %912 = arith.cmpf ole, %147, %911 : vector<16x128xf32>
    %cst_327 = arith.constant 1.000000e+00 : f32
    %cst_328 = arith.constant 0.000000e+00 : f32
    %913 = vector.broadcast %cst_327 : f32 to vector<16x128xf32>
    %914 = vector.broadcast %cst_328 : f32 to vector<16x128xf32>
    %915 = arith.select %912, %913, %914 : vector<16x128xi1>, vector<16x128xf32>
    %cst_329 = arith.constant dense<0.000000e+00> : vector<16xf32>
    %916 = vector.multi_reduction <add>, %915, %cst_329 [1] : vector<16x128xf32> to vector<16xf32>
    %917 = vector.shape_cast %916 : vector<16xf32> to vector<16x1xf32>
    %cst_330 = arith.constant dense<0.000000e+00> : vector<1xf32>
    %918 = vector.multi_reduction <add>, %917, %cst_330 [0] : vector<16x1xf32> to vector<1xf32>
    %919 = vector.shape_cast %918 : vector<1xf32> to vector<1x1xf32>
    %c1_i32_331 = arith.constant 1 : i32
    %920 = vector.broadcast %c1_i32_331 : i32 to vector<8x128xi32>
    %921 = arith.cmpi eq, %161, %920 : vector<8x128xi32>
    %c43_i32 = arith.constant 43 : i32
    %922 = vector.broadcast %c43_i32 : i32 to vector<8x128xi32>
    %923 = arith.cmpi eq, %162, %922 : vector<8x128xi32>
    %924 = arith.andi %921, %923 : vector<8x128xi1>
    %925 = vector.shape_cast %919 : vector<1x1xf32> to vector<1x1xf32>
    %926 = vector.broadcast %925 : vector<1x1xf32> to vector<8x128xf32>
    %927 = arith.select %924, %926, %910 : vector<8x128xi1>, vector<8x128xf32>
    %cst_332 = arith.constant 0.909523785 : f32
    %928 = vector.broadcast %cst_332 : f32 to vector<16x128xf32>
    %929 = arith.cmpf ole, %147, %928 : vector<16x128xf32>
    %cst_333 = arith.constant 1.000000e+00 : f32
    %cst_334 = arith.constant 0.000000e+00 : f32
    %930 = vector.broadcast %cst_333 : f32 to vector<16x128xf32>
    %931 = vector.broadcast %cst_334 : f32 to vector<16x128xf32>
    %932 = arith.select %929, %930, %931 : vector<16x128xi1>, vector<16x128xf32>
    %cst_335 = arith.constant dense<0.000000e+00> : vector<16xf32>
    %933 = vector.multi_reduction <add>, %932, %cst_335 [1] : vector<16x128xf32> to vector<16xf32>
    %934 = vector.shape_cast %933 : vector<16xf32> to vector<16x1xf32>
    %cst_336 = arith.constant dense<0.000000e+00> : vector<1xf32>
    %935 = vector.multi_reduction <add>, %934, %cst_336 [0] : vector<16x1xf32> to vector<1xf32>
    %936 = vector.shape_cast %935 : vector<1xf32> to vector<1x1xf32>
    %c1_i32_337 = arith.constant 1 : i32
    %937 = vector.broadcast %c1_i32_337 : i32 to vector<8x128xi32>
    %938 = arith.cmpi eq, %161, %937 : vector<8x128xi32>
    %c44_i32 = arith.constant 44 : i32
    %939 = vector.broadcast %c44_i32 : i32 to vector<8x128xi32>
    %940 = arith.cmpi eq, %162, %939 : vector<8x128xi32>
    %941 = arith.andi %938, %940 : vector<8x128xi1>
    %942 = vector.shape_cast %936 : vector<1x1xf32> to vector<1x1xf32>
    %943 = vector.broadcast %942 : vector<1x1xf32> to vector<8x128xf32>
    %944 = arith.select %941, %943, %927 : vector<8x128xi1>, vector<8x128xf32>
    %cst_338 = arith.constant 0.914285719 : f32
    %945 = vector.broadcast %cst_338 : f32 to vector<16x128xf32>
    %946 = arith.cmpf ole, %147, %945 : vector<16x128xf32>
    %cst_339 = arith.constant 1.000000e+00 : f32
    %cst_340 = arith.constant 0.000000e+00 : f32
    %947 = vector.broadcast %cst_339 : f32 to vector<16x128xf32>
    %948 = vector.broadcast %cst_340 : f32 to vector<16x128xf32>
    %949 = arith.select %946, %947, %948 : vector<16x128xi1>, vector<16x128xf32>
    %cst_341 = arith.constant dense<0.000000e+00> : vector<16xf32>
    %950 = vector.multi_reduction <add>, %949, %cst_341 [1] : vector<16x128xf32> to vector<16xf32>
    %951 = vector.shape_cast %950 : vector<16xf32> to vector<16x1xf32>
    %cst_342 = arith.constant dense<0.000000e+00> : vector<1xf32>
    %952 = vector.multi_reduction <add>, %951, %cst_342 [0] : vector<16x1xf32> to vector<1xf32>
    %953 = vector.shape_cast %952 : vector<1xf32> to vector<1x1xf32>
    %c1_i32_343 = arith.constant 1 : i32
    %954 = vector.broadcast %c1_i32_343 : i32 to vector<8x128xi32>
    %955 = arith.cmpi eq, %161, %954 : vector<8x128xi32>
    %c45_i32 = arith.constant 45 : i32
    %956 = vector.broadcast %c45_i32 : i32 to vector<8x128xi32>
    %957 = arith.cmpi eq, %162, %956 : vector<8x128xi32>
    %958 = arith.andi %955, %957 : vector<8x128xi1>
    %959 = vector.shape_cast %953 : vector<1x1xf32> to vector<1x1xf32>
    %960 = vector.broadcast %959 : vector<1x1xf32> to vector<8x128xf32>
    %961 = arith.select %958, %960, %944 : vector<8x128xi1>, vector<8x128xf32>
    %cst_344 = arith.constant 0.919047594 : f32
    %962 = vector.broadcast %cst_344 : f32 to vector<16x128xf32>
    %963 = arith.cmpf ole, %147, %962 : vector<16x128xf32>
    %cst_345 = arith.constant 1.000000e+00 : f32
    %cst_346 = arith.constant 0.000000e+00 : f32
    %964 = vector.broadcast %cst_345 : f32 to vector<16x128xf32>
    %965 = vector.broadcast %cst_346 : f32 to vector<16x128xf32>
    %966 = arith.select %963, %964, %965 : vector<16x128xi1>, vector<16x128xf32>
    %cst_347 = arith.constant dense<0.000000e+00> : vector<16xf32>
    %967 = vector.multi_reduction <add>, %966, %cst_347 [1] : vector<16x128xf32> to vector<16xf32>
    %968 = vector.shape_cast %967 : vector<16xf32> to vector<16x1xf32>
    %cst_348 = arith.constant dense<0.000000e+00> : vector<1xf32>
    %969 = vector.multi_reduction <add>, %968, %cst_348 [0] : vector<16x1xf32> to vector<1xf32>
    %970 = vector.shape_cast %969 : vector<1xf32> to vector<1x1xf32>
    %c1_i32_349 = arith.constant 1 : i32
    %971 = vector.broadcast %c1_i32_349 : i32 to vector<8x128xi32>
    %972 = arith.cmpi eq, %161, %971 : vector<8x128xi32>
    %c46_i32 = arith.constant 46 : i32
    %973 = vector.broadcast %c46_i32 : i32 to vector<8x128xi32>
    %974 = arith.cmpi eq, %162, %973 : vector<8x128xi32>
    %975 = arith.andi %972, %974 : vector<8x128xi1>
    %976 = vector.shape_cast %970 : vector<1x1xf32> to vector<1x1xf32>
    %977 = vector.broadcast %976 : vector<1x1xf32> to vector<8x128xf32>
    %978 = arith.select %975, %977, %961 : vector<8x128xi1>, vector<8x128xf32>
    %cst_350 = arith.constant 0.923809528 : f32
    %979 = vector.broadcast %cst_350 : f32 to vector<16x128xf32>
    %980 = arith.cmpf ole, %147, %979 : vector<16x128xf32>
    %cst_351 = arith.constant 1.000000e+00 : f32
    %cst_352 = arith.constant 0.000000e+00 : f32
    %981 = vector.broadcast %cst_351 : f32 to vector<16x128xf32>
    %982 = vector.broadcast %cst_352 : f32 to vector<16x128xf32>
    %983 = arith.select %980, %981, %982 : vector<16x128xi1>, vector<16x128xf32>
    %cst_353 = arith.constant dense<0.000000e+00> : vector<16xf32>
    %984 = vector.multi_reduction <add>, %983, %cst_353 [1] : vector<16x128xf32> to vector<16xf32>
    %985 = vector.shape_cast %984 : vector<16xf32> to vector<16x1xf32>
    %cst_354 = arith.constant dense<0.000000e+00> : vector<1xf32>
    %986 = vector.multi_reduction <add>, %985, %cst_354 [0] : vector<16x1xf32> to vector<1xf32>
    %987 = vector.shape_cast %986 : vector<1xf32> to vector<1x1xf32>
    %c1_i32_355 = arith.constant 1 : i32
    %988 = vector.broadcast %c1_i32_355 : i32 to vector<8x128xi32>
    %989 = arith.cmpi eq, %161, %988 : vector<8x128xi32>
    %c47_i32 = arith.constant 47 : i32
    %990 = vector.broadcast %c47_i32 : i32 to vector<8x128xi32>
    %991 = arith.cmpi eq, %162, %990 : vector<8x128xi32>
    %992 = arith.andi %989, %991 : vector<8x128xi1>
    %993 = vector.shape_cast %987 : vector<1x1xf32> to vector<1x1xf32>
    %994 = vector.broadcast %993 : vector<1x1xf32> to vector<8x128xf32>
    %995 = arith.select %992, %994, %978 : vector<8x128xi1>, vector<8x128xf32>
    %cst_356 = arith.constant 0.928571403 : f32
    %996 = vector.broadcast %cst_356 : f32 to vector<16x128xf32>
    %997 = arith.cmpf ole, %147, %996 : vector<16x128xf32>
    %cst_357 = arith.constant 1.000000e+00 : f32
    %cst_358 = arith.constant 0.000000e+00 : f32
    %998 = vector.broadcast %cst_357 : f32 to vector<16x128xf32>
    %999 = vector.broadcast %cst_358 : f32 to vector<16x128xf32>
    %1000 = arith.select %997, %998, %999 : vector<16x128xi1>, vector<16x128xf32>
    %cst_359 = arith.constant dense<0.000000e+00> : vector<16xf32>
    %1001 = vector.multi_reduction <add>, %1000, %cst_359 [1] : vector<16x128xf32> to vector<16xf32>
    %1002 = vector.shape_cast %1001 : vector<16xf32> to vector<16x1xf32>
    %cst_360 = arith.constant dense<0.000000e+00> : vector<1xf32>
    %1003 = vector.multi_reduction <add>, %1002, %cst_360 [0] : vector<16x1xf32> to vector<1xf32>
    %1004 = vector.shape_cast %1003 : vector<1xf32> to vector<1x1xf32>
    %c1_i32_361 = arith.constant 1 : i32
    %1005 = vector.broadcast %c1_i32_361 : i32 to vector<8x128xi32>
    %1006 = arith.cmpi eq, %161, %1005 : vector<8x128xi32>
    %c48_i32 = arith.constant 48 : i32
    %1007 = vector.broadcast %c48_i32 : i32 to vector<8x128xi32>
    %1008 = arith.cmpi eq, %162, %1007 : vector<8x128xi32>
    %1009 = arith.andi %1006, %1008 : vector<8x128xi1>
    %1010 = vector.shape_cast %1004 : vector<1x1xf32> to vector<1x1xf32>
    %1011 = vector.broadcast %1010 : vector<1x1xf32> to vector<8x128xf32>
    %1012 = arith.select %1009, %1011, %995 : vector<8x128xi1>, vector<8x128xf32>
    %cst_362 = arith.constant 0.933333337 : f32
    %1013 = vector.broadcast %cst_362 : f32 to vector<16x128xf32>
    %1014 = arith.cmpf ole, %147, %1013 : vector<16x128xf32>
    %cst_363 = arith.constant 1.000000e+00 : f32
    %cst_364 = arith.constant 0.000000e+00 : f32
    %1015 = vector.broadcast %cst_363 : f32 to vector<16x128xf32>
    %1016 = vector.broadcast %cst_364 : f32 to vector<16x128xf32>
    %1017 = arith.select %1014, %1015, %1016 : vector<16x128xi1>, vector<16x128xf32>
    %cst_365 = arith.constant dense<0.000000e+00> : vector<16xf32>
    %1018 = vector.multi_reduction <add>, %1017, %cst_365 [1] : vector<16x128xf32> to vector<16xf32>
    %1019 = vector.shape_cast %1018 : vector<16xf32> to vector<16x1xf32>
    %cst_366 = arith.constant dense<0.000000e+00> : vector<1xf32>
    %1020 = vector.multi_reduction <add>, %1019, %cst_366 [0] : vector<16x1xf32> to vector<1xf32>
    %1021 = vector.shape_cast %1020 : vector<1xf32> to vector<1x1xf32>
    %c1_i32_367 = arith.constant 1 : i32
    %1022 = vector.broadcast %c1_i32_367 : i32 to vector<8x128xi32>
    %1023 = arith.cmpi eq, %161, %1022 : vector<8x128xi32>
    %c49_i32 = arith.constant 49 : i32
    %1024 = vector.broadcast %c49_i32 : i32 to vector<8x128xi32>
    %1025 = arith.cmpi eq, %162, %1024 : vector<8x128xi32>
    %1026 = arith.andi %1023, %1025 : vector<8x128xi1>
    %1027 = vector.shape_cast %1021 : vector<1x1xf32> to vector<1x1xf32>
    %1028 = vector.broadcast %1027 : vector<1x1xf32> to vector<8x128xf32>
    %1029 = arith.select %1026, %1028, %1012 : vector<8x128xi1>, vector<8x128xf32>
    %cst_368 = arith.constant 0.938095211 : f32
    %1030 = vector.broadcast %cst_368 : f32 to vector<16x128xf32>
    %1031 = arith.cmpf ole, %147, %1030 : vector<16x128xf32>
    %cst_369 = arith.constant 1.000000e+00 : f32
    %cst_370 = arith.constant 0.000000e+00 : f32
    %1032 = vector.broadcast %cst_369 : f32 to vector<16x128xf32>
    %1033 = vector.broadcast %cst_370 : f32 to vector<16x128xf32>
    %1034 = arith.select %1031, %1032, %1033 : vector<16x128xi1>, vector<16x128xf32>
    %cst_371 = arith.constant dense<0.000000e+00> : vector<16xf32>
    %1035 = vector.multi_reduction <add>, %1034, %cst_371 [1] : vector<16x128xf32> to vector<16xf32>
    %1036 = vector.shape_cast %1035 : vector<16xf32> to vector<16x1xf32>
    %cst_372 = arith.constant dense<0.000000e+00> : vector<1xf32>
    %1037 = vector.multi_reduction <add>, %1036, %cst_372 [0] : vector<16x1xf32> to vector<1xf32>
    %1038 = vector.shape_cast %1037 : vector<1xf32> to vector<1x1xf32>
    %c1_i32_373 = arith.constant 1 : i32
    %1039 = vector.broadcast %c1_i32_373 : i32 to vector<8x128xi32>
    %1040 = arith.cmpi eq, %161, %1039 : vector<8x128xi32>
    %c50_i32 = arith.constant 50 : i32
    %1041 = vector.broadcast %c50_i32 : i32 to vector<8x128xi32>
    %1042 = arith.cmpi eq, %162, %1041 : vector<8x128xi32>
    %1043 = arith.andi %1040, %1042 : vector<8x128xi1>
    %1044 = vector.shape_cast %1038 : vector<1x1xf32> to vector<1x1xf32>
    %1045 = vector.broadcast %1044 : vector<1x1xf32> to vector<8x128xf32>
    %1046 = arith.select %1043, %1045, %1029 : vector<8x128xi1>, vector<8x128xf32>
    %cst_374 = arith.constant 0.942857146 : f32
    %1047 = vector.broadcast %cst_374 : f32 to vector<16x128xf32>
    %1048 = arith.cmpf ole, %147, %1047 : vector<16x128xf32>
    %cst_375 = arith.constant 1.000000e+00 : f32
    %cst_376 = arith.constant 0.000000e+00 : f32
    %1049 = vector.broadcast %cst_375 : f32 to vector<16x128xf32>
    %1050 = vector.broadcast %cst_376 : f32 to vector<16x128xf32>
    %1051 = arith.select %1048, %1049, %1050 : vector<16x128xi1>, vector<16x128xf32>
    %cst_377 = arith.constant dense<0.000000e+00> : vector<16xf32>
    %1052 = vector.multi_reduction <add>, %1051, %cst_377 [1] : vector<16x128xf32> to vector<16xf32>
    %1053 = vector.shape_cast %1052 : vector<16xf32> to vector<16x1xf32>
    %cst_378 = arith.constant dense<0.000000e+00> : vector<1xf32>
    %1054 = vector.multi_reduction <add>, %1053, %cst_378 [0] : vector<16x1xf32> to vector<1xf32>
    %1055 = vector.shape_cast %1054 : vector<1xf32> to vector<1x1xf32>
    %c1_i32_379 = arith.constant 1 : i32
    %1056 = vector.broadcast %c1_i32_379 : i32 to vector<8x128xi32>
    %1057 = arith.cmpi eq, %161, %1056 : vector<8x128xi32>
    %c51_i32 = arith.constant 51 : i32
    %1058 = vector.broadcast %c51_i32 : i32 to vector<8x128xi32>
    %1059 = arith.cmpi eq, %162, %1058 : vector<8x128xi32>
    %1060 = arith.andi %1057, %1059 : vector<8x128xi1>
    %1061 = vector.shape_cast %1055 : vector<1x1xf32> to vector<1x1xf32>
    %1062 = vector.broadcast %1061 : vector<1x1xf32> to vector<8x128xf32>
    %1063 = arith.select %1060, %1062, %1046 : vector<8x128xi1>, vector<8x128xf32>
    %cst_380 = arith.constant 9.476190e-01 : f32
    %1064 = vector.broadcast %cst_380 : f32 to vector<16x128xf32>
    %1065 = arith.cmpf ole, %147, %1064 : vector<16x128xf32>
    %cst_381 = arith.constant 1.000000e+00 : f32
    %cst_382 = arith.constant 0.000000e+00 : f32
    %1066 = vector.broadcast %cst_381 : f32 to vector<16x128xf32>
    %1067 = vector.broadcast %cst_382 : f32 to vector<16x128xf32>
    %1068 = arith.select %1065, %1066, %1067 : vector<16x128xi1>, vector<16x128xf32>
    %cst_383 = arith.constant dense<0.000000e+00> : vector<16xf32>
    %1069 = vector.multi_reduction <add>, %1068, %cst_383 [1] : vector<16x128xf32> to vector<16xf32>
    %1070 = vector.shape_cast %1069 : vector<16xf32> to vector<16x1xf32>
    %cst_384 = arith.constant dense<0.000000e+00> : vector<1xf32>
    %1071 = vector.multi_reduction <add>, %1070, %cst_384 [0] : vector<16x1xf32> to vector<1xf32>
    %1072 = vector.shape_cast %1071 : vector<1xf32> to vector<1x1xf32>
    %c1_i32_385 = arith.constant 1 : i32
    %1073 = vector.broadcast %c1_i32_385 : i32 to vector<8x128xi32>
    %1074 = arith.cmpi eq, %161, %1073 : vector<8x128xi32>
    %c52_i32 = arith.constant 52 : i32
    %1075 = vector.broadcast %c52_i32 : i32 to vector<8x128xi32>
    %1076 = arith.cmpi eq, %162, %1075 : vector<8x128xi32>
    %1077 = arith.andi %1074, %1076 : vector<8x128xi1>
    %1078 = vector.shape_cast %1072 : vector<1x1xf32> to vector<1x1xf32>
    %1079 = vector.broadcast %1078 : vector<1x1xf32> to vector<8x128xf32>
    %1080 = arith.select %1077, %1079, %1063 : vector<8x128xi1>, vector<8x128xf32>
    %cst_386 = arith.constant 0.952380955 : f32
    %1081 = vector.broadcast %cst_386 : f32 to vector<16x128xf32>
    %1082 = arith.cmpf ole, %147, %1081 : vector<16x128xf32>
    %cst_387 = arith.constant 1.000000e+00 : f32
    %cst_388 = arith.constant 0.000000e+00 : f32
    %1083 = vector.broadcast %cst_387 : f32 to vector<16x128xf32>
    %1084 = vector.broadcast %cst_388 : f32 to vector<16x128xf32>
    %1085 = arith.select %1082, %1083, %1084 : vector<16x128xi1>, vector<16x128xf32>
    %cst_389 = arith.constant dense<0.000000e+00> : vector<16xf32>
    %1086 = vector.multi_reduction <add>, %1085, %cst_389 [1] : vector<16x128xf32> to vector<16xf32>
    %1087 = vector.shape_cast %1086 : vector<16xf32> to vector<16x1xf32>
    %cst_390 = arith.constant dense<0.000000e+00> : vector<1xf32>
    %1088 = vector.multi_reduction <add>, %1087, %cst_390 [0] : vector<16x1xf32> to vector<1xf32>
    %1089 = vector.shape_cast %1088 : vector<1xf32> to vector<1x1xf32>
    %c1_i32_391 = arith.constant 1 : i32
    %1090 = vector.broadcast %c1_i32_391 : i32 to vector<8x128xi32>
    %1091 = arith.cmpi eq, %161, %1090 : vector<8x128xi32>
    %c53_i32 = arith.constant 53 : i32
    %1092 = vector.broadcast %c53_i32 : i32 to vector<8x128xi32>
    %1093 = arith.cmpi eq, %162, %1092 : vector<8x128xi32>
    %1094 = arith.andi %1091, %1093 : vector<8x128xi1>
    %1095 = vector.shape_cast %1089 : vector<1x1xf32> to vector<1x1xf32>
    %1096 = vector.broadcast %1095 : vector<1x1xf32> to vector<8x128xf32>
    %1097 = arith.select %1094, %1096, %1080 : vector<8x128xi1>, vector<8x128xf32>
    %cst_392 = arith.constant 0.957142829 : f32
    %1098 = vector.broadcast %cst_392 : f32 to vector<16x128xf32>
    %1099 = arith.cmpf ole, %147, %1098 : vector<16x128xf32>
    %cst_393 = arith.constant 1.000000e+00 : f32
    %cst_394 = arith.constant 0.000000e+00 : f32
    %1100 = vector.broadcast %cst_393 : f32 to vector<16x128xf32>
    %1101 = vector.broadcast %cst_394 : f32 to vector<16x128xf32>
    %1102 = arith.select %1099, %1100, %1101 : vector<16x128xi1>, vector<16x128xf32>
    %cst_395 = arith.constant dense<0.000000e+00> : vector<16xf32>
    %1103 = vector.multi_reduction <add>, %1102, %cst_395 [1] : vector<16x128xf32> to vector<16xf32>
    %1104 = vector.shape_cast %1103 : vector<16xf32> to vector<16x1xf32>
    %cst_396 = arith.constant dense<0.000000e+00> : vector<1xf32>
    %1105 = vector.multi_reduction <add>, %1104, %cst_396 [0] : vector<16x1xf32> to vector<1xf32>
    %1106 = vector.shape_cast %1105 : vector<1xf32> to vector<1x1xf32>
    %c1_i32_397 = arith.constant 1 : i32
    %1107 = vector.broadcast %c1_i32_397 : i32 to vector<8x128xi32>
    %1108 = arith.cmpi eq, %161, %1107 : vector<8x128xi32>
    %c54_i32 = arith.constant 54 : i32
    %1109 = vector.broadcast %c54_i32 : i32 to vector<8x128xi32>
    %1110 = arith.cmpi eq, %162, %1109 : vector<8x128xi32>
    %1111 = arith.andi %1108, %1110 : vector<8x128xi1>
    %1112 = vector.shape_cast %1106 : vector<1x1xf32> to vector<1x1xf32>
    %1113 = vector.broadcast %1112 : vector<1x1xf32> to vector<8x128xf32>
    %1114 = arith.select %1111, %1113, %1097 : vector<8x128xi1>, vector<8x128xf32>
    %cst_398 = arith.constant 0.961904764 : f32
    %1115 = vector.broadcast %cst_398 : f32 to vector<16x128xf32>
    %1116 = arith.cmpf ole, %147, %1115 : vector<16x128xf32>
    %cst_399 = arith.constant 1.000000e+00 : f32
    %cst_400 = arith.constant 0.000000e+00 : f32
    %1117 = vector.broadcast %cst_399 : f32 to vector<16x128xf32>
    %1118 = vector.broadcast %cst_400 : f32 to vector<16x128xf32>
    %1119 = arith.select %1116, %1117, %1118 : vector<16x128xi1>, vector<16x128xf32>
    %cst_401 = arith.constant dense<0.000000e+00> : vector<16xf32>
    %1120 = vector.multi_reduction <add>, %1119, %cst_401 [1] : vector<16x128xf32> to vector<16xf32>
    %1121 = vector.shape_cast %1120 : vector<16xf32> to vector<16x1xf32>
    %cst_402 = arith.constant dense<0.000000e+00> : vector<1xf32>
    %1122 = vector.multi_reduction <add>, %1121, %cst_402 [0] : vector<16x1xf32> to vector<1xf32>
    %1123 = vector.shape_cast %1122 : vector<1xf32> to vector<1x1xf32>
    %c1_i32_403 = arith.constant 1 : i32
    %1124 = vector.broadcast %c1_i32_403 : i32 to vector<8x128xi32>
    %1125 = arith.cmpi eq, %161, %1124 : vector<8x128xi32>
    %c55_i32 = arith.constant 55 : i32
    %1126 = vector.broadcast %c55_i32 : i32 to vector<8x128xi32>
    %1127 = arith.cmpi eq, %162, %1126 : vector<8x128xi32>
    %1128 = arith.andi %1125, %1127 : vector<8x128xi1>
    %1129 = vector.shape_cast %1123 : vector<1x1xf32> to vector<1x1xf32>
    %1130 = vector.broadcast %1129 : vector<1x1xf32> to vector<8x128xf32>
    %1131 = arith.select %1128, %1130, %1114 : vector<8x128xi1>, vector<8x128xf32>
    %cst_404 = arith.constant 0.966666638 : f32
    %1132 = vector.broadcast %cst_404 : f32 to vector<16x128xf32>
    %1133 = arith.cmpf ole, %147, %1132 : vector<16x128xf32>
    %cst_405 = arith.constant 1.000000e+00 : f32
    %cst_406 = arith.constant 0.000000e+00 : f32
    %1134 = vector.broadcast %cst_405 : f32 to vector<16x128xf32>
    %1135 = vector.broadcast %cst_406 : f32 to vector<16x128xf32>
    %1136 = arith.select %1133, %1134, %1135 : vector<16x128xi1>, vector<16x128xf32>
    %cst_407 = arith.constant dense<0.000000e+00> : vector<16xf32>
    %1137 = vector.multi_reduction <add>, %1136, %cst_407 [1] : vector<16x128xf32> to vector<16xf32>
    %1138 = vector.shape_cast %1137 : vector<16xf32> to vector<16x1xf32>
    %cst_408 = arith.constant dense<0.000000e+00> : vector<1xf32>
    %1139 = vector.multi_reduction <add>, %1138, %cst_408 [0] : vector<16x1xf32> to vector<1xf32>
    %1140 = vector.shape_cast %1139 : vector<1xf32> to vector<1x1xf32>
    %c1_i32_409 = arith.constant 1 : i32
    %1141 = vector.broadcast %c1_i32_409 : i32 to vector<8x128xi32>
    %1142 = arith.cmpi eq, %161, %1141 : vector<8x128xi32>
    %c56_i32 = arith.constant 56 : i32
    %1143 = vector.broadcast %c56_i32 : i32 to vector<8x128xi32>
    %1144 = arith.cmpi eq, %162, %1143 : vector<8x128xi32>
    %1145 = arith.andi %1142, %1144 : vector<8x128xi1>
    %1146 = vector.shape_cast %1140 : vector<1x1xf32> to vector<1x1xf32>
    %1147 = vector.broadcast %1146 : vector<1x1xf32> to vector<8x128xf32>
    %1148 = arith.select %1145, %1147, %1131 : vector<8x128xi1>, vector<8x128xf32>
    %cst_410 = arith.constant 0.971428573 : f32
    %1149 = vector.broadcast %cst_410 : f32 to vector<16x128xf32>
    %1150 = arith.cmpf ole, %147, %1149 : vector<16x128xf32>
    %cst_411 = arith.constant 1.000000e+00 : f32
    %cst_412 = arith.constant 0.000000e+00 : f32
    %1151 = vector.broadcast %cst_411 : f32 to vector<16x128xf32>
    %1152 = vector.broadcast %cst_412 : f32 to vector<16x128xf32>
    %1153 = arith.select %1150, %1151, %1152 : vector<16x128xi1>, vector<16x128xf32>
    %cst_413 = arith.constant dense<0.000000e+00> : vector<16xf32>
    %1154 = vector.multi_reduction <add>, %1153, %cst_413 [1] : vector<16x128xf32> to vector<16xf32>
    %1155 = vector.shape_cast %1154 : vector<16xf32> to vector<16x1xf32>
    %cst_414 = arith.constant dense<0.000000e+00> : vector<1xf32>
    %1156 = vector.multi_reduction <add>, %1155, %cst_414 [0] : vector<16x1xf32> to vector<1xf32>
    %1157 = vector.shape_cast %1156 : vector<1xf32> to vector<1x1xf32>
    %c1_i32_415 = arith.constant 1 : i32
    %1158 = vector.broadcast %c1_i32_415 : i32 to vector<8x128xi32>
    %1159 = arith.cmpi eq, %161, %1158 : vector<8x128xi32>
    %c57_i32 = arith.constant 57 : i32
    %1160 = vector.broadcast %c57_i32 : i32 to vector<8x128xi32>
    %1161 = arith.cmpi eq, %162, %1160 : vector<8x128xi32>
    %1162 = arith.andi %1159, %1161 : vector<8x128xi1>
    %1163 = vector.shape_cast %1157 : vector<1x1xf32> to vector<1x1xf32>
    %1164 = vector.broadcast %1163 : vector<1x1xf32> to vector<8x128xf32>
    %1165 = arith.select %1162, %1164, %1148 : vector<8x128xi1>, vector<8x128xf32>
    %cst_416 = arith.constant 0.976190447 : f32
    %1166 = vector.broadcast %cst_416 : f32 to vector<16x128xf32>
    %1167 = arith.cmpf ole, %147, %1166 : vector<16x128xf32>
    %cst_417 = arith.constant 1.000000e+00 : f32
    %cst_418 = arith.constant 0.000000e+00 : f32
    %1168 = vector.broadcast %cst_417 : f32 to vector<16x128xf32>
    %1169 = vector.broadcast %cst_418 : f32 to vector<16x128xf32>
    %1170 = arith.select %1167, %1168, %1169 : vector<16x128xi1>, vector<16x128xf32>
    %cst_419 = arith.constant dense<0.000000e+00> : vector<16xf32>
    %1171 = vector.multi_reduction <add>, %1170, %cst_419 [1] : vector<16x128xf32> to vector<16xf32>
    %1172 = vector.shape_cast %1171 : vector<16xf32> to vector<16x1xf32>
    %cst_420 = arith.constant dense<0.000000e+00> : vector<1xf32>
    %1173 = vector.multi_reduction <add>, %1172, %cst_420 [0] : vector<16x1xf32> to vector<1xf32>
    %1174 = vector.shape_cast %1173 : vector<1xf32> to vector<1x1xf32>
    %c1_i32_421 = arith.constant 1 : i32
    %1175 = vector.broadcast %c1_i32_421 : i32 to vector<8x128xi32>
    %1176 = arith.cmpi eq, %161, %1175 : vector<8x128xi32>
    %c58_i32 = arith.constant 58 : i32
    %1177 = vector.broadcast %c58_i32 : i32 to vector<8x128xi32>
    %1178 = arith.cmpi eq, %162, %1177 : vector<8x128xi32>
    %1179 = arith.andi %1176, %1178 : vector<8x128xi1>
    %1180 = vector.shape_cast %1174 : vector<1x1xf32> to vector<1x1xf32>
    %1181 = vector.broadcast %1180 : vector<1x1xf32> to vector<8x128xf32>
    %1182 = arith.select %1179, %1181, %1165 : vector<8x128xi1>, vector<8x128xf32>
    %cst_422 = arith.constant 0.980952382 : f32
    %1183 = vector.broadcast %cst_422 : f32 to vector<16x128xf32>
    %1184 = arith.cmpf ole, %147, %1183 : vector<16x128xf32>
    %cst_423 = arith.constant 1.000000e+00 : f32
    %cst_424 = arith.constant 0.000000e+00 : f32
    %1185 = vector.broadcast %cst_423 : f32 to vector<16x128xf32>
    %1186 = vector.broadcast %cst_424 : f32 to vector<16x128xf32>
    %1187 = arith.select %1184, %1185, %1186 : vector<16x128xi1>, vector<16x128xf32>
    %cst_425 = arith.constant dense<0.000000e+00> : vector<16xf32>
    %1188 = vector.multi_reduction <add>, %1187, %cst_425 [1] : vector<16x128xf32> to vector<16xf32>
    %1189 = vector.shape_cast %1188 : vector<16xf32> to vector<16x1xf32>
    %cst_426 = arith.constant dense<0.000000e+00> : vector<1xf32>
    %1190 = vector.multi_reduction <add>, %1189, %cst_426 [0] : vector<16x1xf32> to vector<1xf32>
    %1191 = vector.shape_cast %1190 : vector<1xf32> to vector<1x1xf32>
    %c1_i32_427 = arith.constant 1 : i32
    %1192 = vector.broadcast %c1_i32_427 : i32 to vector<8x128xi32>
    %1193 = arith.cmpi eq, %161, %1192 : vector<8x128xi32>
    %c59_i32 = arith.constant 59 : i32
    %1194 = vector.broadcast %c59_i32 : i32 to vector<8x128xi32>
    %1195 = arith.cmpi eq, %162, %1194 : vector<8x128xi32>
    %1196 = arith.andi %1193, %1195 : vector<8x128xi1>
    %1197 = vector.shape_cast %1191 : vector<1x1xf32> to vector<1x1xf32>
    %1198 = vector.broadcast %1197 : vector<1x1xf32> to vector<8x128xf32>
    %1199 = arith.select %1196, %1198, %1182 : vector<8x128xi1>, vector<8x128xf32>
    %cst_428 = arith.constant 0.985714256 : f32
    %1200 = vector.broadcast %cst_428 : f32 to vector<16x128xf32>
    %1201 = arith.cmpf ole, %147, %1200 : vector<16x128xf32>
    %cst_429 = arith.constant 1.000000e+00 : f32
    %cst_430 = arith.constant 0.000000e+00 : f32
    %1202 = vector.broadcast %cst_429 : f32 to vector<16x128xf32>
    %1203 = vector.broadcast %cst_430 : f32 to vector<16x128xf32>
    %1204 = arith.select %1201, %1202, %1203 : vector<16x128xi1>, vector<16x128xf32>
    %cst_431 = arith.constant dense<0.000000e+00> : vector<16xf32>
    %1205 = vector.multi_reduction <add>, %1204, %cst_431 [1] : vector<16x128xf32> to vector<16xf32>
    %1206 = vector.shape_cast %1205 : vector<16xf32> to vector<16x1xf32>
    %cst_432 = arith.constant dense<0.000000e+00> : vector<1xf32>
    %1207 = vector.multi_reduction <add>, %1206, %cst_432 [0] : vector<16x1xf32> to vector<1xf32>
    %1208 = vector.shape_cast %1207 : vector<1xf32> to vector<1x1xf32>
    %c1_i32_433 = arith.constant 1 : i32
    %1209 = vector.broadcast %c1_i32_433 : i32 to vector<8x128xi32>
    %1210 = arith.cmpi eq, %161, %1209 : vector<8x128xi32>
    %c60_i32 = arith.constant 60 : i32
    %1211 = vector.broadcast %c60_i32 : i32 to vector<8x128xi32>
    %1212 = arith.cmpi eq, %162, %1211 : vector<8x128xi32>
    %1213 = arith.andi %1210, %1212 : vector<8x128xi1>
    %1214 = vector.shape_cast %1208 : vector<1x1xf32> to vector<1x1xf32>
    %1215 = vector.broadcast %1214 : vector<1x1xf32> to vector<8x128xf32>
    %1216 = arith.select %1213, %1215, %1199 : vector<8x128xi1>, vector<8x128xf32>
    %cst_434 = arith.constant 0.990476191 : f32
    %1217 = vector.broadcast %cst_434 : f32 to vector<16x128xf32>
    %1218 = arith.cmpf ole, %147, %1217 : vector<16x128xf32>
    %cst_435 = arith.constant 1.000000e+00 : f32
    %cst_436 = arith.constant 0.000000e+00 : f32
    %1219 = vector.broadcast %cst_435 : f32 to vector<16x128xf32>
    %1220 = vector.broadcast %cst_436 : f32 to vector<16x128xf32>
    %1221 = arith.select %1218, %1219, %1220 : vector<16x128xi1>, vector<16x128xf32>
    %cst_437 = arith.constant dense<0.000000e+00> : vector<16xf32>
    %1222 = vector.multi_reduction <add>, %1221, %cst_437 [1] : vector<16x128xf32> to vector<16xf32>
    %1223 = vector.shape_cast %1222 : vector<16xf32> to vector<16x1xf32>
    %cst_438 = arith.constant dense<0.000000e+00> : vector<1xf32>
    %1224 = vector.multi_reduction <add>, %1223, %cst_438 [0] : vector<16x1xf32> to vector<1xf32>
    %1225 = vector.shape_cast %1224 : vector<1xf32> to vector<1x1xf32>
    %c1_i32_439 = arith.constant 1 : i32
    %1226 = vector.broadcast %c1_i32_439 : i32 to vector<8x128xi32>
    %1227 = arith.cmpi eq, %161, %1226 : vector<8x128xi32>
    %c61_i32 = arith.constant 61 : i32
    %1228 = vector.broadcast %c61_i32 : i32 to vector<8x128xi32>
    %1229 = arith.cmpi eq, %162, %1228 : vector<8x128xi32>
    %1230 = arith.andi %1227, %1229 : vector<8x128xi1>
    %1231 = vector.shape_cast %1225 : vector<1x1xf32> to vector<1x1xf32>
    %1232 = vector.broadcast %1231 : vector<1x1xf32> to vector<8x128xf32>
    %1233 = arith.select %1230, %1232, %1216 : vector<8x128xi1>, vector<8x128xf32>
    %cst_440 = arith.constant 0.995238065 : f32
    %1234 = vector.broadcast %cst_440 : f32 to vector<16x128xf32>
    %1235 = arith.cmpf ole, %147, %1234 : vector<16x128xf32>
    %cst_441 = arith.constant 1.000000e+00 : f32
    %cst_442 = arith.constant 0.000000e+00 : f32
    %1236 = vector.broadcast %cst_441 : f32 to vector<16x128xf32>
    %1237 = vector.broadcast %cst_442 : f32 to vector<16x128xf32>
    %1238 = arith.select %1235, %1236, %1237 : vector<16x128xi1>, vector<16x128xf32>
    %cst_443 = arith.constant dense<0.000000e+00> : vector<16xf32>
    %1239 = vector.multi_reduction <add>, %1238, %cst_443 [1] : vector<16x128xf32> to vector<16xf32>
    %1240 = vector.shape_cast %1239 : vector<16xf32> to vector<16x1xf32>
    %cst_444 = arith.constant dense<0.000000e+00> : vector<1xf32>
    %1241 = vector.multi_reduction <add>, %1240, %cst_444 [0] : vector<16x1xf32> to vector<1xf32>
    %1242 = vector.shape_cast %1241 : vector<1xf32> to vector<1x1xf32>
    %c1_i32_445 = arith.constant 1 : i32
    %1243 = vector.broadcast %c1_i32_445 : i32 to vector<8x128xi32>
    %1244 = arith.cmpi eq, %161, %1243 : vector<8x128xi32>
    %c62_i32 = arith.constant 62 : i32
    %1245 = vector.broadcast %c62_i32 : i32 to vector<8x128xi32>
    %1246 = arith.cmpi eq, %162, %1245 : vector<8x128xi32>
    %1247 = arith.andi %1244, %1246 : vector<8x128xi1>
    %1248 = vector.shape_cast %1242 : vector<1x1xf32> to vector<1x1xf32>
    %1249 = vector.broadcast %1248 : vector<1x1xf32> to vector<8x128xf32>
    %1250 = arith.select %1247, %1249, %1233 : vector<8x128xi1>, vector<8x128xf32>
    %cst_446 = arith.constant 1.001000e+00 : f32
    %1251 = vector.broadcast %cst_446 : f32 to vector<16x128xf32>
    %1252 = arith.cmpf ole, %147, %1251 : vector<16x128xf32>
    %cst_447 = arith.constant 1.000000e+00 : f32
    %cst_448 = arith.constant 0.000000e+00 : f32
    %1253 = vector.broadcast %cst_447 : f32 to vector<16x128xf32>
    %1254 = vector.broadcast %cst_448 : f32 to vector<16x128xf32>
    %1255 = arith.select %1252, %1253, %1254 : vector<16x128xi1>, vector<16x128xf32>
    %cst_449 = arith.constant dense<0.000000e+00> : vector<16xf32>
    %1256 = vector.multi_reduction <add>, %1255, %cst_449 [1] : vector<16x128xf32> to vector<16xf32>
    %1257 = vector.shape_cast %1256 : vector<16xf32> to vector<16x1xf32>
    %cst_450 = arith.constant dense<0.000000e+00> : vector<1xf32>
    %1258 = vector.multi_reduction <add>, %1257, %cst_450 [0] : vector<16x1xf32> to vector<1xf32>
    %1259 = vector.shape_cast %1258 : vector<1xf32> to vector<1x1xf32>
    %c1_i32_451 = arith.constant 1 : i32
    %1260 = vector.broadcast %c1_i32_451 : i32 to vector<8x128xi32>
    %1261 = arith.cmpi eq, %161, %1260 : vector<8x128xi32>
    %c63_i32 = arith.constant 63 : i32
    %1262 = vector.broadcast %c63_i32 : i32 to vector<8x128xi32>
    %1263 = arith.cmpi eq, %162, %1262 : vector<8x128xi32>
    %1264 = arith.andi %1261, %1263 : vector<8x128xi1>
    %1265 = vector.shape_cast %1259 : vector<1x1xf32> to vector<1x1xf32>
    %1266 = vector.broadcast %1265 : vector<1x1xf32> to vector<8x128xf32>
    %1267 = arith.select %1264, %1266, %1250 : vector<8x128xi1>, vector<8x128xf32>
    %c0_452 = arith.constant 0 : index
    %c0_453 = arith.constant 0 : index
    %c0_454 = arith.constant 0 : index
    %c0_455 = arith.constant 0 : index
    %1268 = vector.load %arg9[%c0_452, %c0_453, %c0_454, %c0_455] : memref<1x1x8x128xf32, #tpu.memory_space<vmem>>, vector<1x1x8x128xf32>
    %1269 = vector.shape_cast %1268 : vector<1x1x8x128xf32> to vector<8x128xf32>
    %1270 = vector.shape_cast %1267 : vector<8x128xf32> to vector<1x1x8x128xf32>
    tpu.vector_store %arg9[%c0_452, %c0_453, %c0_454, %c0_455], %1270 {strides = array<i32>} : memref<1x1x8x128xf32, #tpu.memory_space<vmem>>, vector<1x1x8x128xf32>,
    return
  }
  func.func @transform_0(%arg0: i32, %arg1: i32) -> (i32, i32, i32) {
    %c0_i32 = arith.constant 0 : i32
    %c0_i32_0 = arith.constant 0 : i32
    %c0_i32_1 = arith.constant 0 : i32
    return %arg0, %c0_i32, %c0_i32_0 : i32, i32, i32
  }
  func.func @transform_1(%arg0: i32, %arg1: i32) -> (i32, i32, i32) {
    %c0_i32 = arith.constant 0 : i32
    %c0_i32_0 = arith.constant 0 : i32
    %c0_i32_1 = arith.constant 0 : i32
    return %arg0, %c0_i32, %c0_i32_0 : i32, i32, i32
  }
  func.func @transform_2(%arg0: i32, %arg1: i32) -> (i32, i32) {
    %c0_i32 = arith.constant 0 : i32
    %c0_i32_0 = arith.constant 0 : i32
    return %arg1, %c0_i32 : i32, i32
  }
  func.func @transform_3(%arg0: i32, %arg1: i32) -> (i32, i32) {
    %c0_i32 = arith.constant 0 : i32
    %c0_i32_0 = arith.constant 0 : i32
    %c0_i32_1 = arith.constant 0 : i32
    return %c0_i32, %c0_i32_0 : i32, i32
  }
  func.func @transform_4(%arg0: i32, %arg1: i32) -> (i32, i32, i32) {
    %c0_i32 = arith.constant 0 : i32
    %c0_i32_0 = arith.constant 0 : i32
    return %arg0, %arg1, %c0_i32 : i32, i32, i32
  }
  func.func @transform_5(%arg0: i32, %arg1: i32) -> (i32, i32, i32) {
    %c0_i32 = arith.constant 0 : i32
    %c0_i32_0 = arith.constant 0 : i32
    return %arg0, %arg1, %c0_i32 : i32, i32, i32
  }
  func.func @transform_6(%arg0: i32, %arg1: i32) -> (i32, i32, i32) {
    %c0_i32 = arith.constant 0 : i32
    %c0_i32_0 = arith.constant 0 : i32
    return %arg0, %arg1, %c0_i32 : i32, i32, i32
  }
  func.func @transform_7(%arg0: i32, %arg1: i32) -> (i32, i32, i32, i32) {
    %c0_i32 = arith.constant 0 : i32
    %c0_i32_0 = arith.constant 0 : i32
    %c0_i32_1 = arith.constant 0 : i32
    return %arg0, %arg1, %c0_i32, %c0_i32_0 : i32, i32, i32, i32
  }
}

</mosaic_0001>

<bundles_post_ra>
// kernel: tpu_custom_call.1
= control target key start
LH: loop header
LB: loop body
LE: loop exit
PB: predicated region body
PF: predicated region fallthrough
CT: control target
= control target key end

     0   :  { %s6315_s0 = inlined_call_operand.hbm [shape: f32[2,8,640], index: 0, kind: input, shape index: {}]   ;;  %s6316_s1 = inlined_call_operand.hbm [shape: f32[2,8,640], index: 1, kind: input, shape index: {}]   ;;  %s6317_s2 = inlined_call_operand.vmem [shape: f32[16,8], index: 2, kind: input, shape index: {}]   ;;  %s6318_s3 = inlined_call_operand.hbm [shape: f32[128,128], index: 3, kind: input, shape index: {}]   ;;  %s6319_s4 = inlined_call_operand.vmem [shape: s32[2,16,128], index: 4, kind: input, shape index: {}]   ;;  %s6320_s5 = inlined_call_operand.hbm [shape: f32[2,16,128], index: 5, kind: output, shape index: {0}]   ;;  %s6321_s6 = inlined_call_operand.hbm [shape: f32[2,16,128], index: 6, kind: output, shape index: {1}]   ;;  %s6322_s7 = inlined_call_operand.hbm [shape: f32[2,1,8,128], index: 7, kind: output, shape index: {2}]  }
   0x1   :  { %6330 = sst [smem:[#allocation19_spill]] %s6315_s0 }
   0x2   :  { %6331 = sst [smem:[#allocation20_spill]] %s6318_s3 }
   0x3   :  { %13 = vsyncpa [#allocation3], 0 }
   0x4   :  { %15 = vsyncpa [#allocation3 + $0x1], 0 }
   0x5   :  { %16 = vsyncpa [#allocation6], 0 }
   0x6   :  { %18 = vsyncpa [#allocation6 + $0x1], 0 }
   0x7   :  { %19 = vsyncpa [#allocation4], 0 }
   0x8   :  { %21 = vsyncpa [#allocation4 + $0x1], 0 }
   0x9   :  { %22 = vsyncpa [#allocation10], 0 }
   0xa   :  { %24 = vsyncpa [#allocation10 + $0x1], 0  ;;  %s4678_s24 = smov 0   ;;  %s4680_s25 = smov 0  }
   0xb   :  { %s4682_s26 = smov 0   ;;  %s4684_s27 = smov 0  }
   0xc   :  { %s4686_s28 = smov 0   ;;  %s4688_s29 = smov 0  }
   0xd LB: > { %s4709_s30 = sadd.s32 4294967295, %s4625_s29   ;;  %s6326_s8 = sadd.s32 4294967294, %s4625_s29   ;;  %s4625_s29 = sphi %s4688_s29, %s30_s29   ;;  %s4621_s28 = sphi %s4686_s28, %s6426_s28   ;;  %s4617_s27 = sphi %s4684_s27, %s6425_s27   ;;  %s4613_s26 = sphi %s4682_s26, %s6424_s26   ;;  %s4609_s25 = sphi %s4680_s25, %s6423_s25   ;;  %s4605_s24 = sphi %s4678_s24, %s6422_s24  }
   0xe   : > { %p62_p0 = scmp.ne.s32.totalorder %s4609_s25, %s4605_s24  ;;  %p6323_p1 = scmp.eq.s32.totalorder %s4709_s30, 0 }
   0xf   : > { %p195_p3 = scmp.eq.s32.totalorder %s6326_s8, 1  ;;  %p3329_p5 = scmp.ge.s32.totalorder %s4625_s29, 1 }
  0x10   : > { %p4720_p4 = por %p6323_p1, %p62_p0  ;;  %p258_p7 = scmp.lt.s32.totalorder %s4625_s29, 3 }
  0x11   : > { %p4725_p6 = por %p195_p3, %p62_p0  ;;  %s4627_s12 = smov [#allocation7]  }
  0x12   : > { %s6332_s9 = scalar_select %p4720_p4, 1, 0 }
  0x13   : > { %s6333_s10 = scalar_select %p4725_p6, 1, 0 }
  0x14   : > { %p4730_p8 = pnand %p3329_p5, %p258_p7  ;;  %s279_s13 = sshll.u32 %s4627_s12, 4  ;;  %s280_s13 = int_to_ptr.vmem [resolvable:$true] %s279_s13 }
  0x15   : > { %s42_s15 = sadd.s32 1, %s4621_s28  ;;  %s6336_s3 = sld [smem:[#allocation20_spill]] }
  0x16   : > { %s6334_s11 = scalar_select %p4730_p8, 1, 0 }
  0x17   : > { %p4254_p9 = pneg %p4730_p8 }
  0x19   : > { %p4739_p11 = pnand %p4254_p9, %p6323_p1 }
  0x1b   : > { %s4387_s18 = scalar_lea.hbm %s6336_s3, 2048  ;;  %p4389_p13 = pneg %p4739_p11 }
  0x1c   : > { %p4388_p12 = scmp.ne.s32.totalorder %s6336_s3, %s4387_s18  ;;  %p4394_p5 = scmp.lt.u32.totalorder %s4387_s18, %s6336_s3 }
  0x1e   : > { %p4390_p0 = pnand %p4389_p13, %p4388_p12 }
  0x20   : > { %p4391_p3 = pneg %p4390_p0 }
  0x22   : > { %p4396_p7 = pnand %p4394_p5, %p4391_p3 }
  0x24   : > { %4399 = shalt.err (!%p4396_p7)
}
  0x25   : > { %s4400_s23 = scalar_lea.vmem %s280_s13, 2048  ;;  %p4408_p2 = scmp.lt.s32.totalorder %s280_s13, %s280_s13 }
  0x26   : > { %p4401_p9 = scmp.ne.s32.totalorder %s280_s13, %s4400_s23  ;;  %p4409_p6 = scmp.lt.s32.totalorder %s4400_s23, %s4400_s23 }
  0x28   : > { %p4403_p10 = pnand %p4401_p9, %p4389_p13  ;;  %p4410_p4 = por %p4409_p6, %p4408_p2 }
  0x2a   : > { %p4404_p1 = pneg %p4403_p10 }
  0x2c   : > { %p4411_p8 = pnand %p4410_p4, %p4404_p1 }
  0x2e   : > { %4414 = shalt.err (!%p4411_p8)
}
  0x2f   : > { %s4628_s12 = smov 128   ;;  %s4629_s16 = smov 8  }
  0x30   : > { %4257 = dma.hbm_to_vmem [thread:$0]  (!%p4739_p11), %s6336_s3, 2048, %s280_s13, [#allocation6], %s4628_s12, %s4628_s12, %s4629_s16  }
  0x31   : > { %p44_p1 = scmp.ge.s32.totalorder %s42_s15, 2  ;;  %s49_s19 = sadd.s32 1, %s4613_s26 }
  0x32   : > { %p56_p2 = scmp.ne.s32.totalorder %s4613_s26, %s4609_s25  ;;  %p57_p4 = scmp.eq.s32.totalorder %s4625_s29, 0 }
  0x33   : > { %s6428_s15 = smov (%p44_p1, %s42_s15), 0  ;;  %p6338_p8 = scmp.eq.s32.totalorder %s4709_s30, 1 }
  0x34   : > { %6337 = sst [smem:[#allocation17_spill]] %s6428_s15  ;;  %p58_p6 = por %p57_p4, %p56_p2 }
  0x35   : > { %p4768_p10 = por %p6338_p8, %p56_p2  ;;  %s46_s14 = ssub.s32 %s4621_s28, %s6428_s15 }
  0x36   : > { %p4276_p12 = scmp.lt.s32.totalorder %s4625_s29, 2  ;;  %p47_p13 = scmp.eq.s32.totalorder %s46_s14, 0 }
  0x37   : > { %s6339_s20 = scalar_select %p4768_p10, 1, 0 }
  0x38   : > { %s293_s21 = sand.u32 1, %s4613_s26   ;;  %s6327_s23 = smul.u32 640, %s4621_s28 }
  0x39   : > { %s4776_s13 = smul.u32 40, %s293_s21  ;;  %p4783_p11 = pnand %p4276_p12, %p58_p6 }
  0x3a   : > { %s4779_s22 = scalar_select %p47_p13, %s4613_s26, %s49_s19  }
  0x3b   : > { %s297_s12 = scalar_lea.vmem [#allocation2], %s4776_s13  ;;  %s6342_s0 = sld [smem:[#allocation19_spill]] }
  0x3c   : > { %6340 = sst [smem:[#allocation18_spill]] %s4779_s22  ;;  %s305_s16 = sshll.u32 %s297_s12, 4  ;;  %s4794_s16 = int_to_ptr.vmem [resolvable:$true] %s305_s16 }
  0x3d   : > { %s312_s19 = sand.u32 1, %s4625_s29   ;;  %s294_s12 = scalar_lea.sflag [#allocation3], %s293_s21 }
  0x3e   : > { %p4417_p3 = pneg %p4783_p11 }
  0x41   : > { %s4792_s14 = scalar_lea.hbm %s6342_s0, %s6327_s23  ;;  %s4420_s23 = scalar_lea.hbm %s6342_s0, 1280 }
  0x42   : > { %s4415_s3 = scalar_lea.hbm %s4792_s14, 640  ;;  %p4421_p9 = scmp.lt.u32.totalorder %s4792_s14, %s6342_s0 }
  0x43   : > { %p4416_p0 = scmp.ne.s32.totalorder %s4792_s14, %s4415_s3  ;;  %p4422_p1 = scmp.lt.u32.totalorder %s4420_s23, %s4415_s3 }
  0x44   : > { %p4424_p4 = scmp.lt.u32.totalorder %s4415_s3, %s4792_s14 }
  0x45   : > { %p4418_p5 = pnand %p4417_p3, %p4416_p0  ;;  %p4423_p2 = por %p4422_p1, %p4421_p9 }
  0x47   : > { %p4419_p7 = pneg %p4418_p5  ;;  %p4425_p6 = por %p4424_p4, %p4423_p2 }
  0x49   : > { %p4426_p8 = pnand %p4425_p6, %p4419_p7 }
  0x4b   : > { %4429 = shalt.err (!%p4426_p8)
}
  0x4c   : > { %s4430_s21 = scalar_lea.vmem %s4794_s16, 640  ;;  %s4630_s8 = smov [#allocation2]  }
  0x4d   : > { %p4431_p12 = scmp.ne.s32.totalorder %s4794_s16, %s4430_s21  ;;  %s4435_s18 = sshll.u32 %s4630_s8, 4  ;;  %s4436_s18 = int_to_ptr.vmem [resolvable:$false] %s4435_s18 }
  0x4e   : > { %s4437_s15 = scalar_lea.vmem %s4436_s18, 1280  ;;  %p4438_p5 = scmp.lt.s32.totalorder %s4794_s16, %s4436_s18 }
  0x4f   : > { %p4433_p13 = pnand %p4431_p12, %p4417_p3  ;;  %p4439_p9 = scmp.lt.s32.totalorder %s4437_s15, %s4430_s21 }
  0x51   : > { %p4434_p0 = pneg %p4433_p13  ;;  %p4440_p1 = por %p4439_p9, %p4438_p5 }
  0x53   : > { %p4441_p2 = pnand %p4440_p1, %p4434_p0 }
  0x55   : > { %4444 = shalt.err (!%p4441_p2)
}
  0x56   : > { %4261 = dma.hbm_to_vmem [thread:$0]  (!%p4783_p11), %s4792_s14, 640, %s4794_s16, %s294_s12  }
  0x57   : > { %s6343_s3 = smul.u32 640, %s4621_s28  ;;  %s316_s21 = scalar_lea.vmem [#allocation5], %s4776_s13 }
  0x58   : > { %s324_s18 = sshll.u32 %s316_s21, 4  ;;  %s313_s15 = scalar_lea.sflag [#allocation6], %s312_s19  ;;  %s325_s18 = int_to_ptr.vmem [resolvable:$true] %s324_s18 }
  0x59   : > { %s4827_s8 = scalar_lea.hbm %s6316_s1, %s6343_s3  ;;  %s4450_s12 = scalar_lea.hbm %s6316_s1, 1280 }
  0x5a   : > { %s4445_s0 = scalar_lea.hbm %s4827_s8, 640  ;;  %p4451_p8 = scmp.lt.u32.totalorder %s4827_s8, %s6316_s1 }
  0x5b   : > { %p4446_p7 = scmp.ne.s32.totalorder %s4827_s8, %s4445_s0  ;;  %p4452_p12 = scmp.lt.u32.totalorder %s4450_s12, %s4445_s0 }
  0x5c   : > { %p4454_p0 = scmp.lt.u32.totalorder %s4445_s0, %s4827_s8 }
  0x5d   : > { %p4448_p4 = pnand %p4446_p7, %p4417_p3  ;;  %p4453_p13 = por %p4452_p12, %p4451_p8 }
  0x5f   : > { %p4449_p6 = pneg %p4448_p4  ;;  %p4455_p5 = por %p4454_p0, %p4453_p13 }
  0x61   : > { %p4456_p9 = pnand %p4455_p5, %p4449_p6 }
  0x63   : > { %4459 = shalt.err (!%p4456_p9)
}
  0x64   : > { %s4460_s13 = scalar_lea.vmem %s325_s18, 640  ;;  %s4631_s19 = smov [#allocation5]  }
  0x65   : > { %p4461_p1 = scmp.ne.s32.totalorder %s325_s18, %s4460_s13  ;;  %s4465_s23 = sshll.u32 %s4631_s19, 4  ;;  %s4466_s23 = int_to_ptr.vmem [resolvable:$false] %s4465_s23 }
  0x66   : > { %s4467_s21 = scalar_lea.vmem %s4466_s23, 1280  ;;  %p4468_p4 = scmp.lt.s32.totalorder %s325_s18, %s4466_s23 }
  0x67   : > { %p4463_p2 = pnand %p4461_p1, %p4417_p3  ;;  %p4469_p10 = scmp.lt.s32.totalorder %s4467_s21, %s4460_s13 }
  0x69   : > { %p4464_p7 = pneg %p4463_p2  ;;  %p4470_p8 = por %p4469_p10, %p4468_p4 }
  0x6b   : > { %p4471_p12 = pnand %p4470_p8, %p4464_p7 }
  0x6d   : > { %4474 = shalt.err (!%p4471_p12)
}
  0x6e   : > { %4264 = dma.hbm_to_vmem [thread:$0]  (!%p4783_p11), %s4827_s8, 640, %s325_s18, %s313_s15  }
  0x6f   : > { %p6344_p6 = scmp.ne.s32.totalorder %s6334_s11, 0 }
  0x70   : > { %s4854_s0 = sand.u32 (!%p6344_p6), 1, %s4609_s25   ;;  %p6345_p3 = scmp.ne.s32.totalorder (!%p6344_p6), %s6332_s9, 0 }
  0x71   : > { %346 = sbr.rel (%p6344_p6) target bundleno = 1210 (0x4ba), region = 40  ;;  %s349_s14 = scalar_lea.sflag (!%p6344_p6), [#allocation3], %s4854_s0 }
  0x72   : > { %s4239_s16 = smul.u32 (!%p6344_p6), 40, %s4854_s0 }
  0x74   : > { %s352_s12 = scalar_lea.vmem (!%p6344_p6), [#allocation2], %s4239_s16 }
  0x78   : > { %4584 = dma.done.wait (%p6345_p3), %s349_s14, 640  }
  0x79   : > { %4586 = vsyncadd (%p6345_p3), %s349_s14, 4294966656  ;;  %s357_s17 = sand.u32 1, %s4709_s30   ;;  %s4865_s8 = scalar_lea.vmem [#allocation5], %s4239_s16 }
  0x7a   : > { %s358_s11 = scalar_lea.sflag [#allocation6], %s357_s17 }
  0x7b   : > { %4588 = dma.done.wait (%p6345_p3), %s358_s11, 640  }
  0x7c   : > { %4590 = vsyncadd (%p6345_p3), %s358_s11, 4294966656  ;;  %p6346_p10 = scmp.eq.s32.totalorder %s4709_s30, 0 }
  0x7e   : > { %4592 = dma.done.wait (%p6346_p10), [#allocation6], 2048   ;;  %p6347_p11 = pmov %p6346_p10 }
  0x7f   : > { %v4632_v0 = vmov 0.0   ;;  %v464_v1 = vld [vmem:[%s352_s12 + $0x8] sm:$0xff]  ;;  %v466_v2 = vld [vmem:[%s352_s12 + $0x18] sm:$0xff]  ;;  %v463_v3 = vld [vmem:[%s352_s12] sm:$0xff]  ;;  %vm468_vm0 = vcmask 64512   ;;  %p432_p13 = scmp.lt.s32.totalorder %s4617_s27, 1 }
  0x80   : > { %4594 = vsyncadd (%p6347_p11), [#allocation6], 4294965248  ;;  %539 = vmatprep.mubr.f32.mxu0 %v4632_v0  ;;  %616 = vmatprep.mubr.f32.mxu1 %v4632_v0  ;;  %v465_v4 = vld [vmem:[%s352_s12 + $0x10] sm:$0xff]  ;;  %v443_v5 = vld [vmem:[%s6317_s2] sm:$0xff]  ;;  %s3337_s16 = sshll.u32 %s4854_s0, 4  ;;  %p6386_p5 = scmp.ne.s32.totalorder %s6339_s20, 0 }
  0x81   : > { %475 = vmatprep.subr.mxu0 %v464_v1  ;;  %552 = vmatprep.subr.mxu1 %v466_v2  ;;  %v705_v6 = vld [vmem:[%s4865_s8 + $0x8] sm:$0xff]  ;;  %v704_v7 = vld [vmem:[%s4865_s8] sm:$0xff]  ;;  %v467_v8 = vld [vmem:[%s352_s12 + $0x20] sm:$0xff]  ;;  %s433_s22 = scalar_select %p432_p13, %s4617_s27, 1 }
  0x82   : > { %476 = vmatpush1.msra.mxu0 %v463_v3  ;;  %553 = vmatpush1.msra.mxu1 %v465_v4  ;;  %v708_v9 = vld [vmem:[%s4865_s8 + $0x20] sm:$0xff]  ;;  %v444_v10 = vld [vmem:[%s6317_s2 + $0x8] sm:$0xff]  ;;  %v445_v12 = vld [vmem:[#allocation7] sm:$0xff]  ;;  %s5267_s14 = scalar_lea.vmem [#allocation8], %s3337_s16  ;;  %s5284_s12 = scalar_lea.vmem [#allocation9], %s3337_s16 }
  0x83   : > { %3342 = vmatmul.mubr.msk.f32.vlgmr.msra.gmra.mrb[0].mxu0 %vm468_vm0, %v443_v5  ;;  %3344 = vmatmul.mubr.msk.f32.vlgmr.msra.gmra.mrb[0].mxu1 %vm468_vm0, %v443_v5  ;;  %v707_v11 = vld [vmem:[%s4865_s8 + $0x18] sm:$0xff]  ;;  %v706_v14 = vld [vmem:[%s4865_s8 + $0x10] sm:$0xff]  ;;  %v448_v17 = vld [vmem:[#allocation7 + $0x18] sm:$0xff]  ;;  %s3366_s13 = sshll.u32 %s433_s22, 4  ;;  %s3081_s11 = sshll.u32 %s5267_s14, 4  ;;  %s5992_s11 = int_to_ptr.vmem [resolvable:$true] %s3081_s11 }
  0x84   : > { %709 = vmatprep.subr.mxu1 %v705_v6  ;;  %545 = vmatprep.mubr.f32.mxu0 %v4632_v0  ;;  %v446_v13 = vld [vmem:[#allocation7 + $0x8] sm:$0xff]  ;;  %v447_v16 = vld [vmem:[#allocation7 + $0x10] sm:$0xff]  ;;  %v449_v19 = vld [vmem:[#allocation7 + $0x20] sm:$0xff]  ;;  %s439_s21 = scalar_lea.vmem %s6319_s4, %s3366_s13  ;;  %s3367_s8 = sshll.u32 %s4617_s27, 8 }
  0x85   : > { %710 = vmatpush1.msra.mxu1 %v704_v7  ;;  %622 = vmatprep.mubr.f32.mxu1 %v4632_v0  ;;  %v4896_v15 = vpack.c.bf16 %v446_v13, %v445_v12  ;;  %v4903_v18 = vpack.c.bf16 %v448_v17, %v447_v16  ;;  %v450_v20 = vld [vmem:[#allocation7 + $0x28] sm:$0xff]  ;;  %v451_v22 = vld [vmem:[#allocation7 + $0x30] sm:$0xff]  ;;  %v452_v23 = vld [vmem:[#allocation7 + $0x38] sm:$0xff]  ;;  %s5932_s15 = scalar_lea.hbm %s6321_s6, %s3367_s8  ;;  %s3099_s3 = sshll.u32 %s5284_s12, 4  ;;  %s5944_s3 = int_to_ptr.vmem [resolvable:$true] %s3099_s3 }
  0x86   : > { %3555 = vmatprep.subr.mxu0 %v467_v8  ;;  %3560 = vmatprep.subr.mxu1 %v708_v9  ;;  %v4912_v21 = vpack.c.bf16 %v450_v20, %v449_v19  ;;  %v4920_v24 = vpack.c.bf16 %v452_v23, %v451_v22  ;;  %v453_v25 = vld [vmem:[#allocation7 + $0x40] sm:$0xff]  ;;  %v454_v26 = vld [vmem:[#allocation7 + $0x48] sm:$0xff]  ;;  %v455_v28 = vld [vmem:[#allocation7 + $0x50] sm:$0xff]  ;;  %s5956_s22 = scalar_lea.sflag [#allocation10], %s357_s17  ;;  %s4475_s13 = scalar_lea.vmem %s5944_s3, 256 }
  0x87   : > { %3343 = vmatmul.mubr.msk.f32.gmra.mrb[2].mxu0 %vm468_vm0, %v444_v10  ;;  %3345 = vmatmul.mubr.msk.f32.gmra.mrb[2].mxu1 %vm468_vm0, %v444_v10  ;;  %v4926_v27 = vpack.c.bf16 %v454_v26, %v453_v25  ;;  %v456_v29 = vld [vmem:[#allocation7 + $0x58] sm:$0xff]  ;;  %v457_v31 = vld [vmem:[#allocation7 + $0x60] sm:$0xff]  ;;  %v458_v32 = vld [vmem:[#allocation7 + $0x68] sm:$0xff]  ;;  %p4476_p0 = scmp.ne.s32.totalorder %s5944_s3, %s4475_s13  ;;  %s4633_s19 = smov [#allocation9]  }
  0x88   : > { %773 = vmatprep.mubr.f32.mxu1 %v4632_v0  ;;  %3556 = vmatpush3.msra.mxu0 %v467_v8  ;;  %v4932_v30 = vpack.c.bf16 %v456_v29, %v455_v28  ;;  %v4938_v33 = vpack.c.bf16 %v458_v32, %v457_v31  ;;  %v459_v34 = vld [vmem:[#allocation7 + $0x70] sm:$0xff]  ;;  %v460_v35 = vld [vmem:[#allocation7 + $0x78] sm:$0xff]  ;;  %v5125_v61 = vld [vmem:[%s439_s21 + $0x8] sm:$0xff]  ;;  %s4479_s23 = sshll.u32 %s4633_s19, 4  ;;  %s4480_s23 = int_to_ptr.vmem [resolvable:$false] %s4479_s23 }
  0x89   : > { %3557 = vmatprep.mubr.msk.f32.mxu0 %vm468_vm0, %v443_v5  ;;  %786 = vmatprep.subr.mxu0 %v707_v11  ;;  %v4948_v36 = vpack.c.bf16 %v460_v35, %v459_v34  ;;  %v5127_v62 = vld [vmem:[%s439_s21] sm:$0xff]  ;;  %vm1721_vm1 = vcmp.eq.s32.totalorder %v5125_v61, 0  ;;  %vm1747_vm2 = vcmp.eq.s32.totalorder %v5125_v61, 1  ;;  %vm1847_vm6 = vcmp.ne.s32.totalorder %v5125_v61, 255  ;;  %p4477_p9 = pnand %p4476_p0, %p6386_p5  ;;  %s4481_s21 = scalar_lea.vmem %s4480_s23, 512 }
  0x8a   : > { %vm1720_vm3 = vcmp.eq.s32.totalorder %v5127_v62, 0  ;;  %vm1746_vm4 = vcmp.eq.s32.totalorder %v5127_v62, 1  ;;  %vm1846_vm5 = vcmp.ne.s32.totalorder %v5127_v62, 255  ;;  %vm1773_vm7 = vcmp.eq.s32.totalorder %v5125_v61, 2  ;;  %p4482_p2 = scmp.lt.s32.totalorder %s5944_s3, %s4480_s23  ;;  %p4483_p7 = scmp.lt.s32.totalorder %s4481_s21, %s4475_s13 }
  0x8b   : > { %3348 = vmatmul.mubr.msk.f32.vlgmr.msra.gmra.mrb[4].mxu1 %vm468_vm0, %v443_v5  ;;  %3558 = vmatmul.mubr.msk.f32.vlgmr.msra.gmra.mrb[4].mxu0 %vm468_vm0, %v444_v10  ;;  %v5173_v20 = vsel %vm1846_vm5, 1.0, %v4632_v0  ;;  %vm1772_vm8 = vcmp.eq.s32.totalorder %v5127_v62, 2  ;;  %vm1799_vm9 = vcmp.eq.s32.totalorder %v5125_v61, 3  ;;  %vm1798_vm10 = vcmp.eq.s32.totalorder %v5127_v62, 3  ;;  %p4478_p1 = pneg %p4477_p9 }
  0x8c   : > { %779 = vmatprep.mubr.f32.mxu1 %v4632_v0  ;;  %787 = vmatpush1.msra.mxu0 %v706_v14  ;;  %vm1825_vm11 = vcmp.eq.s32.totalorder %v5125_v61, 4  ;;  %vm1824_vm12 = vcmp.eq.s32.totalorder %v5127_v62, 4  ;;  %p4484_p4 = por %p4483_p7, %p4482_p2 }
  0x8d   : > { %850 = vmatprep.mubr.f32.mxu0 %v4632_v0  ;;  %3561 = vmatpush3.msra.mxu1 %v708_v9 }
  0x8e   : > { %3916 = vmatprep.subr.bf16.mxu0 %v4896_v15  ;;  %3948 = vmatprep.subr.bf16.mxu1 %v4896_v15  ;;  %p4485_p8 = pnand %p4484_p4, %p4478_p1 }
  0x8f   : > { %3349 = vmatmul.mubr.msk.f32.gmra.mrb[6].mxu1 %vm468_vm0, %v444_v10  ;;  %3350 = vmatmul.mubr.msk.f32.vlgmr.msra.gmra.mrb[6].mxu0 %vm468_vm0, %v443_v5 }
  0x90   : > { %856 = vmatprep.mubr.f32.mxu0 %v4632_v0  ;;  %3562 = vmatprep.mubr.msk.f32.mxu1 %vm468_vm0, %v443_v5 }
  0x91   : > { %3918 = vmatpush3.bf16.msra.mxu0 %v4896_v15  ;;  %1881 = vadd.xlane.f32.xlu1 %v5173_v20 }
  0x92   : > { %3920 = vmatprep.subr.bf16.mxu0 %v4903_v18 }
  0x93   : > { %3351 = vmatmul.mubr.msk.f32.gmra.mrb[8].mxu0 %vm468_vm0, %v444_v10  ;;  %3563 = vmatmul.mubr.msk.f32.vlgmr.msra.gmra.mrb[8].mxu1 %vm468_vm0, %v444_v10 }
  0x94   : > { %3950 = vmatpush3.bf16.msra.mxu1 %v4896_v15 }
  0x95   : > { %3922 = vmatpush3.bf16.msra.mxu0 %v4903_v18  ;;  %3952 = vmatprep.subr.bf16.mxu1 %v4903_v18 }
  0x96   : > { %3924 = vmatprep.subr.bf16.mxu0 %v4912_v21 }
  0x98   : > { %3954 = vmatpush3.bf16.msra.mxu1 %v4903_v18 }
  0x99   : > { %3926 = vmatpush3.bf16.msra.mxu0 %v4912_v21  ;;  %3956 = vmatprep.subr.bf16.mxu1 %v4912_v21 }
  0x9a   : > { %3928 = vmatprep.subr.bf16.mxu0 %v4920_v24 }
  0x9c   : > { %3958 = vmatpush3.bf16.msra.mxu1 %v4912_v21 }
  0x9d   : > { %3930 = vmatpush3.bf16.msra.mxu0 %v4920_v24  ;;  %3960 = vmatprep.subr.bf16.mxu1 %v4920_v24 }
  0x9e   : > { %3932 = vmatprep.subr.bf16.mxu0 %v4926_v27 }
  0xa0   : > { %3962 = vmatpush3.bf16.msra.mxu1 %v4920_v24 }
  0xa1   : > { %3934 = vmatpush3.bf16.msra.mxu0 %v4926_v27  ;;  %3964 = vmatprep.subr.bf16.mxu1 %v4926_v27 }
  0xa2   : > { %3936 = vmatprep.subr.bf16.mxu0 %v4932_v30 }
  0xa4   : > { %3966 = vmatpush3.bf16.msra.mxu1 %v4926_v27 }
  0xa5   : > { %3938 = vmatpush3.bf16.msra.mxu0 %v4932_v30  ;;  %3968 = vmatprep.subr.bf16.mxu1 %v4932_v30 }
  0xa6   : > { %3940 = vmatprep.subr.bf16.mxu0 %v4938_v33 }
  0xa8   : > { %3970 = vmatpush3.bf16.msra.mxu1 %v4932_v30 }
  0xa9   : > { %3942 = vmatpush3.bf16.msra.mxu0 %v4938_v33  ;;  %3972 = vmatprep.subr.bf16.mxu1 %v4938_v33 }
  0xaa   : > { %3944 = vmatprep.subr.bf16.mxu0 %v4948_v36 }
  0xac   : > { %3974 = vmatpush3.bf16.msra.mxu1 %v4938_v33 }
  0xad   : > { %3976 = vmatprep.subr.bf16.mxu1 %v4948_v36  ;;  %3946 = vmatpush3.bf16.msra.mxu0 %v4948_v36 }
  0xae   : > { %3980 = vmatprep.subr.bf16.mxu0 %v4896_v15 }
  0xb0   : > { %3978 = vmatpush3.bf16.msra.mxu1 %v4948_v36 }
  0xb1   : > { %4012 = vmatprep.subr.bf16.mxu1 %v4896_v15 }
 0x156   : > { %v618_v37 = vpop.f32.mrb[0].mxu1  ;;  %v541_v38 = vpop.f32.mrb[0].mxu0 }
 0x157   : > { %v4956_v39 = vpop.f32.mrb[1].mxu1  ;;  %v543_v40 = vpop.f32.mrb[1].mxu0  ;;  %3597 = vmatprep.mubr.f32.mxu0 %v541_v38 }
 0x15a   : > { %v547_v41 = vpop.f32.mrb[2].mxu0  ;;  %v4958_v42 = vpop.f32.mrb[2].mxu1 }
 0x15b   : > { %v4960_v43 = vpop.f32.mrb[3].mxu1  ;;  %3598 = vmatmul.mubr.f32.vlgmr.msra.gmra.mrb[10].mxu0 %v547_v41  ;;  %v549_v44 = vpop.f32.mrb[3].mxu0 }
 0x15c   : > { %3982 = vmatpush3.bf16.msra.mxu0 %v4896_v15  ;;  %3667 = vmatprep.mubr.f32.mxu0 %v543_v40 }
 0x15d   : > { %3984 = vmatprep.subr.bf16.mxu0 %v4903_v18 }
 0x15e   : > { %v775_v45 = vpop.f32.mrb[4].mxu1  ;;  %v4964_v46 = vpop.f32.mrb[4].mxu0 }
 0x15f   : > { %v777_v47 = vpop.f32.mrb[5].mxu1  ;;  %3632 = vmatprep.mubr.f32.mxu1 %v775_v45  ;;  %v4966_v48 = vpop.f32.mrb[5].mxu0 }
 0x160   : > { %3986 = vmatpush3.bf16.msra.mxu0 %v4903_v18 }
 0x161   : > { %3988 = vmatprep.subr.bf16.mxu0 %v4912_v21 }
 0x162   : > { %v781_v49 = vpop.f32.mrb[6].mxu1  ;;  %v852_v50 = vpop.f32.mrb[6].mxu0 }
 0x163   : > { %v783_v51 = vpop.f32.mrb[7].mxu1  ;;  %3633 = vmatmul.mubr.f32.vlgmr.msra.gmra.mrb[10].mxu1 %v781_v49  ;;  %v4970_v52 = vpop.f32.mrb[7].mxu0 }
 0x164   : > { %3990 = vmatpush3.bf16.msra.mxu0 %v4912_v21  ;;  %4014 = vmatpush3.bf16.msra.mxu1 %v4896_v15 }
 0x165   : > { %3702 = vmatprep.mubr.f32.mxu1 %v777_v47  ;;  %3992 = vmatprep.subr.bf16.mxu0 %v4920_v24 }
 0x166   : > { %4016 = vmatprep.subr.bf16.mxu1 %v4903_v18  ;;  %v4976_v53 = vpop.f32.mrb[8].mxu0  ;;  %v4978_v54 = vpop.f32.mrb[8].mxu1 }
 0x167   : > { %v4980_v55 = vpop.f32.mrb[9].mxu0  ;;  %v4982_v56 = vpop.f32.mrb[9].mxu1 }
 0x168   : > { %3994 = vmatpush3.bf16.msra.mxu0 %v4920_v24  ;;  %4018 = vmatpush3.bf16.msra.mxu1 %v4903_v18 }
 0x169   : > { %3996 = vmatprep.subr.bf16.mxu0 %v4926_v27  ;;  %4020 = vmatprep.subr.bf16.mxu1 %v4912_v21 }
 0x16c   : > { %3998 = vmatpush3.bf16.msra.mxu0 %v4926_v27  ;;  %4022 = vmatpush3.bf16.msra.mxu1 %v4912_v21 }
 0x16d   : > { %4000 = vmatprep.subr.bf16.mxu0 %v4932_v30  ;;  %4024 = vmatprep.subr.bf16.mxu1 %v4920_v24 }
 0x170   : > { %4002 = vmatpush3.bf16.msra.mxu0 %v4932_v30  ;;  %4026 = vmatpush3.bf16.msra.mxu1 %v4920_v24 }
 0x171   : > { %4004 = vmatprep.subr.bf16.mxu0 %v4938_v33  ;;  %4028 = vmatprep.subr.bf16.mxu1 %v4926_v27 }
 0x174   : > { %4006 = vmatpush3.bf16.msra.mxu0 %v4938_v33  ;;  %4030 = vmatpush3.bf16.msra.mxu1 %v4926_v27 }
 0x175   : > { %4008 = vmatprep.subr.bf16.mxu0 %v4948_v36  ;;  %4032 = vmatprep.subr.bf16.mxu1 %v4932_v30 }
 0x178   : > { %4010 = vmatpush3.bf16.msra.mxu0 %v4948_v36  ;;  %4034 = vmatpush3.bf16.msra.mxu1 %v4932_v30 }
 0x179   : > { %4036 = vmatprep.subr.bf16.mxu1 %v4938_v33  ;;  %4044 = vmatprep.subr.bf16.mxu0 %v4896_v15 }
 0x17b   : > { %3668 = vmatmul.mubr.f32.vlgmr.msra.gmra.mrb[12].mxu0 %v549_v44 }
 0x17c   : > { %4038 = vmatpush3.bf16.msra.mxu1 %v4938_v33  ;;  %4046 = vmatpush3.bf16.msra.mxu0 %v4896_v15 }
 0x17d   : > { %3737 = vmatprep.mubr.f32.mxu0 %v618_v37  ;;  %4040 = vmatprep.subr.bf16.mxu1 %v4948_v36 }
 0x17e   : > { %4048 = vmatprep.subr.bf16.mxu0 %v4903_v18 }
 0x180   : > { %4042 = vmatpush3.bf16.msra.mxu1 %v4948_v36  ;;  %4050 = vmatpush3.bf16.msra.mxu0 %v4903_v18 }
 0x181   : > { %4052 = vmatprep.subr.bf16.mxu0 %v4912_v21  ;;  %4076 = vmatprep.subr.bf16.mxu1 %v4896_v15 }
 0x183   : > { %3703 = vmatmul.mubr.f32.vlgmr.msra.gmra.mrb[12].mxu1 %v783_v51 }
 0x184   : > { %4054 = vmatpush3.bf16.msra.mxu0 %v4912_v21  ;;  %4078 = vmatpush3.bf16.msra.mxu1 %v4896_v15 }
 0x185   : > { %4056 = vmatprep.subr.bf16.mxu0 %v4920_v24  ;;  %4080 = vmatprep.subr.bf16.mxu1 %v4903_v18 }
 0x186   : > { %3772 = vmatprep.mubr.f32.mxu1 %v852_v50 }
 0x188   : > { %4058 = vmatpush3.bf16.msra.mxu0 %v4920_v24  ;;  %4082 = vmatpush3.bf16.msra.mxu1 %v4903_v18 }
 0x189   : > { %4060 = vmatprep.subr.bf16.mxu0 %v4926_v27  ;;  %4084 = vmatprep.subr.bf16.mxu1 %v4912_v21 }
 0x18c   : > { %4062 = vmatpush3.bf16.msra.mxu0 %v4926_v27  ;;  %4086 = vmatpush3.bf16.msra.mxu1 %v4912_v21 }
 0x18d   : > { %4064 = vmatprep.subr.bf16.mxu0 %v4932_v30  ;;  %4088 = vmatprep.subr.bf16.mxu1 %v4920_v24 }
 0x190   : > { %4066 = vmatpush3.bf16.msra.mxu0 %v4932_v30  ;;  %4090 = vmatpush3.bf16.msra.mxu1 %v4920_v24 }
 0x191   : > { %4068 = vmatprep.subr.bf16.mxu0 %v4938_v33  ;;  %4092 = vmatprep.subr.bf16.mxu1 %v4926_v27 }
 0x194   : > { %4070 = vmatpush3.bf16.msra.mxu0 %v4938_v33  ;;  %4094 = vmatpush3.bf16.msra.mxu1 %v4926_v27 }
 0x195   : > { %4072 = vmatprep.subr.bf16.mxu0 %v4948_v36  ;;  %4096 = vmatprep.subr.bf16.mxu1 %v4932_v30 }
 0x198   : > { %4074 = vmatpush3.bf16.msra.mxu0 %v4948_v36  ;;  %4098 = vmatpush3.bf16.msra.mxu1 %v4932_v30 }
 0x199   : > { %4100 = vmatprep.subr.bf16.mxu1 %v4938_v33  ;;  %4108 = vmatprep.subr.bf16.mxu0 %v4896_v15 }
 0x19b   : > { %3738 = vmatmul.mubr.f32.vlgmr.msra.gmra.mrb[14].mxu0 %v4958_v42 }
 0x19c   : > { %4102 = vmatpush3.bf16.msra.mxu1 %v4938_v33  ;;  %4110 = vmatpush3.bf16.msra.mxu0 %v4896_v15 }
 0x19d   : > { %3807 = vmatprep.mubr.f32.mxu0 %v4956_v39  ;;  %4104 = vmatprep.subr.bf16.mxu1 %v4948_v36 }
 0x19e   : > { %4112 = vmatprep.subr.bf16.mxu0 %v4903_v18 }
 0x1a0   : > { %4106 = vmatpush3.bf16.msra.mxu1 %v4948_v36  ;;  %4114 = vmatpush3.bf16.msra.mxu0 %v4903_v18 }
 0x1a1   : > { %4116 = vmatprep.subr.bf16.mxu0 %v4912_v21  ;;  %4140 = vmatprep.subr.bf16.mxu1 %v4896_v15 }
 0x1a3   : > { %3773 = vmatmul.mubr.f32.vlgmr.msra.gmra.mrb[14].mxu1 %v4976_v53 }
 0x1a4   : > { %4118 = vmatpush3.bf16.msra.mxu0 %v4912_v21  ;;  %4142 = vmatpush3.bf16.msra.mxu1 %v4896_v15 }
 0x1a5   : > { %3842 = vmatprep.mubr.f32.mxu1 %v4970_v52  ;;  %4120 = vmatprep.subr.bf16.mxu0 %v4920_v24 }
 0x1a6   : > { %4144 = vmatprep.subr.bf16.mxu1 %v4903_v18 }
 0x1a8   : > { %4122 = vmatpush3.bf16.msra.mxu0 %v4920_v24  ;;  %4146 = vmatpush3.bf16.msra.mxu1 %v4903_v18 }
 0x1a9   : > { %4124 = vmatprep.subr.bf16.mxu0 %v4926_v27  ;;  %4148 = vmatprep.subr.bf16.mxu1 %v4912_v21 }
 0x1ac   : > { %4126 = vmatpush3.bf16.msra.mxu0 %v4926_v27  ;;  %4150 = vmatpush3.bf16.msra.mxu1 %v4912_v21 }
 0x1ad   : > { %4128 = vmatprep.subr.bf16.mxu0 %v4932_v30  ;;  %4152 = vmatprep.subr.bf16.mxu1 %v4920_v24 }
 0x1b0   : > { %4130 = vmatpush3.bf16.msra.mxu0 %v4932_v30  ;;  %4154 = vmatpush3.bf16.msra.mxu1 %v4920_v24 }
 0x1b1   : > { %4132 = vmatprep.subr.bf16.mxu0 %v4938_v33  ;;  %4156 = vmatprep.subr.bf16.mxu1 %v4926_v27 }
 0x1b4   : > { %4134 = vmatpush3.bf16.msra.mxu0 %v4938_v33  ;;  %4158 = vmatpush3.bf16.msra.mxu1 %v4926_v27 }
 0x1b5   : > { %4136 = vmatprep.subr.bf16.mxu0 %v4948_v36  ;;  %4160 = vmatprep.subr.bf16.mxu1 %v4932_v30 }
 0x1b8   : > { %4138 = vmatpush3.bf16.msra.mxu0 %v4948_v36  ;;  %4162 = vmatpush3.bf16.msra.mxu1 %v4932_v30 }
 0x1b9   : > { %4164 = vmatprep.subr.bf16.mxu1 %v4938_v33  ;;  %4172 = vmatprep.subr.bf16.mxu0 %v4896_v15 }
 0x1bb   : > { %3808 = vmatmul.mubr.f32.vlgmr.msra.gmra.mrb[16].mxu0 %v4960_v43 }
 0x1bc   : > { %4166 = vmatpush3.bf16.msra.mxu1 %v4938_v33  ;;  %4174 = vmatpush3.bf16.msra.mxu0 %v4896_v15 }
 0x1bd   : > { %3877 = vmatprep.mubr.f32.mxu0 %v4966_v48  ;;  %4168 = vmatprep.subr.bf16.mxu1 %v4948_v36 }
 0x1be   : > { %4176 = vmatprep.subr.bf16.mxu0 %v4903_v18 }
 0x1c0   : > { %4170 = vmatpush3.bf16.msra.mxu1 %v4948_v36  ;;  %4178 = vmatpush3.bf16.msra.mxu0 %v4903_v18 }
 0x1c1   : > { %4180 = vmatprep.subr.bf16.mxu0 %v4912_v21  ;;  %4204 = vmatprep.subr.bf16.mxu1 %v4896_v15 }
 0x1c3   : > { %3843 = vmatmul.mubr.f32.vlgmr.msra.gmra.mrb[16].mxu1 %v4980_v55 }
 0x1c4   : > { %4182 = vmatpush3.bf16.msra.mxu0 %v4912_v21  ;;  %4206 = vmatpush3.bf16.msra.mxu1 %v4896_v15 }
 0x1c5   : > { %4184 = vmatprep.subr.bf16.mxu0 %v4920_v24  ;;  %4208 = vmatprep.subr.bf16.mxu1 %v4903_v18 }
 0x1c6   : > { %3912 = vmatprep.mubr.f32.mxu1 %v4982_v56 }
 0x1c8   : > { %4186 = vmatpush3.bf16.msra.mxu0 %v4920_v24  ;;  %4210 = vmatpush3.bf16.msra.mxu1 %v4903_v18 }
 0x1c9   : > { %4188 = vmatprep.subr.bf16.mxu0 %v4926_v27  ;;  %4212 = vmatprep.subr.bf16.mxu1 %v4912_v21 }
 0x1cc   : > { %4190 = vmatpush3.bf16.msra.mxu0 %v4926_v27  ;;  %4214 = vmatpush3.bf16.msra.mxu1 %v4912_v21  ;;  %v5180_v21 = vsel %vm1847_vm6, 1.0, %v4632_v0 }
 0x1cd   : > { %4192 = vmatprep.subr.bf16.mxu0 %v4932_v30  ;;  %4216 = vmatprep.subr.bf16.mxu1 %v4920_v24 }
 0x1ce   : > { %1883 = vadd.xlane.f32.xlu1 %v5180_v21 }
 0x1d0   : > { %4194 = vmatpush3.bf16.msra.mxu0 %v4932_v30  ;;  %4218 = vmatpush3.bf16.msra.mxu1 %v4920_v24 }
 0x1d1   : > { %4196 = vmatprep.subr.bf16.mxu0 %v4938_v33  ;;  %4220 = vmatprep.subr.bf16.mxu1 %v4926_v27 }
 0x1d4   : > { %4198 = vmatpush3.bf16.msra.mxu0 %v4938_v33  ;;  %4222 = vmatpush3.bf16.msra.mxu1 %v4926_v27 }
 0x1d5   : > { %4200 = vmatprep.subr.bf16.mxu0 %v4948_v36  ;;  %4224 = vmatprep.subr.bf16.mxu1 %v4932_v30 }
 0x1d8   : > { %4202 = vmatpush3.bf16.msra.mxu0 %v4948_v36  ;;  %4226 = vmatpush3.bf16.msra.mxu1 %v4932_v30 }
 0x1d9   : > { %4228 = vmatprep.subr.bf16.mxu1 %v4938_v33 }
 0x1db   : > { %3878 = vmatmul.mubr.f32.vlgmr.msra.gmra.mrb[18].mxu0 %v4964_v46 }
 0x1dc   : > { %4230 = vmatpush3.bf16.msra.mxu1 %v4938_v33 }
 0x1dd   : > { %4232 = vmatprep.subr.bf16.mxu1 %v4948_v36 }
 0x1e0   : > { %4234 = vmatpush3.bf16.msra.mxu1 %v4948_v36 }
 0x1e3   : > { %3913 = vmatmul.mubr.f32.vlgmr.msra.gmra.mrb[18].mxu1 %v4978_v54 }
 0x22e   : > { %v5112_v57 = vpop.f32.mrb[10].mxu0 }
 0x22f   : > { %v5114_v58 = vpop.f32.mrb[11].mxu0  ;;  %v1723_v1 = vsel %vm1721_vm1, %v5112_v57, 0.0 }
 0x230   : > { %v1722_v5 = vsel %vm1720_vm3, %v5114_v58, 0.0 }
 0x236   : > { %v5116_v59 = vpop.f32.mrb[10].mxu1 }
 0x237   : > { %v5118_v60 = vpop.f32.mrb[11].mxu1  ;;  %v1727_v11 = vsel %vm1721_vm1, %v5116_v59, 0.0 }
 0x238   : > { %v1726_v15 = vsel %vm1720_vm3, %v5118_v60, 0.0 }
 0x24e   : > { %v5133_v63 = vpop.f32.mrb[12].mxu0 }
 0x24f   : > { %v1164_v2 = vmax.f32 %v5112_v57, %v5133_v63  ;;  %v1749_v3 = vsel %vm1747_vm2, %v5133_v63, 0.0  ;;  %v5141_v4 = vpop.f32.mrb[13].mxu0 }
 0x250   : > { %v1751_v6 = vadd.f32 %v1749_v3, %v1723_v1  ;;  %v1163_v7 = vmax.f32 %v5114_v58, %v5141_v4  ;;  %v1748_v8 = vsel %vm1746_vm4, %v5141_v4, 0.0 }
 0x251   : > { %v1750_v9 = vadd.f32 %v1748_v8, %v1722_v5 }
 0x256   : > { %v5151_v10 = vpop.f32.mrb[12].mxu1 }
 0x257   : > { %v1241_v12 = vmax.f32 %v5116_v59, %v5151_v10  ;;  %v1753_v13 = vsel %vm1747_vm2, %v5151_v10, 0.0  ;;  %v5159_v14 = vpop.f32.mrb[13].mxu1 }
 0x258   : > { %v1755_v16 = vadd.f32 %v1753_v13, %v1727_v11  ;;  %v1240_v17 = vmax.f32 %v5118_v60, %v5159_v14  ;;  %v1752_v18 = vsel %vm1746_vm4, %v5159_v14, 0.0 }
 0x259   : > { %v1754_v19 = vadd.f32 %v1752_v18, %v1726_v15 }
 0x26e   : > { %v3739_v22 = vpop.f32.mrb[14].mxu0 }
 0x26f   : > { %v1318_v23 = vmax.f32 %v1164_v2, %v3739_v22  ;;  %v1775_v24 = vsel %vm1773_vm7, %v3739_v22, 0.0  ;;  %v1308_v25 = vpop.f32.mrb[15].mxu0 }
 0x270   : > { %v1777_v26 = vadd.f32 %v1775_v24, %v1751_v6  ;;  %v1317_v27 = vmax.f32 %v1163_v7, %v1308_v25  ;;  %v1774_v28 = vsel %vm1772_vm8, %v1308_v25, 0.0 }
 0x271   : > { %v1776_v29 = vadd.f32 %v1774_v28, %v1750_v9 }
 0x276   : > { %v5185_v30 = vpop.f32.mrb[14].mxu1 }
 0x277   : > { %v1395_v31 = vmax.f32 %v1241_v12, %v5185_v30  ;;  %v1779_v32 = vsel %vm1773_vm7, %v5185_v30, 0.0  ;;  %v5189_v33 = vpop.f32.mrb[15].mxu1 }
 0x278   : > { %v1781_v34 = vadd.f32 %v1779_v32, %v1755_v16  ;;  %v1394_v35 = vmax.f32 %v1240_v17, %v5189_v33  ;;  %v1778_v36 = vsel %vm1772_vm8, %v5189_v33, 0.0 }
 0x279   : > { %v1780_v37 = vadd.f32 %v1778_v36, %v1754_v19 }
 0x28e   : > { %v3809_v38 = vpop.f32.mrb[16].mxu0 }
 0x28f   : > { %v1472_v39 = vmax.f32 %v1318_v23, %v3809_v38  ;;  %v1801_v40 = vsel %vm1799_vm9, %v3809_v38, 0.0  ;;  %v1462_v41 = vpop.f32.mrb[17].mxu0 }
 0x290   : > { %v1803_v42 = vadd.f32 %v1801_v40, %v1777_v26  ;;  %v1471_v43 = vmax.f32 %v1317_v27, %v1462_v41  ;;  %v1800_v44 = vsel %vm1798_vm10, %v1462_v41, 0.0 }
 0x291   : > { %v1802_v45 = vadd.f32 %v1800_v44, %v1776_v29 }
 0x296   : > { %v5195_v46 = vpop.f32.mrb[16].mxu1 }
 0x297   : > { %v1549_v47 = vmax.f32 %v1395_v31, %v5195_v46  ;;  %v1805_v48 = vsel %vm1799_vm9, %v5195_v46, 0.0  ;;  %v5199_v49 = vpop.f32.mrb[17].mxu1 }
 0x298   : > { %v1807_v50 = vadd.f32 %v1805_v48, %v1781_v34  ;;  %v1548_v51 = vmax.f32 %v1394_v35, %v5199_v49  ;;  %v1804_v52 = vsel %vm1798_vm10, %v5199_v49, 0.0 }
 0x299   : > { %v1806_v53 = vadd.f32 %v1804_v52, %v1780_v37 }
 0x2ae   : > { %v3879_v54 = vpop.f32.mrb[18].mxu0 }
 0x2af   : > { %v5204_v55 = vmax.f32 %v1472_v39, %v3879_v54  ;;  %v1827_v56 = vsel %vm1825_vm11, %v3879_v54, 0.0  ;;  %v1616_v1 = vpop.f32.mrb[19].mxu0 }
 0x2b0   : > { %v5208_v2 = vadd.f32 %v1827_v56, %v1803_v42  ;;  %v5210_v3 = vmax.f32 %v1471_v43, %v1616_v1 }
 0x2b1   : > { %v1705_v5 = vsub.f32 %v5112_v57, %v5204_v55  ;;  %v1731_v6 = vsub.f32 %v5133_v63, %v5204_v55  ;;  %v1757_v7 = vsub.f32 %v3739_v22, %v5204_v55  ;;  %v1783_v8 = vsub.f32 %v3809_v38, %v5204_v55 }
 0x2b2   : > { %v1809_v9 = vsub.f32 %v3879_v54, %v5204_v55  ;;  %v1704_v11 = vsub.f32 %v5114_v58, %v5210_v3  ;;  %v1730_v12 = vsub.f32 %v5141_v4, %v5210_v3  ;;  %v1756_v13 = vsub.f32 %v1308_v25, %v5210_v3 }
 0x2b3   : > { %v1708_v15 = vmul.f32 1.442695, %v1705_v5  ;;  %v1734_v16 = vmul.f32 1.442695, %v1731_v6  ;;  %v1782_v57 = vsub.f32 %v1462_v41, %v5210_v3  ;;  %v1826_v63 = vsel %vm1824_vm12, %v1616_v1, 0.0 }
 0x2b4   : > { %v1760_v17 = vmul.f32 1.442695, %v1757_v7  ;;  %v1808_v18 = vsub.f32 %v1616_v1, %v5210_v3  ;;  %v1786_v19 = vmul.f32 1.442695, %v1783_v8  ;;  %v1812_v22 = vmul.f32 1.442695, %v1809_v9 }
 0x2b5   : > { %4333 = vpow2.f32 %v1708_v15  ;;  %v1706_v58 = vmul.f32 1.442695, %v1704_v11  ;;  %v5229_v23 = vadd.f32 %v1826_v63, %v1802_v45  ;;  %v1732_v24 = vmul.f32 1.442695, %v1730_v12 }
 0x2b6   : > { %4335 = vpow2.f32 %v1734_v16  ;;  %v3914_v4 = vpop.f32.mrb[18].mxu1  ;;  %v1758_v25 = vmul.f32 1.442695, %v1756_v13  ;;  %v1784_v29 = vmul.f32 1.442695, %v1782_v57 }
 0x2b7   : > { %v5231_v26 = vmax.f32 %v1549_v47, %v3914_v4  ;;  %v1831_v27 = vsel %vm1825_vm11, %v3914_v4, 0.0  ;;  %v1693_v28 = vpop.f32.mrb[19].mxu1  ;;  %4337 = vpow2.f32 %v1760_v17  ;;  %v1810_v41 = vmul.f32 1.442695, %v1808_v18 }
 0x2b8   : > { %v5235_v31 = vmax.f32 %v1548_v51, %v1693_v28  ;;  %v5237_v32 = vadd.f32 %v1831_v27, %v1807_v50  ;;  %4339 = vpow2.f32 %v1786_v19 }
 0x2b9   : > { %v1713_v34 = vsub.f32 %v5116_v59, %v5231_v26  ;;  %v1739_v35 = vsub.f32 %v5151_v10, %v5231_v26  ;;  %v1765_v36 = vsub.f32 %v5185_v30, %v5231_v26  ;;  %4341 = vpow2.f32 %v1706_v58 }
 0x2ba   : > { %v1791_v37 = vsub.f32 %v5195_v46, %v5231_v26  ;;  %v1817_v38 = vsub.f32 %v3914_v4, %v5231_v26  ;;  %v1712_v39 = vsub.f32 %v5118_v60, %v5235_v31  ;;  %4343 = vpow2.f32 %v1732_v24 }
 0x2bb   : > { %v1716_v40 = vmul.f32 1.442695, %v1713_v34  ;;  %v1830_v59 = vsel %vm1824_vm12, %v1693_v28, 0.0  ;;  %4345 = vpow2.f32 %v1812_v22  ;;  %v1742_v10 = vmul.f32 1.442695, %v1739_v35 }
 0x2bc   : > { %4347 = vpow2.f32 %v1758_v25  ;;  %v1738_v30 = vsub.f32 %v5159_v14, %v5235_v31  ;;  %v1764_v42 = vsub.f32 %v5189_v33, %v5235_v31  ;;  %v1790_v43 = vsub.f32 %v5199_v49, %v5235_v31 }
 0x2bd   : > { %4349 = vpow2.f32 %v1784_v29  ;;  %v1768_v60 = vmul.f32 1.442695, %v1765_v36  ;;  %v1816_v44 = vsub.f32 %v1693_v28, %v5235_v31  ;;  %v5259_v45 = vadd.f32 %v1830_v59, %v1806_v53 }
 0x2be   : > { %4351 = vpow2.f32 %v1716_v40  ;;  %v1714_v47 = vmul.f32 1.442695, %v1712_v39  ;;  %v1740_v50 = vmul.f32 1.442695, %v1738_v30  ;;  %v1820_v14 = vmul.f32 1.442695, %v1817_v38 }
 0x2bf   : > { %v4334_v46 = vpop.eup %4333  ;;  %4353 = vpow2.f32 %v1742_v10  ;;  %v1766_v33 = vmul.f32 1.442695, %v1764_v42  ;;  %v1792_v56 = vmul.f32 1.442695, %v1790_v43  ;;  %v1794_v5 = vmul.f32 1.442695, %v1791_v37 }
 0x2c0   : > { %v4336_v48 = vpop.eup %4335  ;;  %4355 = vpow2.f32 %v1810_v41  ;;  %v1818_v9 = vmul.f32 1.442695, %v1816_v44 }
 0x2c1   : > { %v1737_v51 = vadd.f32 %v4336_v48, %v4334_v46  ;;  %v4338_v52 = vpop.eup %4337  ;;  %4357 = vpow2.f32 %v1768_v60 }
 0x2c2   : > { %v4340_v54 = vpop.eup %4339  ;;  %4359 = vpow2.f32 %v1714_v47 }
 0x2c3   : > { %v1763_v49 = vadd.f32 %v4338_v52, %v1737_v51  ;;  %v4342_v1 = vpop.eup %4341  ;;  %4361 = vpow2.f32 %v1740_v50 }
 0x2c4   : > { %v4344_v53 = vpop.eup %4343  ;;  %4363 = vpow2.f32 %v1820_v14 }
 0x2c5   : > { %v1789_v6 = vadd.f32 %v4340_v54, %v1763_v49  ;;  %v4346_v7 = vpop.eup %4345  ;;  %v1736_v8 = vadd.f32 %v4344_v53, %v4342_v1  ;;  %4365 = vpow2.f32 %v1766_v33 }
 0x2c6   : > { %v4348_v11 = vpop.eup %4347  ;;  %4367 = vpow2.f32 %v1792_v56 }
 0x2c7   : > { %v1815_v12 = vadd.f32 %v4346_v7, %v1789_v6  ;;  %v4350_v13 = vpop.eup %4349  ;;  %v1762_v15 = vadd.f32 %v4348_v11, %v1736_v8  ;;  %4369 = vpow2.f32 %v1794_v5 }
 0x2c8   : > { %v4352_v16 = vpop.eup %4351 }
 0x2c9   : > { %4371 = vlog2.f32 %v1815_v12  ;;  %v4354_v57 = vpop.eup %4353  ;;  %v1788_v63 = vadd.f32 %v4350_v13, %v1762_v15 }
 0x2ca   : > { %4373 = vpow2.f32 %v1818_v9  ;;  %v4356_v17 = vpop.eup %4355  ;;  %v1745_v18 = vadd.f32 %v4354_v57, %v4352_v16 }
 0x2cb   : > { %v4358_v19 = vpop.eup %4357  ;;  %v1814_v22 = vadd.f32 %v4356_v17, %v1788_v63 }
 0x2cc   : > { %v4360_v58 = vpop.eup %4359  ;;  %v1771_v4 = vadd.f32 %v4358_v19, %v1745_v18 }
 0x2cd   : > { %v4362_v24 = vpop.eup %4361  ;;  %4375 = vlog2.f32 %v1814_v22 }
 0x2ce   : > { %v4364_v25 = vpop.eup %4363  ;;  %v1744_v27 = vadd.f32 %v4362_v24, %v4360_v58 }
 0x2cf   : > { %v4366_v28 = vpop.eup %4365 }
 0x2d0   : > { %v4368_v29 = vpop.eup %4367  ;;  %v1770_v34 = vadd.f32 %v4366_v28, %v1744_v27 }
 0x2d1   : > { %v4370_v35 = vpop.eup %4369 }
 0x2d2   : > { %v1797_v37 = vadd.f32 %v4370_v35, %v1771_v4  ;;  %v1796_v38 = vadd.f32 %v4368_v29, %v1770_v34 }
 0x2d3   : > { %v4372_v36 = vpop.eup %4371 }
 0x2d4   : > { %v4374_v39 = vpop.eup %4373  ;;  %v1837_v40 = vmul.f32 0.6931472, %v4372_v36  ;;  %v1823_v59 = vadd.f32 %v4364_v25, %v1797_v37 }
 0x2d5   : > { %v1822_v41 = vadd.f32 %v4374_v39, %v1796_v38 }
 0x2d6   : > { %v1839_v10 = vadd.f32 %v1837_v40, %v5204_v55  ;;  %4377 = vlog2.f32 %v1823_v59 }
 0x2d7   : > { %v4376_v30 = vpop.eup %4375  ;;  %4379 = vlog2.f32 %v1822_v41 }
 0x2d8   : > { %v1853_v42 = vsub.f32 %v1839_v10, %v5208_v2  ;;  %v1857_v43 = vsub.f32 %v5208_v2, %v1839_v10  ;;  %v1835_v60 = vmul.f32 0.6931472, %v4376_v30 }
 0x2da   : > { %1855 = vst [vmem:[%s5267_s14 + $0x8] sm:$0xff] %v1853_v42  ;;  %v1860_v44 = vmul.f32 1.442695, %v1857_v43  ;;  %v1838_v46 = vadd.f32 %v1835_v60, %v5210_v3 }
 0x2dc   : > { %4381 = vpow2.f32 %v1860_v44  ;;  %v1852_v55 = vsub.f32 %v1838_v46, %v5229_v23  ;;  %v1856_v47 = vsub.f32 %v5229_v23, %v1838_v46 }
 0x2de   : > { %1854 = vst [vmem:[%s5267_s14] sm:$0xff] %v1852_v55  ;;  %v1858_v48 = vmul.f32 1.442695, %v1856_v47 }
 0x2e0   : > { %v4378_v2 = vpop.eup %4377  ;;  %4383 = vpow2.f32 %v1858_v48 }
 0x2e1   : > { %v4380_v50 = vpop.eup %4379  ;;  %v1843_v51 = vmul.f32 0.6931472, %v4378_v2 }
 0x2e2   : > { %v1841_v14 = vmul.f32 0.6931472, %v4380_v50 }
 0x2e3   : > { %v1845_v52 = vadd.f32 %v1843_v51, %v5231_v26 }
 0x2e4   : > { %v1844_v33 = vadd.f32 %v1841_v14, %v5235_v31 }
 0x2e5   : > { %v1867_v3 = vsub.f32 %v1845_v52, %v5237_v32 }
 0x2e6   : > { %v4382_v54 = vpop.eup %4381  ;;  %v1866_v23 = vsub.f32 %v1844_v33, %v5259_v45 }
 0x2e7   : > { %v5279_v49 = vsel %vm1847_vm6, %v4382_v54, 2.0  ;;  %v1869_v26 = vmul.f32 %v5180_v21, %v1867_v3 }
 0x2e8   : > { %1865 = vst [vmem:[%s5284_s12 + $0x8] sm:$0xff] %v5279_v49  ;;  %vm1904_vm13 = vcmp.le.f32.partialorder %v5279_v49, 0.7  ;;  %vm1922_vm14 = vcmp.le.f32.partialorder %v5279_v49, 0.7047619  ;;  %v1868_v45 = vmul.f32 %v5173_v20, %v1866_v23 }
 0x2e9   : > { %v1906_v31 = vsel %vm1904_vm13, 1.0, %v4632_v0  ;;  %1872 = vadd.xlane.f32.xlu0 %v1869_v26  ;;  %v1924_v21 = vsel %vm1922_vm14, 1.0, %v4632_v0  ;;  %vm1939_vm0 = vcmp.le.f32.partialorder %v5279_v49, 0.7095238  ;;  %vm1957_vm2 = vcmp.le.f32.partialorder %v5279_v49, 0.71428573 }
 0x2ea   : > { %1909 = vadd.xlane.f32.xlu1 %v1906_v31  ;;  %v4384_v61 = vpop.eup %4383  ;;  %v1941_v1 = vsel %vm1939_vm0, 1.0, %v4632_v0  ;;  %v1959_v20 = vsel %vm1957_vm2, 1.0, %v4632_v0  ;;  %vm1975_vm4 = vcmp.le.f32.partialorder %v5279_v49, 0.7190476  ;;  %vm1993_vm6 = vcmp.le.f32.partialorder %v5279_v49, 0.72380954 }
 0x2eb   : > { %v5294_v32 = vsel %vm1846_vm5, %v4384_v61, 2.0  ;;  %v1977_v53 = vsel %vm1975_vm4, 1.0, %v4632_v0  ;;  %v1995_v7 = vsel %vm1993_vm6, 1.0, %v4632_v0  ;;  %vm2011_vm8 = vcmp.le.f32.partialorder %v5279_v49, 0.7285714 }
 0x2ec   : > { %1864 = vst [vmem:[%s5284_s12] sm:$0xff] %v5294_v32  ;;  %vm1903_vm15 = vcmp.le.f32.partialorder %v5294_v32, 0.7  ;;  %vm1921_vm1 = vcmp.le.f32.partialorder %v5294_v32, 0.7047619  ;;  %vm1938_vm3 = vcmp.le.f32.partialorder %v5294_v32, 0.7095238 }
 0x2ed   : > { %1870 = vadd.xlane.f32.xlu0 %v1868_v45  ;;  %v1905_v56 = vsel %vm1903_vm15, 1.0, %v4632_v0  ;;  %v1923_v62 = vsel %vm1921_vm1, 1.0, %v4632_v0  ;;  %v1940_v5 = vsel %vm1938_vm3, 1.0, %v4632_v0  ;;  %vm1956_vm5 = vcmp.le.f32.partialorder %v5294_v32, 0.71428573 }
 0x2ee   : > { %1927 = vadd.xlane.f32.xlu1 %v1924_v21  ;;  %v1958_v6 = vsel %vm1956_vm5, 1.0, %v4632_v0  ;;  %vm1974_vm7 = vcmp.le.f32.partialorder %v5294_v32, 0.7190476  ;;  %v2013_v9 = vsel %vm2011_vm8, 1.0, %v4632_v0  ;;  %vm1992_vm9 = vcmp.le.f32.partialorder %v5294_v32, 0.72380954 }
 0x2ef   : > { %v1976_v8 = vsel %vm1974_vm7, 1.0, %v4632_v0  ;;  %vm2029_vm10 = vcmp.le.f32.partialorder %v5279_v49, 0.73333335  ;;  %v1994_v11 = vsel %vm1992_vm9, 1.0, %v4632_v0  ;;  %vm2010_vm11 = vcmp.le.f32.partialorder %v5294_v32, 0.7285714 }
 0x2f0   : > { %v2031_v12 = vsel %vm2029_vm10, 1.0, %v4632_v0  ;;  %vm2047_vm12 = vcmp.le.f32.partialorder %v5279_v49, 0.7380952  ;;  %v2012_v13 = vsel %vm2010_vm11, 1.0, %v4632_v0  ;;  %vm2028_vm13 = vcmp.le.f32.partialorder %v5294_v32, 0.73333335 }
 0x2f1   : > { %1907 = vadd.xlane.f32.xlu0 %v1905_v56  ;;  %v2049_v15 = vsel %vm2047_vm12, 1.0, %v4632_v0  ;;  %vm2065_vm14 = vcmp.le.f32.partialorder %v5279_v49, 0.74285716  ;;  %v2030_v16 = vsel %vm2028_vm13, 1.0, %v4632_v0  ;;  %vm2046_vm15 = vcmp.le.f32.partialorder %v5294_v32, 0.7380952 }
 0x2f2   : > { %1944 = vadd.xlane.f32.xlu1 %v1941_v1  ;;  %v2067_v57 = vsel %vm2065_vm14, 1.0, %v4632_v0  ;;  %vm2083_vm0 = vcmp.le.f32.partialorder %v5279_v49, 0.74761903  ;;  %v2048_v63 = vsel %vm2046_vm15, 1.0, %v4632_v0  ;;  %vm2064_vm1 = vcmp.le.f32.partialorder %v5294_v32, 0.74285716  ;;  %v1882_v1 = vpop.xlane.xlu1 %1881 }
 0x2f3   : > { %v2085_v17 = vsel %vm2083_vm0, 1.0, %v4632_v0  ;;  %vm2101_vm2 = vcmp.le.f32.partialorder %v5279_v49, 0.75238097  ;;  %v2066_v18 = vsel %vm2064_vm1, 1.0, %v4632_v0  ;;  %vm2082_vm3 = vcmp.le.f32.partialorder %v5294_v32, 0.74761903 }
 0x2f4   : > { %v2103_v19 = vsel %vm2101_vm2, 1.0, %v4632_v0  ;;  %vm2119_vm4 = vcmp.le.f32.partialorder %v5279_v49, 0.75714284  ;;  %v2084_v22 = vsel %vm2082_vm3, 1.0, %v4632_v0  ;;  %vm2100_vm5 = vcmp.le.f32.partialorder %v5294_v32, 0.75238097 }
 0x2f5   : > { %1925 = vadd.xlane.f32.xlu0 %v1923_v62  ;;  %v2121_v58 = vsel %vm2119_vm4, 1.0, %v4632_v0  ;;  %vm2137_vm6 = vcmp.le.f32.partialorder %v5279_v49, 0.7619048  ;;  %v2102_v4 = vsel %vm2100_vm5, 1.0, %v4632_v0  ;;  %vm2118_vm7 = vcmp.le.f32.partialorder %v5294_v32, 0.75714284 }
 0x2f6   : > { %1962 = vadd.xlane.f32.xlu1 %v1959_v20  ;;  %v2139_v24 = vsel %vm2137_vm6, 1.0, %v4632_v0  ;;  %vm2155_vm8 = vcmp.le.f32.partialorder %v5279_v49, 0.76666665  ;;  %v2120_v25 = vsel %vm2118_vm7, 1.0, %v4632_v0  ;;  %vm2136_vm9 = vcmp.le.f32.partialorder %v5294_v32, 0.7619048 }
 0x2f7   : > { %v2157_v27 = vsel %vm2155_vm8, 1.0, %v4632_v0  ;;  %vm2173_vm10 = vcmp.le.f32.partialorder %v5279_v49, 0.7714286  ;;  %v2138_v28 = vsel %vm2136_vm9, 1.0, %v4632_v0  ;;  %vm2154_vm11 = vcmp.le.f32.partialorder %v5294_v32, 0.76666665 }
 0x2f8   : > { %v2175_v29 = vsel %vm2173_vm10, 1.0, %v4632_v0  ;;  %vm2191_vm12 = vcmp.le.f32.partialorder %v5279_v49, 0.77619046  ;;  %v2156_v34 = vsel %vm2154_vm11, 1.0, %v4632_v0  ;;  %vm2172_vm13 = vcmp.le.f32.partialorder %v5294_v32, 0.7714286 }
 0x2f9   : > { %1942 = vadd.xlane.f32.xlu0 %v1940_v5  ;;  %v2193_v35 = vsel %vm2191_vm12, 1.0, %v4632_v0  ;;  %vm2209_vm14 = vcmp.le.f32.partialorder %v5279_v49, 0.7809524  ;;  %v2174_v36 = vsel %vm2172_vm13, 1.0, %v4632_v0  ;;  %vm2190_vm15 = vcmp.le.f32.partialorder %v5294_v32, 0.77619046  ;;  %v1884_v5 = vpop.xlane.xlu1 %1883 }
 0x2fa   : > { %1980 = vadd.xlane.f32.xlu1 %v1977_v53  ;;  %v2211_v37 = vsel %vm2209_vm14, 1.0, %v4632_v0  ;;  %vm2227_vm0 = vcmp.le.f32.partialorder %v5279_v49, 0.78571427  ;;  %v2192_v38 = vsel %vm2190_vm15, 1.0, %v4632_v0  ;;  %vm2208_vm1 = vcmp.le.f32.partialorder %v5294_v32, 0.7809524 }
 0x2fb   : > { %v2229_v39 = vsel %vm2227_vm0, 1.0, %v4632_v0  ;;  %vm2245_vm2 = vcmp.le.f32.partialorder %v5279_v49, 0.7904762  ;;  %v2210_v40 = vsel %vm2208_vm1, 1.0, %v4632_v0  ;;  %vm2226_vm3 = vcmp.le.f32.partialorder %v5294_v32, 0.78571427 }
 0x2fc   : > { %v2247_v59 = vsel %vm2245_vm2, 1.0, %v4632_v0  ;;  %vm2263_vm4 = vcmp.le.f32.partialorder %v5279_v49, 0.7952381  ;;  %v2228_v41 = vsel %vm2226_vm3, 1.0, %v4632_v0  ;;  %vm2244_vm5 = vcmp.le.f32.partialorder %v5294_v32, 0.7904762 }
 0x2fd   : > { %1960 = vadd.xlane.f32.xlu0 %v1958_v6  ;;  %v2265_v10 = vsel %vm2263_vm4, 1.0, %v4632_v0  ;;  %vm2281_vm6 = vcmp.le.f32.partialorder %v5279_v49, 0.8  ;;  %v2246_v30 = vsel %vm2244_vm5, 1.0, %v4632_v0  ;;  %vm2262_vm7 = vcmp.le.f32.partialorder %v5294_v32, 0.7952381 }
 0x2fe   : > { %1998 = vadd.xlane.f32.xlu1 %v1995_v7  ;;  %v2283_v42 = vsel %vm2281_vm6, 1.0, %v4632_v0  ;;  %vm2299_vm8 = vcmp.le.f32.partialorder %v5279_v49, 0.8047619  ;;  %v2264_v43 = vsel %vm2262_vm7, 1.0, %v4632_v0  ;;  %vm2280_vm9 = vcmp.le.f32.partialorder %v5294_v32, 0.8 }
 0x2ff   : > { %v2301_v60 = vsel %vm2299_vm8, 1.0, %v4632_v0  ;;  %vm2317_vm10 = vcmp.le.f32.partialorder %v5279_v49, 0.8095238  ;;  %v2282_v44 = vsel %vm2280_vm9, 1.0, %v4632_v0  ;;  %vm2298_vm11 = vcmp.le.f32.partialorder %v5294_v32, 0.8047619 }
 0x300   : > { %v2319_v46 = vsel %vm2317_vm10, 1.0, %v4632_v0  ;;  %vm2335_vm12 = vcmp.le.f32.partialorder %v5279_v49, 0.8142857  ;;  %v2300_v55 = vsel %vm2298_vm11, 1.0, %v4632_v0  ;;  %vm2316_vm13 = vcmp.le.f32.partialorder %v5294_v32, 0.8095238 }
 0x301   : > { %1978 = vadd.xlane.f32.xlu0 %v1976_v8  ;;  %v2337_v47 = vsel %vm2335_vm12, 1.0, %v4632_v0  ;;  %vm2353_vm14 = vcmp.le.f32.partialorder %v5279_v49, 0.81904763  ;;  %v2318_v48 = vsel %vm2316_vm13, 1.0, %v4632_v0  ;;  %vm2334_vm15 = vcmp.le.f32.partialorder %v5294_v32, 0.8142857 }
 0x302   : > { %2016 = vadd.xlane.f32.xlu1 %v2013_v9  ;;  %v2355_v2 = vsel %vm2353_vm14, 1.0, %v4632_v0  ;;  %vm2371_vm0 = vcmp.le.f32.partialorder %v5279_v49, 0.8238095  ;;  %v2336_v50 = vsel %vm2334_vm15, 1.0, %v4632_v0  ;;  %vm2352_vm1 = vcmp.le.f32.partialorder %v5294_v32, 0.81904763 }
 0x303   : > { %v2373_v51 = vsel %vm2371_vm0, 1.0, %v4632_v0  ;;  %vm2389_vm2 = vcmp.le.f32.partialorder %v5279_v49, 0.82857144  ;;  %v2354_v14 = vsel %vm2352_vm1, 1.0, %v4632_v0  ;;  %vm2370_vm3 = vcmp.le.f32.partialorder %v5294_v32, 0.8238095 }
 0x304   : > { %v2391_v52 = vsel %vm2389_vm2, 1.0, %v4632_v0  ;;  %vm2407_vm4 = vcmp.le.f32.partialorder %v5279_v49, 0.8333333  ;;  %v2372_v33 = vsel %vm2370_vm3, 1.0, %v4632_v0  ;;  %vm2388_vm5 = vcmp.le.f32.partialorder %v5294_v32, 0.82857144 }
 0x305   : > { %1996 = vadd.xlane.f32.xlu0 %v1994_v11  ;;  %v2409_v54 = vsel %vm2407_vm4, 1.0, %v4632_v0  ;;  %vm2425_vm6 = vcmp.le.f32.partialorder %v5279_v49, 0.83809525  ;;  %v2390_v3 = vsel %vm2388_vm5, 1.0, %v4632_v0  ;;  %vm2406_vm7 = vcmp.le.f32.partialorder %v5294_v32, 0.8333333 }
 0x306   : > { %2034 = vadd.xlane.f32.xlu1 %v2031_v12  ;;  %v2427_v23 = vsel %vm2425_vm6, 1.0, %v4632_v0  ;;  %vm2443_vm8 = vcmp.le.f32.partialorder %v5279_v49, 0.8428571  ;;  %v2408_v26 = vsel %vm2406_vm7, 1.0, %v4632_v0  ;;  %vm2424_vm9 = vcmp.le.f32.partialorder %v5294_v32, 0.83809525 }
 0x307   : > { %v2445_v31 = vsel %vm2443_vm8, 1.0, %v4632_v0  ;;  %vm2461_vm10 = vcmp.le.f32.partialorder %v5279_v49, 0.84761906  ;;  %v2426_v61 = vsel %vm2424_vm9, 1.0, %v4632_v0  ;;  %vm2442_vm11 = vcmp.le.f32.partialorder %v5294_v32, 0.8428571 }
 0x308   : > { %v2463_v45 = vsel %vm2461_vm10, 1.0, %v4632_v0  ;;  %vm2479_vm12 = vcmp.le.f32.partialorder %v5279_v49, 0.85238093  ;;  %v2444_v21 = vsel %vm2442_vm11, 1.0, %v4632_v0  ;;  %vm2460_vm13 = vcmp.le.f32.partialorder %v5294_v32, 0.84761906 }
 0x309   : > { %2014 = vadd.xlane.f32.xlu0 %v2012_v13  ;;  %v2481_v56 = vsel %vm2479_vm12, 1.0, %v4632_v0  ;;  %vm2497_vm14 = vcmp.le.f32.partialorder %v5279_v49, 0.85714287  ;;  %v2462_v62 = vsel %vm2460_vm13, 1.0, %v4632_v0  ;;  %vm2478_vm15 = vcmp.le.f32.partialorder %v5294_v32, 0.85238093 }
 0x30a   : > { %2052 = vadd.xlane.f32.xlu1 %v2049_v15  ;;  %v2499_v20 = vsel %vm2497_vm14, 1.0, %v4632_v0  ;;  %vm2515_vm0 = vcmp.le.f32.partialorder %v5279_v49, 0.86190474  ;;  %v2480_v53 = vsel %vm2478_vm15, 1.0, %v4632_v0  ;;  %vm2496_vm1 = vcmp.le.f32.partialorder %v5294_v32, 0.85714287 }
 0x30b   : > { %v2517_v6 = vsel %vm2515_vm0, 1.0, %v4632_v0  ;;  %vm2533_vm2 = vcmp.le.f32.partialorder %v5279_v49, 0.8666667  ;;  %v1885_v7 = vadd.f32 %v1884_v5, %v1882_v1  ;;  %v2498_v8 = vsel %vm2496_vm1, 1.0, %v4632_v0 }
 0x30c   : > { %v2535_v9 = vsel %vm2533_vm2, 1.0, %v4632_v0  ;;  %vm2514_vm3 = vcmp.le.f32.partialorder %v5294_v32, 0.86190474  ;;  %vm2551_vm4 = vcmp.le.f32.partialorder %v5279_v49, 0.87142855 }
 0x30d   : > { %2032 = vadd.xlane.f32.xlu0 %v2030_v16  ;;  %v1886_v11 = vrot.slane %v1885_v7, 4  ;;  %v2516_v15 = vsel %vm2514_vm3, 1.0, %v4632_v0  ;;  %v2553_v16 = vsel %vm2551_vm4, 1.0, %v4632_v0  ;;  %vm2532_vm5 = vcmp.le.f32.partialorder %v5294_v32, 0.8666667 }
 0x30e   : > { %2070 = vadd.xlane.f32.xlu1 %v2067_v57  ;;  %vm2569_vm6 = vcmp.le.f32.partialorder %v5279_v49, 0.8761905  ;;  %vm2550_vm7 = vcmp.le.f32.partialorder %v5294_v32, 0.87142855  ;;  %vm2587_vm8 = vcmp.le.f32.partialorder %v5279_v49, 0.88095236 }
 0x30f   : > { %v1887_v57 = vadd.f32 %v1886_v11, %v1885_v7  ;;  %vm2568_vm9 = vcmp.le.f32.partialorder %v5294_v32, 0.8761905  ;;  %vm2605_vm10 = vcmp.le.f32.partialorder %v5279_v49, 0.8857143  ;;  %vm2586_vm13 = vcmp.le.f32.partialorder %v5294_v32, 0.88095236 }
 0x310   : > { %vm2623_vm14 = vcmp.le.f32.partialorder %v5279_v49, 0.89047617  ;;  %vm2604_vm2 = vcmp.le.f32.partialorder %v5294_v32, 0.8857143  ;;  %vm2641_vm3 = vcmp.le.f32.partialorder %v5279_v49, 0.8952381 }
 0x311   : > { %2050 = vadd.xlane.f32.xlu0 %v2048_v63  ;;  %v1892_v63 = vlaneseq }
 0x312   : > { %2088 = vadd.xlane.f32.xlu1 %v2085_v17 }
 0x315   : > { %2068 = vadd.xlane.f32.xlu0 %v2066_v18 }
 0x316   : > { %2106 = vadd.xlane.f32.xlu1 %v2103_v19 }
 0x319   : > { %2086 = vadd.xlane.f32.xlu0 %v2084_v22  ;;  %v2534_v22 = vsel %vm2532_vm5, 1.0, %v4632_v0 }
 0x31a   : > { %2124 = vadd.xlane.f32.xlu1 %v2121_v58  ;;  %v2571_v58 = vsel %vm2569_vm6, 1.0, %v4632_v0  ;;  %vm2622_vm6 = vcmp.le.f32.partialorder %v5294_v32, 0.89047617 }
 0x31d   : > { %2104 = vadd.xlane.f32.xlu0 %v2102_v4 }
 0x31e   : > { %2142 = vadd.xlane.f32.xlu1 %v2139_v24  ;;  %v1888_v24 = vrot.slane %v1887_v57, 2 }
 0x321   : > { %2122 = vadd.xlane.f32.xlu0 %v2120_v25  ;;  %v5446_v25 = vshrl.u32 %v1892_v63, 7 }
 0x322   : > { %2160 = vadd.xlane.f32.xlu1 %v2157_v27 }
 0x323   : > { %vm1896_vm11 = vcmp.eq.s32.totalorder %v5446_v25, 0  ;;  %vm1918_vm1 = vcmp.eq.s32.totalorder %v5446_v25, 1 }
 0x325   : > { %2140 = vadd.xlane.f32.xlu0 %v2138_v28 }
 0x326   : > { %2178 = vadd.xlane.f32.xlu1 %v2175_v29  ;;  %v5448_v29 = vand.u32 127, %v1892_v63 }
 0x328   : > { %vm1897_vm12 = vcmp.eq.s32.totalorder %v5448_v29, 0  ;;  %vm1900_vm0 = vcmp.eq.s32.totalorder %v5448_v29, 1 }
 0x329   : > { %2158 = vadd.xlane.f32.xlu0 %v2156_v34  ;;  %vm5464_vm15 = vmand %vm1896_vm11, %vm1897_vm12 }
 0x32a   : > { %2196 = vadd.xlane.f32.xlu1 %v2193_v35  ;;  %vm5480_vm4 = vmand %vm1896_vm11, %vm1900_vm0  ;;  %vm2677_vm11 = vcmp.le.f32.partialorder %v5279_v49, 0.9047619 }
 0x32b   : > { %vm5490_vm5 = vmand %vm1918_vm1, %vm1897_vm12 }
 0x32d   : > { %2176 = vadd.xlane.f32.xlu0 %v2174_v36  ;;  %v2552_v36 = vsel %vm2550_vm7, 1.0, %v4632_v0  ;;  %vm2659_vm7 = vcmp.le.f32.partialorder %v5279_v49, 0.9 }
 0x32e   : > { %2214 = vadd.xlane.f32.xlu1 %v2211_v37  ;;  %v2589_v37 = vsel %vm2587_vm8, 1.0, %v4632_v0  ;;  %vm1936_vm8 = vmand %vm1918_vm1, %vm1900_vm0 }
 0x331   : > { %2194 = vadd.xlane.f32.xlu0 %v2192_v38 }
 0x332   : > { %2232 = vadd.xlane.f32.xlu1 %v2229_v39 }
 0x335   : > { %2212 = vadd.xlane.f32.xlu0 %v2210_v40  ;;  %v1889_v40 = vadd.f32 %v1888_v24, %v1887_v57 }
 0x336   : > { %2250 = vadd.xlane.f32.xlu1 %v2247_v59 }
 0x339   : > { %2230 = vadd.xlane.f32.xlu0 %v2228_v41 }
 0x33a   : > { %2268 = vadd.xlane.f32.xlu1 %v2265_v10 }
 0x33d   : > { %2248 = vadd.xlane.f32.xlu0 %v2246_v30 }
 0x33e   : > { %2286 = vadd.xlane.f32.xlu1 %v2283_v42 }
 0x341   : > { %2266 = vadd.xlane.f32.xlu0 %v2264_v43  ;;  %v2570_v43 = vsel %vm2568_vm9, 1.0, %v4632_v0  ;;  %vm1953_vm9 = vcmp.eq.s32.totalorder %v5448_v29, 2 }
 0x342   : > { %2304 = vadd.xlane.f32.xlu1 %v2301_v60  ;;  %v2607_v60 = vsel %vm2605_vm10, 1.0, %v4632_v0  ;;  %vm2640_vm10 = vcmp.le.f32.partialorder %v5294_v32, 0.8952381  ;;  %vm5523_vm12 = vmand %vm1918_vm1, %vm1953_vm9 }
 0x345   : > { %2284 = vadd.xlane.f32.xlu0 %v2282_v44 }
 0x346   : > { %2322 = vadd.xlane.f32.xlu1 %v2319_v46 }
 0x349   : > { %2302 = vadd.xlane.f32.xlu0 %v2300_v55 }
 0x34a   : > { %2340 = vadd.xlane.f32.xlu1 %v2337_v47  ;;  %v1890_v47 = vrot.slane %v1889_v40, 1 }
 0x34d   : > { %2320 = vadd.xlane.f32.xlu0 %v2318_v48 }
 0x34e   : > { %2358 = vadd.xlane.f32.xlu1 %v2355_v2 }
 0x351   : > { %2338 = vadd.xlane.f32.xlu0 %v2336_v50 }
 0x352   : > { %2376 = vadd.xlane.f32.xlu1 %v2373_v51 }
 0x355   : > { %2356 = vadd.xlane.f32.xlu0 %v2354_v14 }
 0x356   : > { %2394 = vadd.xlane.f32.xlu1 %v2391_v52 }
 0x359   : > { %2374 = vadd.xlane.f32.xlu0 %v2372_v33 }
 0x35a   : > { %2412 = vadd.xlane.f32.xlu1 %v2409_v54  ;;  %v2588_v54 = vsel %vm2586_vm13, 1.0, %v4632_v0  ;;  %vm1971_vm13 = vcmp.eq.s32.totalorder %v5448_v29, 3 }
 0x35b   : > { %vm1972_vm0 = vmand %vm1918_vm1, %vm1971_vm13 }
 0x35d   : > { %2392 = vadd.xlane.f32.xlu0 %v2390_v3  ;;  %v2625_v3 = vsel %vm2623_vm14, 1.0, %v4632_v0  ;;  %vm2658_vm14 = vcmp.le.f32.partialorder %v5294_v32, 0.9 }
 0x35e   : > { %2430 = vadd.xlane.f32.xlu1 %v2427_v23 }
 0x361   : > { %2410 = vadd.xlane.f32.xlu0 %v2408_v26 }
 0x362   : > { %2448 = vadd.xlane.f32.xlu1 %v2445_v31 }
 0x365   : > { %2428 = vadd.xlane.f32.xlu0 %v2426_v61 }
 0x366   : > { %2466 = vadd.xlane.f32.xlu1 %v2463_v45 }
 0x369   : > { %2446 = vadd.xlane.f32.xlu0 %v2444_v21  ;;  %v1891_v21 = vadd.f32 %v1890_v47, %v1889_v40 }
 0x36a   : > { %2484 = vadd.xlane.f32.xlu1 %v2481_v56 }
 0x36d   : > { %2464 = vadd.xlane.f32.xlu0 %v2462_v62  ;;  %v2606_v62 = vsel %vm2604_vm2, 1.0, %v4632_v0  ;;  %vm1989_vm2 = vcmp.eq.s32.totalorder %v5448_v29, 4 }
 0x36e   : > { %2502 = vadd.xlane.f32.xlu1 %v2499_v20 }
 0x371   : > { %2482 = vadd.xlane.f32.xlu0 %v2480_v53 }
 0x372   : > { %2520 = vadd.xlane.f32.xlu1 %v2517_v6 }
 0x375   : > { %2500 = vadd.xlane.f32.xlu0 %v2498_v8 }
 0x376   : > { %2538 = vadd.xlane.f32.xlu1 %v2535_v9  ;;  %v1873_v12 = vpop.xlane.xlu0 %1872  ;;  %v2643_v9 = vsel %vm2641_vm3, 1.0, %v4632_v0  ;;  %vm2676_vm3 = vcmp.le.f32.partialorder %v5294_v32, 0.9047619 }
 0x377   : > { %v1910_v13 = vpop.xlane.xlu1 %1909 }
 0x379   : > { %2518 = vadd.xlane.f32.xlu0 %v2516_v15 }
 0x37a   : > { %2556 = vadd.xlane.f32.xlu1 %v2553_v16  ;;  %v1871_v17 = vpop.xlane.xlu0 %1870 }
 0x37b   : > { %v1928_v18 = vpop.xlane.xlu1 %1927  ;;  %v1874_v19 = vadd.f32 %v1873_v12, %v1871_v17 }
 0x37d   : > { %v1875_v4 = vrot.slane %v1874_v19, 4  ;;  %2536 = vadd.xlane.f32.xlu0 %v2534_v22  ;;  %v2624_v22 = vsel %vm2622_vm6, 1.0, %v4632_v0  ;;  %vm2007_vm6 = vcmp.eq.s32.totalorder %v5448_v29, 5 }
 0x37e   : > { %2574 = vadd.xlane.f32.xlu1 %v2571_v58  ;;  %v1908_v27 = vpop.xlane.xlu0 %1907  ;;  %v2661_v58 = vsel %vm2659_vm7, 1.0, %v4632_v0  ;;  %vm2694_vm7 = vcmp.le.f32.partialorder %v5294_v32, 0.9095238  ;;  %vm2008_vm9 = vmand %vm1918_vm1, %vm2007_vm6 }
 0x37f   : > { %v1945_v28 = vpop.xlane.xlu1 %1944  ;;  %v1876_v34 = vadd.f32 %v1875_v4, %v1874_v19  ;;  %v1911_v35 = vadd.f32 %v1910_v13, %v1908_v27 }
 0x381   : > { %v1877_v38 = vrot.slane %v1876_v34, 2  ;;  %v1912_v39 = vrot.slane %v1911_v35, 4  ;;  %2554 = vadd.xlane.f32.xlu0 %v2552_v36 }
 0x382   : > { %2592 = vadd.xlane.f32.xlu1 %v2589_v37  ;;  %v1926_v59 = vpop.xlane.xlu0 %1925 }
 0x383   : > { %v1963_v41 = vpop.xlane.xlu1 %1962  ;;  %v1878_v10 = vadd.f32 %v1877_v38, %v1876_v34  ;;  %v1913_v30 = vadd.f32 %v1912_v39, %v1911_v35  ;;  %v1929_v42 = vadd.f32 %v1928_v18, %v1926_v59  ;;  %v2642_v59 = vsel %vm2640_vm10, 1.0, %v4632_v0 }
 0x384   : > { %vm2025_vm10 = vcmp.eq.s32.totalorder %v5448_v29, 6 }
 0x385   : > { %v1879_v44 = vrot.slane %v1878_v10, 1  ;;  %v1914_v46 = vrot.slane %v1913_v30, 2  ;;  %v1930_v55 = vrot.slane %v1929_v42, 4  ;;  %2572 = vadd.xlane.f32.xlu0 %v2570_v43  ;;  %vm5587_vm13 = vmand %vm1918_vm1, %vm2025_vm10 }
 0x386   : > { %2610 = vadd.xlane.f32.xlu1 %v2607_v60  ;;  %v1943_v2 = vpop.xlane.xlu0 %1942 }
 0x387   : > { %v1981_v50 = vpop.xlane.xlu1 %1980  ;;  %v1880_v51 = vadd.f32 %v1879_v44, %v1878_v10  ;;  %v1915_v14 = vadd.f32 %v1914_v46, %v1913_v30  ;;  %v1931_v52 = vadd.f32 %v1930_v55, %v1929_v42  ;;  %v1946_v33 = vadd.f32 %v1945_v28, %v1943_v2 }
 0x388   : > { %v2660_v2 = vsel %vm2658_vm14, 1.0, %v4632_v0  ;;  %vm2043_vm14 = vcmp.eq.s32.totalorder %v5448_v29, 7 }
 0x389   : > { %v1899_v26 = vsel %vm5464_vm15, %v1880_v51, 0.0  ;;  %v1916_v31 = vrot.slane %v1915_v14, 1  ;;  %v1932_v61 = vrot.slane %v1931_v52, 2  ;;  %v1947_v45 = vrot.slane %v1946_v33, 4  ;;  %2590 = vadd.xlane.f32.xlu0 %v2588_v54 }
 0x38a   : > { %2628 = vadd.xlane.f32.xlu1 %v2625_v3  ;;  %v1961_v1 = vpop.xlane.xlu0 %1960  ;;  %v1902_v8 = vsel %vm5480_vm4, %v1891_v21, %v1899_v26  ;;  %vm2695_vm15 = vcmp.le.f32.partialorder %v5279_v49, 0.9095238  ;;  %vm2713_vm4 = vcmp.le.f32.partialorder %v5279_v49, 0.9142857  ;;  %v2678_v21 = vsel %vm2676_vm3, 1.0, %v4632_v0 }
 0x38b   : > { %v1999_v20 = vpop.xlane.xlu1 %1998  ;;  %v1917_v5 = vadd.f32 %v1916_v31, %v1915_v14  ;;  %v1933_v53 = vadd.f32 %v1932_v61, %v1931_v52  ;;  %v1948_v6 = vadd.f32 %v1947_v45, %v1946_v33  ;;  %v1964_v7 = vadd.f32 %v1963_v41, %v1961_v1 }
 0x38c   : > { %v2679_v41 = vsel %vm2677_vm11, 1.0, %v4632_v0  ;;  %v2715_v56 = vsel %vm2713_vm4, 1.0, %v4632_v0  ;;  %vm2712_vm11 = vcmp.le.f32.partialorder %v5294_v32, 0.9142857  ;;  %vm2061_vm3 = vcmp.eq.s32.totalorder %v5448_v29, 8 }
 0x38d   : > { %v1920_v11 = vsel %vm5490_vm5, %v1917_v5, %v1902_v8  ;;  %v1934_v12 = vrot.slane %v1933_v53, 1  ;;  %v1949_v13 = vrot.slane %v1948_v6, 2  ;;  %v1965_v15 = vrot.slane %v1964_v7, 4  ;;  %2608 = vadd.xlane.f32.xlu0 %v2606_v62  ;;  %vm5555_vm5 = vmand %vm1918_vm1, %vm1989_vm2 }
 0x38e   : > { %2646 = vadd.xlane.f32.xlu1 %v2643_v9  ;;  %v1979_v16 = vpop.xlane.xlu0 %1978  ;;  %vm2044_vm2 = vmand %vm1918_vm1, %vm2043_vm14  ;;  %vm2748_vm4 = vcmp.le.f32.partialorder %v5294_v32, 0.9238095 }
 0x38f   : > { %v2017_v57 = vpop.xlane.xlu1 %2016  ;;  %v1935_v63 = vadd.f32 %v1934_v12, %v1933_v53  ;;  %v1950_v17 = vadd.f32 %v1949_v13, %v1948_v6  ;;  %v1966_v18 = vadd.f32 %v1965_v15, %v1964_v7  ;;  %v1982_v19 = vadd.f32 %v1981_v50, %v1979_v16  ;;  %vm5619_vm6 = vmand %vm1918_vm1, %vm2061_vm3 }
 0x390   : > { %v2697_v50 = vsel %vm2695_vm15, 1.0, %v4632_v0  ;;  %v2696_v12 = vsel %vm2694_vm7, 1.0, %v4632_v0  ;;  %vm2730_vm15 = vcmp.le.f32.partialorder %v5294_v32, 0.9190476  ;;  %vm2079_vm7 = vcmp.eq.s32.totalorder %v5448_v29, 9 }
 0x391   : > { %v1937_v4 = vsel %vm1936_vm8, %v1935_v63, %v1920_v11  ;;  %v1951_v24 = vrot.slane %v1950_v17, 1  ;;  %v1967_v27 = vrot.slane %v1966_v18, 2  ;;  %v1983_v28 = vrot.slane %v1982_v19, 4  ;;  %2626 = vadd.xlane.f32.xlu0 %v2624_v22  ;;  %vm2080_vm10 = vmand %vm1918_vm1, %vm2079_vm7 }
 0x392   : > { %2664 = vadd.xlane.f32.xlu1 %v2661_v58  ;;  %v1997_v35 = vpop.xlane.xlu0 %1996  ;;  %vm2731_vm8 = vcmp.le.f32.partialorder %v5279_v49, 0.9190476 }
 0x393   : > { %v2035_v36 = vpop.xlane.xlu1 %2034  ;;  %v1952_v37 = vadd.f32 %v1951_v24, %v1950_v17  ;;  %v1968_v38 = vadd.f32 %v1967_v27, %v1966_v18  ;;  %v1984_v39 = vadd.f32 %v1983_v28, %v1982_v19  ;;  %v2000_v40 = vadd.f32 %v1999_v20, %v1997_v35 }
 0x394   : > { %v2733_v13 = vsel %vm2731_vm8, 1.0, %v4632_v0  ;;  %v2714_v27 = vsel %vm2712_vm11, 1.0, %v4632_v0  ;;  %vm2766_vm8 = vcmp.le.f32.partialorder %v5294_v32, 0.9285714  ;;  %vm2097_vm11 = vcmp.eq.s32.totalorder %v5448_v29, 10 }
 0x395   : > { %v1955_v10 = vsel %vm5523_vm12, %v1952_v37, %v1937_v4  ;;  %v1969_v30 = vrot.slane %v1968_v38, 1  ;;  %v1985_v42 = vrot.slane %v1984_v39, 2  ;;  %v2001_v43 = vrot.slane %v2000_v40, 4  ;;  %2644 = vadd.xlane.f32.xlu0 %v2642_v59  ;;  %vm5651_vm14 = vmand %vm1918_vm1, %vm2097_vm11 }
 0x396   : > { %2682 = vadd.xlane.f32.xlu1 %v2679_v41  ;;  %v2015_v60 = vpop.xlane.xlu0 %2014  ;;  %vm2749_vm12 = vcmp.le.f32.partialorder %v5279_v49, 0.9238095 }
 0x397   : > { %v2053_v44 = vpop.xlane.xlu1 %2052  ;;  %v1970_v46 = vadd.f32 %v1969_v30, %v1968_v38  ;;  %v1986_v55 = vadd.f32 %v1985_v42, %v1984_v39  ;;  %v2002_v47 = vadd.f32 %v2001_v43, %v2000_v40  ;;  %v2018_v48 = vadd.f32 %v2017_v57, %v2015_v60 }
 0x398   : > { %v2751_v28 = vsel %vm2749_vm12, 1.0, %v4632_v0  ;;  %v2732_v30 = vsel %vm2730_vm15, 1.0, %v4632_v0  ;;  %vm2784_vm12 = vcmp.le.f32.partialorder %v5294_v32, 0.93333334  ;;  %vm2115_vm15 = vcmp.eq.s32.totalorder %v5448_v29, 11 }
 0x399   : > { %v1973_v51 = vsel %vm1972_vm0, %v1970_v46, %v1955_v10  ;;  %v1987_v14 = vrot.slane %v1986_v55, 1  ;;  %v2003_v52 = vrot.slane %v2002_v47, 2  ;;  %v2019_v33 = vrot.slane %v2018_v48, 4  ;;  %2662 = vadd.xlane.f32.xlu0 %v2660_v2  ;;  %vm2116_vm3 = vmand %vm1918_vm1, %vm2115_vm15 }
 0x39a   : > { %2700 = vadd.xlane.f32.xlu1 %v2697_v50  ;;  %v2033_v3 = vpop.xlane.xlu0 %2032  ;;  %vm2767_vm0 = vcmp.le.f32.partialorder %v5279_v49, 0.9285714 }
 0x39b   : > { %v2071_v23 = vpop.xlane.xlu1 %2070  ;;  %v1988_v26 = vadd.f32 %v1987_v14, %v1986_v55  ;;  %v2004_v31 = vadd.f32 %v2003_v52, %v2002_v47  ;;  %v2020_v61 = vadd.f32 %v2019_v33, %v2018_v48  ;;  %v2036_v45 = vadd.f32 %v2035_v36, %v2033_v3 }
 0x39c   : > { %v2769_v42 = vsel %vm2767_vm0, 1.0, %v4632_v0  ;;  %v2750_v52 = vsel %vm2748_vm4, 1.0, %v4632_v0  ;;  %vm2802_vm0 = vcmp.le.f32.partialorder %v5294_v32, 0.9380952  ;;  %vm2133_vm4 = vcmp.eq.s32.totalorder %v5448_v29, 12 }
 0x39d   : > { %v1991_v1 = vsel %vm5555_vm5, %v1988_v26, %v1973_v51  ;;  %v2005_v62 = vrot.slane %v2004_v31, 1  ;;  %v2021_v20 = vrot.slane %v2020_v61, 2  ;;  %v2037_v5 = vrot.slane %v2036_v45, 4  ;;  %2680 = vadd.xlane.f32.xlu0 %v2678_v21  ;;  %vm5683_vm7 = vmand %vm1918_vm1, %vm2133_vm4 }
 0x39e   : > { %2718 = vadd.xlane.f32.xlu1 %v2715_v56  ;;  %v2051_v53 = vpop.xlane.xlu0 %2050  ;;  %vm2785_vm5 = vcmp.le.f32.partialorder %v5279_v49, 0.93333334 }
 0x39f   : > { %v2089_v6 = vpop.xlane.xlu1 %2088  ;;  %v2006_v7 = vadd.f32 %v2005_v62, %v2004_v31  ;;  %v2022_v8 = vadd.f32 %v2021_v20, %v2020_v61  ;;  %v2038_v9 = vadd.f32 %v2037_v5, %v2036_v45  ;;  %v2054_v11 = vadd.f32 %v2053_v44, %v2051_v53 }
 0x3a0   : > { %v2787_v33 = vsel %vm2785_vm5, 1.0, %v4632_v0  ;;  %v2768_v62 = vsel %vm2766_vm8, 1.0, %v4632_v0  ;;  %vm2820_vm5 = vcmp.le.f32.partialorder %v5294_v32, 0.94285715  ;;  %vm2151_vm8 = vcmp.eq.s32.totalorder %v5448_v29, 13 }
 0x3a1   : > { %v2009_v15 = vsel %vm2008_vm9, %v2006_v7, %v1991_v1  ;;  %v2023_v16 = vrot.slane %v2022_v8, 1  ;;  %v2039_v57 = vrot.slane %v2038_v9, 2  ;;  %v2055_v63 = vrot.slane %v2054_v11, 4  ;;  %2698 = vadd.xlane.f32.xlu0 %v2696_v12  ;;  %vm2152_vm11 = vmand %vm1918_vm1, %vm2151_vm8 }
 0x3a2   : > { %2736 = vadd.xlane.f32.xlu1 %v2733_v13  ;;  %v2069_v18 = vpop.xlane.xlu0 %2068  ;;  %vm2803_vm9 = vcmp.le.f32.partialorder %v5279_v49, 0.9380952 }
 0x3a3   : > { %v2107_v19 = vpop.xlane.xlu1 %2106  ;;  %v2024_v22 = vadd.f32 %v2023_v16, %v2022_v8  ;;  %v2040_v58 = vadd.f32 %v2039_v57, %v2038_v9  ;;  %v2056_v4 = vadd.f32 %v2055_v63, %v2054_v11  ;;  %v2072_v24 = vadd.f32 %v2071_v23, %v2069_v18 }
 0x3a4   : > { %v2805_v20 = vsel %vm2803_vm9, 1.0, %v4632_v0  ;;  %v2786_v57 = vsel %vm2784_vm12, 1.0, %v4632_v0  ;;  %vm2169_vm12 = vcmp.eq.s32.totalorder %v5448_v29, 14 }
 0x3a5   : > { %v2027_v34 = vsel %vm5587_vm13, %v2024_v22, %v2009_v15  ;;  %v2041_v35 = vrot.slane %v2040_v58, 1  ;;  %v2057_v36 = vrot.slane %v2056_v4, 2  ;;  %v2073_v37 = vrot.slane %v2072_v24, 4  ;;  %2716 = vadd.xlane.f32.xlu0 %v2714_v27  ;;  %vm5721_vm15 = vmand %vm1918_vm1, %vm2169_vm12 }
 0x3a6   : > { %2754 = vadd.xlane.f32.xlu1 %v2751_v28  ;;  %v2087_v38 = vpop.xlane.xlu0 %2086  ;;  %vm2821_vm13 = vcmp.le.f32.partialorder %v5279_v49, 0.94285715 }
 0x3a7   : > { %v2125_v39 = vpop.xlane.xlu1 %2124  ;;  %v2042_v40 = vadd.f32 %v2041_v35, %v2040_v58  ;;  %v2058_v59 = vadd.f32 %v2057_v36, %v2056_v4  ;;  %v2074_v41 = vadd.f32 %v2073_v37, %v2072_v24  ;;  %v2090_v10 = vadd.f32 %v2089_v6, %v2087_v38 }
 0x3a8   : > { %v2823_v63 = vsel %vm2821_vm13, 1.0, %v4632_v0  ;;  %v2804_v35 = vsel %vm2802_vm0, 1.0, %v4632_v0  ;;  %vm2187_vm0 = vcmp.eq.s32.totalorder %v5448_v29, 15 }
 0x3a9   : > { %v2045_v43 = vsel %vm2044_vm2, %v2042_v40, %v2027_v34  ;;  %v2059_v60 = vrot.slane %v2058_v59, 1  ;;  %v2075_v44 = vrot.slane %v2074_v41, 2  ;;  %v2091_v46 = vrot.slane %v2090_v10, 4  ;;  %2734 = vadd.xlane.f32.xlu0 %v2732_v30  ;;  %vm2188_vm4 = vmand %vm1918_vm1, %vm2187_vm0 }
 0x3aa   : > { %2772 = vadd.xlane.f32.xlu1 %v2769_v42  ;;  %v2105_v47 = vpop.xlane.xlu0 %2104  ;;  %vm2839_vm2 = vcmp.le.f32.partialorder %v5279_v49, 0.947619 }
 0x3ab   : > { %v2143_v48 = vpop.xlane.xlu1 %2142  ;;  %v2060_v2 = vadd.f32 %v2059_v60, %v2058_v59  ;;  %v2076_v50 = vadd.f32 %v2075_v44, %v2074_v41  ;;  %v2092_v51 = vadd.f32 %v2091_v46, %v2090_v10  ;;  %v2108_v14 = vadd.f32 %v2107_v19, %v2105_v47  ;;  %v5692_v46 = vld [vmem:[%s5284_s12] sm:$0xff]  ;;  %v5699_v47 = vld [vmem:[%s5284_s12 + $0x8] sm:$0xff] }
 0x3ac   : > { %v2841_v36 = vsel %vm2839_vm2, 1.0, %v4632_v0  ;;  %v2822_v44 = vsel %vm2820_vm5, 1.0, %v4632_v0  ;;  %vm2838_vm9 = vcmp.le.f32.partialorder %v5692_v46, 0.947619  ;;  %vm2856_vm13 = vcmp.le.f32.partialorder %v5692_v46, 0.95238096 }
 0x3ad   : > { %v2063_v54 = vsel %vm5619_vm6, %v2060_v2, %v2045_v43  ;;  %v2077_v3 = vrot.slane %v2076_v50, 1  ;;  %v2093_v23 = vrot.slane %v2092_v51, 2  ;;  %v2109_v26 = vrot.slane %v2108_v14, 4  ;;  %2752 = vadd.xlane.f32.xlu0 %v2750_v52 }
 0x3ae   : > { %2790 = vadd.xlane.f32.xlu1 %v2787_v33  ;;  %v2123_v31 = vpop.xlane.xlu0 %2122  ;;  %vm2857_vm6 = vcmp.le.f32.partialorder %v5279_v49, 0.95238096  ;;  %vm2874_vm2 = vcmp.le.f32.partialorder %v5692_v46, 0.95714283  ;;  %vm2205_vm5 = vcmp.eq.s32.totalorder %v5448_v29, 16 }
 0x3af   : > { %v2161_v61 = vpop.xlane.xlu1 %2160  ;;  %v2078_v45 = vadd.f32 %v2077_v3, %v2076_v50  ;;  %v2094_v21 = vadd.f32 %v2093_v23, %v2092_v51  ;;  %v2110_v56 = vadd.f32 %v2109_v26, %v2108_v14  ;;  %v2126_v1 = vadd.f32 %v2125_v39, %v2123_v31  ;;  %vm5753_vm8 = vmand %vm1918_vm1, %vm2205_vm5 }
 0x3b0   : > { %v2859_v55 = vsel %vm2857_vm6, 1.0, %v4632_v0  ;;  %v2840_v3 = vsel %vm2838_vm9, 1.0, %v4632_v0  ;;  %vm2892_vm6 = vcmp.le.f32.partialorder %v5692_v46, 0.96190476  ;;  %vm2223_vm9 = vcmp.eq.s32.totalorder %v5448_v29, 17 }
 0x3b1   : > { %v2081_v5 = vsel %vm2080_vm10, %v2078_v45, %v2063_v54  ;;  %v2095_v53 = vrot.slane %v2094_v21, 1  ;;  %v2111_v6 = vrot.slane %v2110_v56, 2  ;;  %v2127_v7 = vrot.slane %v2126_v1, 4  ;;  %2770 = vadd.xlane.f32.xlu0 %v2768_v62  ;;  %vm2224_vm12 = vmand %vm1918_vm1, %vm2223_vm9 }
 0x3b2   : > { %2808 = vadd.xlane.f32.xlu1 %v2805_v20  ;;  %v2141_v9 = vpop.xlane.xlu0 %2140  ;;  %vm2875_vm10 = vcmp.le.f32.partialorder %v5699_v47, 0.95714283 }
 0x3b3   : > { %v2179_v11 = vpop.xlane.xlu1 %2178  ;;  %v2096_v12 = vadd.f32 %v2095_v53, %v2094_v21  ;;  %v2112_v13 = vadd.f32 %v2111_v6, %v2110_v56  ;;  %v2128_v15 = vadd.f32 %v2127_v7, %v2126_v1  ;;  %v2144_v16 = vadd.f32 %v2143_v48, %v2141_v9 }
 0x3b4   : > { %v2877_v23 = vsel %vm2875_vm10, 1.0, %v4632_v0  ;;  %v2858_v6 = vsel %vm2856_vm13, 1.0, %v4632_v0  ;;  %vm2910_vm10 = vcmp.le.f32.partialorder %v5692_v46, 0.96666664  ;;  %vm2241_vm13 = vcmp.eq.s32.totalorder %v5448_v29, 18 }
 0x3b5   : > { %v2099_v17 = vsel %vm5651_vm14, %v2096_v12, %v2081_v5  ;;  %v2113_v18 = vrot.slane %v2112_v13, 1  ;;  %v2129_v19 = vrot.slane %v2128_v15, 2  ;;  %v2145_v22 = vrot.slane %v2144_v16, 4  ;;  %2788 = vadd.xlane.f32.xlu0 %v2786_v57  ;;  %vm5785_vm0 = vmand %vm1918_vm1, %vm2241_vm13 }
 0x3b6   : > { %2826 = vadd.xlane.f32.xlu1 %v2823_v63  ;;  %v2159_v58 = vpop.xlane.xlu0 %2158  ;;  %vm2893_vm14 = vcmp.le.f32.partialorder %v5699_v47, 0.96190476 }
 0x3b7   : > { %v2197_v4 = vpop.xlane.xlu1 %2196  ;;  %v2114_v24 = vadd.f32 %v2113_v18, %v2112_v13  ;;  %v2130_v27 = vadd.f32 %v2129_v19, %v2128_v15  ;;  %v2146_v28 = vadd.f32 %v2145_v22, %v2144_v16  ;;  %v2162_v34 = vadd.f32 %v2161_v61, %v2159_v58 }
 0x3b8   : > { %v2895_v7 = vsel %vm2893_vm14, 1.0, %v4632_v0  ;;  %v2876_v18 = vsel %vm2874_vm2, 1.0, %v4632_v0  ;;  %vm2928_vm14 = vcmp.le.f32.partialorder %v5692_v46, 0.9714286  ;;  %vm2259_vm2 = vcmp.eq.s32.totalorder %v5448_v29, 19 }
 0x3b9   : > { %v2117_v37 = vsel %vm2116_vm3, %v2114_v24, %v2099_v17  ;;  %v2131_v38 = vrot.slane %v2130_v27, 1  ;;  %v2147_v39 = vrot.slane %v2146_v28, 2  ;;  %v2163_v40 = vrot.slane %v2162_v34, 4  ;;  %2806 = vadd.xlane.f32.xlu0 %v2804_v35  ;;  %vm2260_vm5 = vmand %vm1918_vm1, %vm2259_vm2 }
 0x3ba   : > { %2844 = vadd.xlane.f32.xlu1 %v2841_v36  ;;  %v2177_v41 = vpop.xlane.xlu0 %2176  ;;  %vm2911_vm3 = vcmp.le.f32.partialorder %v5699_v47, 0.96666664 }
 0x3bb   : > { %v2215_v10 = vpop.xlane.xlu1 %2214  ;;  %v2132_v30 = vadd.f32 %v2131_v38, %v2130_v27  ;;  %v2148_v42 = vadd.f32 %v2147_v39, %v2146_v28  ;;  %v2164_v43 = vadd.f32 %v2163_v40, %v2162_v34  ;;  %v2180_v60 = vadd.f32 %v2179_v11, %v2177_v41 }
 0x3bc   : > { %v2913_v19 = vsel %vm2911_vm3, 1.0, %v4632_v0  ;;  %v2894_v39 = vsel %vm2892_vm6, 1.0, %v4632_v0  ;;  %vm2946_vm3 = vcmp.le.f32.partialorder %v5692_v46, 0.97619045  ;;  %vm2277_vm6 = vcmp.eq.s32.totalorder %v5448_v29, 20 }
 0x3bd   : > { %v2135_v48 = vsel %vm5683_vm7, %v2132_v30, %v2117_v37  ;;  %v2149_v2 = vrot.slane %v2148_v42, 1  ;;  %v2165_v50 = vrot.slane %v2164_v43, 2  ;;  %v2181_v51 = vrot.slane %v2180_v60, 4  ;;  %2824 = vadd.xlane.f32.xlu0 %v2822_v44  ;;  %vm5817_vm9 = vmand %vm1918_vm1, %vm2277_vm6 }
 0x3be   : > { %2862 = vadd.xlane.f32.xlu1 %v2859_v55  ;;  %v2195_v49 = vpop.xlane.xlu0 %2194  ;;  %vm2929_vm7 = vcmp.le.f32.partialorder %v5699_v47, 0.9714286  ;;  %vm2349_vm6 = vcmp.eq.s32.totalorder %v5448_v29, 24 }
 0x3bf   : > { %v2233_v32 = vpop.xlane.xlu1 %2232  ;;  %v2150_v14 = vadd.f32 %v2149_v2, %v2148_v42  ;;  %v2166_v52 = vadd.f32 %v2165_v50, %v2164_v43  ;;  %v2182_v33 = vadd.f32 %v2181_v51, %v2180_v60  ;;  %v2198_v54 = vadd.f32 %v2197_v4, %v2195_v49 }
 0x3c0   : > { %v2931_v40 = vsel %vm2929_vm7, 1.0, %v4632_v0  ;;  %v2912_v2 = vsel %vm2910_vm10, 1.0, %v4632_v0  ;;  %vm2964_vm7 = vcmp.le.f32.partialorder %v5692_v46, 0.9809524  ;;  %vm2295_vm10 = vcmp.eq.s32.totalorder %v5448_v29, 21 }
 0x3c1   : > { %v2153_v26 = vsel %vm2152_vm11, %v2150_v14, %v2135_v48  ;;  %v2167_v31 = vrot.slane %v2166_v52, 1  ;;  %v2183_v61 = vrot.slane %v2182_v33, 2  ;;  %v2199_v45 = vrot.slane %v2198_v54, 4  ;;  %2842 = vadd.xlane.f32.xlu0 %v2840_v3  ;;  %vm2296_vm13 = vmand %vm1918_vm1, %vm2295_vm10 }
 0x3c2   : > { %2880 = vadd.xlane.f32.xlu1 %v2877_v23  ;;  %v2213_v56 = vpop.xlane.xlu0 %2212  ;;  %vm2947_vm11 = vcmp.le.f32.partialorder %v5699_v47, 0.97619045 }
 0x3c3   : > { %v2251_v1 = vpop.xlane.xlu1 %2250  ;;  %v2168_v62 = vadd.f32 %v2167_v31, %v2166_v52  ;;  %v2184_v20 = vadd.f32 %v2183_v61, %v2182_v33  ;;  %v2200_v5 = vadd.f32 %v2199_v45, %v2198_v54  ;;  %v2216_v53 = vadd.f32 %v2215_v10, %v2213_v56 }
 0x3c4   : > { %v2949_v50 = vsel %vm2947_vm11, 1.0, %v4632_v0  ;;  %v2930_v61 = vsel %vm2928_vm14, 1.0, %v4632_v0  ;;  %vm2982_vm11 = vcmp.le.f32.partialorder %v5692_v46, 0.98571426  ;;  %vm2313_vm14 = vcmp.eq.s32.totalorder %v5448_v29, 22 }
 0x3c5   : > { %v2171_v8 = vsel %vm5721_vm15, %v2168_v62, %v2153_v26  ;;  %v2185_v9 = vrot.slane %v2184_v20, 1  ;;  %v2201_v11 = vrot.slane %v2200_v5, 2  ;;  %v2217_v12 = vrot.slane %v2216_v53, 4  ;;  %2860 = vadd.xlane.f32.xlu0 %v2858_v6  ;;  %vm5849_vm2 = vmand %vm1918_vm1, %vm2313_vm14 }
 0x3c6   : > { %2898 = vadd.xlane.f32.xlu1 %v2895_v7  ;;  %v2231_v13 = vpop.xlane.xlu0 %2230  ;;  %vm2965_vm15 = vcmp.le.f32.partialorder %v5699_v47, 0.9809524 }
 0x3c7   : > { %v2269_v15 = vpop.xlane.xlu1 %2268  ;;  %v2186_v16 = vadd.f32 %v2185_v9, %v2184_v20  ;;  %v2202_v57 = vadd.f32 %v2201_v11, %v2200_v5  ;;  %v2218_v63 = vadd.f32 %v2217_v12, %v2216_v53  ;;  %v2234_v17 = vadd.f32 %v2233_v32, %v2231_v13 }
 0x3c8   : > { %v2967_v45 = vsel %vm2965_vm15, 1.0, %v4632_v0  ;;  %v2948_v9 = vsel %vm2946_vm3, 1.0, %v4632_v0  ;;  %vm3000_vm15 = vcmp.le.f32.partialorder %v5692_v46, 0.9904762  ;;  %vm2331_vm3 = vcmp.eq.s32.totalorder %v5448_v29, 23 }
 0x3c9   : > { %v2189_v22 = vsel %vm2188_vm4, %v2186_v16, %v2171_v8  ;;  %v2203_v58 = vrot.slane %v2202_v57, 1  ;;  %v2219_v4 = vrot.slane %v2218_v63, 2  ;;  %v2235_v24 = vrot.slane %v2234_v17, 4  ;;  %2878 = vadd.xlane.f32.xlu0 %v2876_v18 }
 0x3ca   : > { %2916 = vadd.xlane.f32.xlu1 %v2913_v19  ;;  %v2249_v28 = vpop.xlane.xlu0 %2248  ;;  %vm2983_vm4 = vcmp.le.f32.partialorder %v5699_v47, 0.98571426 }
 0x3cb   : > { %v2287_v34 = vpop.xlane.xlu1 %2286  ;;  %v2204_v35 = vadd.f32 %v2203_v58, %v2202_v57  ;;  %v2220_v36 = vadd.f32 %v2219_v4, %v2218_v63  ;;  %v2236_v37 = vadd.f32 %v2235_v24, %v2234_v17  ;;  %v2252_v38 = vadd.f32 %v2251_v1, %v2249_v28 }
 0x3cc   : > { %v2985_v11 = vsel %vm2983_vm4, 1.0, %v4632_v0  ;;  %v2966_v4 = vsel %vm2964_vm7, 1.0, %v4632_v0  ;;  %vm3018_vm4 = vcmp.le.f32.partialorder %v5692_v46, 0.99523807  ;;  %vm3036_vm7 = vcmp.le.f32.partialorder %v5692_v46, 1.001 }
 0x3cd   : > { %v2207_v59 = vsel %vm5753_vm8, %v2204_v35, %v2189_v22  ;;  %v2221_v41 = vrot.slane %v2220_v36, 1  ;;  %v2237_v10 = vrot.slane %v2236_v37, 2  ;;  %v2253_v30 = vrot.slane %v2252_v38, 4  ;;  %2896 = vadd.xlane.f32.xlu0 %v2894_v39 }
 0x3ce   : > { %2934 = vadd.xlane.f32.xlu1 %v2931_v40  ;;  %v2267_v42 = vpop.xlane.xlu0 %2266  ;;  %vm3001_vm8 = vcmp.le.f32.partialorder %v5699_v47, 0.9904762  ;;  %v3038_v46 = vsel %vm3036_vm7, 1.0, %v4632_v0 }
 0x3cf   : > { %v2305_v43 = vpop.xlane.xlu1 %2304  ;;  %v2222_v60 = vadd.f32 %v2221_v41, %v2220_v36  ;;  %v2238_v44 = vadd.f32 %v2237_v10, %v2236_v37  ;;  %v2254_v55 = vadd.f32 %v2253_v30, %v2252_v38  ;;  %v2270_v48 = vadd.f32 %v2269_v15, %v2267_v42 }
 0x3d0   : > { %v3003_v24 = vsel %vm3001_vm8, 1.0, %v4632_v0  ;;  %v2984_v41 = vsel %vm2982_vm11, 1.0, %v4632_v0  ;;  %vm5874_vm8 = vmand %vm1918_vm1, %vm2349_vm6  ;;  %vm2385_vm11 = vcmp.eq.s32.totalorder %v5448_v29, 26  ;;  %vm2475_vm6 = vcmp.eq.s32.totalorder %v5448_v29, 31 }
 0x3d1   : > { %v2225_v51 = vsel %vm2224_vm12, %v2222_v60, %v2207_v59  ;;  %v2239_v49 = vrot.slane %v2238_v44, 1  ;;  %v2255_v32 = vrot.slane %v2254_v55, 2  ;;  %v2271_v14 = vrot.slane %v2270_v48, 4  ;;  %2914 = vadd.xlane.f32.xlu0 %v2912_v2  ;;  %vm2476_vm7 = vmand %vm1918_vm1, %vm2475_vm6 }
 0x3d2   : > { %2952 = vadd.xlane.f32.xlu1 %v2949_v50  ;;  %v2285_v33 = vpop.xlane.xlu0 %2284  ;;  %vm3019_vm12 = vcmp.le.f32.partialorder %v5699_v47, 0.99523807 }
 0x3d3   : > { %v2323_v54 = vpop.xlane.xlu1 %2322  ;;  %v2240_v3 = vadd.f32 %v2239_v49, %v2238_v44  ;;  %v2256_v23 = vadd.f32 %v2255_v32, %v2254_v55  ;;  %v2272_v26 = vadd.f32 %v2271_v14, %v2270_v48  ;;  %v2288_v31 = vadd.f32 %v2287_v34, %v2285_v33 }
 0x3d4   : > { %v3021_v10 = vsel %vm3019_vm12, 1.0, %v4632_v0  ;;  %v3002_v32 = vsel %vm3000_vm15, 1.0, %v4632_v0  ;;  %vm5887_vm12 = vmand %vm1918_vm1, %vm2385_vm11  ;;  %vm2421_vm15 = vcmp.eq.s32.totalorder %v5448_v29, 28 }
 0x3d5   : > { %v2243_v21 = vsel %vm5785_vm0, %v2240_v3, %v2225_v51  ;;  %v2257_v56 = vrot.slane %v2256_v23, 1  ;;  %v2273_v1 = vrot.slane %v2272_v26, 2  ;;  %v2289_v62 = vrot.slane %v2288_v31, 4  ;;  %2932 = vadd.xlane.f32.xlu0 %v2930_v61 }
 0x3d6   : > { %2970 = vadd.xlane.f32.xlu1 %v2967_v45  ;;  %v2303_v20 = vpop.xlane.xlu0 %2302  ;;  %vm3037_vm0 = vcmp.le.f32.partialorder %v5699_v47, 1.001 }
 0x3d7   : > { %v2341_v5 = vpop.xlane.xlu1 %2340  ;;  %v2258_v53 = vadd.f32 %v2257_v56, %v2256_v23  ;;  %v2274_v6 = vadd.f32 %v2273_v1, %v2272_v26  ;;  %v2290_v7 = vadd.f32 %v2289_v62, %v2288_v31  ;;  %v2306_v8 = vadd.f32 %v2305_v43, %v2303_v20 }
 0x3d8   : > { %v3039_v14 = vsel %vm3037_vm0, 1.0, %v4632_v0  ;;  %vm5899_vm0 = vmand %vm1918_vm1, %vm2421_vm15 }
 0x3d9   : > { %v2261_v12 = vsel %vm2260_vm5, %v2258_v53, %v2243_v21  ;;  %v2275_v13 = vrot.slane %v2274_v6, 1  ;;  %v2291_v15 = vrot.slane %v2290_v7, 2  ;;  %v2307_v16 = vrot.slane %v2306_v8, 4  ;;  %2950 = vadd.xlane.f32.xlu0 %v2948_v9  ;;  %vm2332_vm5 = vmand %vm1918_vm1, %vm2331_vm3 }
 0x3da   : > { %2988 = vadd.xlane.f32.xlu1 %v2985_v11  ;;  %v2321_v63 = vpop.xlane.xlu0 %2320  ;;  %v3020_v21 = vsel %vm3018_vm4, 1.0, %v4632_v0  ;;  %vm2457_vm4 = vcmp.eq.s32.totalorder %v5448_v29, 30 }
 0x3db   : > { %v2359_v17 = vpop.xlane.xlu1 %2358  ;;  %v2276_v18 = vadd.f32 %v2275_v13, %v2274_v6  ;;  %v2292_v19 = vadd.f32 %v2291_v15, %v2290_v7  ;;  %v2308_v22 = vadd.f32 %v2307_v16, %v2306_v8  ;;  %v2324_v58 = vadd.f32 %v2323_v54, %v2321_v63 }
 0x3dd   : > { %v2279_v27 = vsel %vm5817_vm9, %v2276_v18, %v2261_v12  ;;  %v2293_v28 = vrot.slane %v2292_v19, 1  ;;  %v2309_v34 = vrot.slane %v2308_v22, 2  ;;  %v2325_v35 = vrot.slane %v2324_v58, 4  ;;  %2968 = vadd.xlane.f32.xlu0 %v2966_v4 }
 0x3de   : > { %3006 = vadd.xlane.f32.xlu1 %v3003_v24  ;;  %v2339_v36 = vpop.xlane.xlu0 %2338  ;;  %vm2367_vm9 = vcmp.eq.s32.totalorder %v5448_v29, 25 }
 0x3df   : > { %v2377_v37 = vpop.xlane.xlu1 %2376  ;;  %v2294_v38 = vadd.f32 %v2293_v28, %v2292_v19  ;;  %v2310_v39 = vadd.f32 %v2309_v34, %v2308_v22  ;;  %v2326_v40 = vadd.f32 %v2325_v35, %v2324_v58  ;;  %v2342_v59 = vadd.f32 %v2341_v5, %v2339_v36  ;;  %vm2368_vm10 = vmand %vm1918_vm1, %vm2367_vm9 }
 0x3e1   : > { %v2297_v30 = vsel %vm2296_vm13, %v2294_v38, %v2279_v27  ;;  %v2311_v42 = vrot.slane %v2310_v39, 1  ;;  %v2327_v43 = vrot.slane %v2326_v40, 2  ;;  %v2343_v60 = vrot.slane %v2342_v59, 4  ;;  %2986 = vadd.xlane.f32.xlu0 %v2984_v41 }
 0x3e2   : > { %3024 = vadd.xlane.f32.xlu1 %v3021_v10  ;;  %v2357_v55 = vpop.xlane.xlu0 %2356  ;;  %vm2403_vm13 = vcmp.eq.s32.totalorder %v5448_v29, 27 }
 0x3e3   : > { %v2395_v48 = vpop.xlane.xlu1 %2394  ;;  %v2312_v2 = vadd.f32 %v2311_v42, %v2310_v39  ;;  %v2328_v50 = vadd.f32 %v2327_v43, %v2326_v40  ;;  %v2344_v51 = vadd.f32 %v2343_v60, %v2342_v59  ;;  %v2360_v49 = vadd.f32 %v2359_v17, %v2357_v55  ;;  %vm2404_vm14 = vmand %vm1918_vm1, %vm2403_vm13 }
 0x3e5   : > { %v2315_v52 = vsel %vm5849_vm2, %v2312_v2, %v2297_v30  ;;  %v2329_v33 = vrot.slane %v2328_v50, 1  ;;  %v2345_v54 = vrot.slane %v2344_v51, 2  ;;  %v2361_v3 = vrot.slane %v2360_v49, 4  ;;  %3004 = vadd.xlane.f32.xlu0 %v3002_v32 }
 0x3e6   : > { %3042 = vadd.xlane.f32.xlu1 %v3039_v14  ;;  %v2375_v23 = vpop.xlane.xlu0 %2374  ;;  %vm2439_vm2 = vcmp.eq.s32.totalorder %v5448_v29, 29 }
 0x3e7   : > { %v2413_v26 = vpop.xlane.xlu1 %2412  ;;  %v2330_v31 = vadd.f32 %v2329_v33, %v2328_v50  ;;  %v2346_v47 = vadd.f32 %v2345_v54, %v2344_v51  ;;  %v2362_v61 = vadd.f32 %v2361_v3, %v2360_v49  ;;  %v2378_v45 = vadd.f32 %v2377_v37, %v2375_v23  ;;  %vm2440_vm3 = vmand %vm1918_vm1, %vm2439_vm2 }
 0x3e9   : > { %v2333_v56 = vsel %vm2332_vm5, %v2330_v31, %v2315_v52  ;;  %v2347_v1 = vrot.slane %v2346_v47, 1  ;;  %v2363_v62 = vrot.slane %v2362_v61, 2  ;;  %v2379_v20 = vrot.slane %v2378_v45, 4  ;;  %3022 = vadd.xlane.f32.xlu0 %v3020_v21  ;;  %vm5911_vm5 = vmand %vm1918_vm1, %vm2457_vm4 }
 0x3ea   : > { %v2393_v53 = vpop.xlane.xlu0 %2392 }
 0x3eb   : > { %v2431_v6 = vpop.xlane.xlu1 %2430  ;;  %v2348_v7 = vadd.f32 %v2347_v1, %v2346_v47  ;;  %v2364_v8 = vadd.f32 %v2363_v62, %v2362_v61  ;;  %v2380_v9 = vadd.f32 %v2379_v20, %v2378_v45  ;;  %v2396_v11 = vadd.f32 %v2395_v48, %v2393_v53 }
 0x3ed   : > { %v2351_v12 = vsel %vm5874_vm8, %v2348_v7, %v2333_v56  ;;  %v2365_v13 = vrot.slane %v2364_v8, 1  ;;  %v2381_v15 = vrot.slane %v2380_v9, 2  ;;  %v2397_v16 = vrot.slane %v2396_v11, 4  ;;  %3040 = vadd.xlane.f32.xlu0 %v3038_v46 }
 0x3ee   : > { %v2411_v57 = vpop.xlane.xlu0 %2410  ;;  %vm2493_vm8 = vcmp.eq.s32.totalorder %v5448_v29, 32 }
 0x3ef   : > { %v2449_v63 = vpop.xlane.xlu1 %2448  ;;  %v2366_v17 = vadd.f32 %v2365_v13, %v2364_v8  ;;  %v2382_v18 = vadd.f32 %v2381_v15, %v2380_v9  ;;  %v2398_v19 = vadd.f32 %v2397_v16, %v2396_v11  ;;  %v2414_v22 = vadd.f32 %v2413_v26, %v2411_v57  ;;  %vm5937_vm9 = vmand %vm1918_vm1, %vm2493_vm8 }
 0x3f1   : > { %v2369_v58 = vsel %vm2368_vm10, %v2366_v17, %v2351_v12  ;;  %v2383_v0 = vrot.slane %v2382_v18, 1  ;;  %v2399_v4 = vrot.slane %v2398_v19, 2  ;;  %v2415_v24 = vrot.slane %v2414_v22, 4 }
 0x3f2   : > { %v2429_v28 = vpop.xlane.xlu0 %2428  ;;  %vm2511_vm10 = vcmp.eq.s32.totalorder %v5448_v29, 33 }
 0x3f3   : > { %v2467_v34 = vpop.xlane.xlu1 %2466  ;;  %v2384_v35 = vadd.f32 %v2383_v0, %v2382_v18  ;;  %v2400_v36 = vadd.f32 %v2399_v4, %v2398_v19  ;;  %v2416_v37 = vadd.f32 %v2415_v24, %v2414_v22  ;;  %v2432_v38 = vadd.f32 %v2431_v6, %v2429_v28 }
 0x3f5   : > { %v2387_v39 = vsel %vm5887_vm12, %v2384_v35, %v2369_v58  ;;  %v2401_v40 = vrot.slane %v2400_v36, 1  ;;  %v2417_v59 = vrot.slane %v2416_v37, 2  ;;  %v2433_v41 = vrot.slane %v2432_v38, 4 }
 0x3f6   : > { %v2447_v10 = vpop.xlane.xlu0 %2446 }
 0x3f7   : > { %v2485_v30 = vpop.xlane.xlu1 %2484  ;;  %v2402_v42 = vadd.f32 %v2401_v40, %v2400_v36  ;;  %v2418_v43 = vadd.f32 %v2417_v59, %v2416_v37  ;;  %v2434_v60 = vadd.f32 %v2433_v41, %v2432_v38  ;;  %v2450_v44 = vadd.f32 %v2449_v63, %v2447_v10 }
 0x3f9   : > { %v2405_v55 = vsel %vm2404_vm14, %v2402_v42, %v2387_v39  ;;  %v2419_v48 = vrot.slane %v2418_v43, 1  ;;  %v2435_v2 = vrot.slane %v2434_v60, 2  ;;  %v2451_v50 = vrot.slane %v2450_v44, 4 }
 0x3fa   : > { %v2465_v49 = vpop.xlane.xlu0 %2464 }
 0x3fb   : > { %v2503_v32 = vpop.xlane.xlu1 %2502  ;;  %v2420_v14 = vadd.f32 %v2419_v48, %v2418_v43  ;;  %v2436_v52 = vadd.f32 %v2435_v2, %v2434_v60  ;;  %v2452_v33 = vadd.f32 %v2451_v50, %v2450_v44  ;;  %v2468_v54 = vadd.f32 %v2467_v34, %v2465_v49 }
 0x3fd   : > { %v2423_v3 = vsel %vm5899_vm0, %v2420_v14, %v2405_v55  ;;  %v2437_v23 = vrot.slane %v2436_v52, 1  ;;  %v2453_v26 = vrot.slane %v2452_v33, 2  ;;  %v2469_v31 = vrot.slane %v2468_v54, 4 }
 0x3fe   : > { %v2483_v47 = vpop.xlane.xlu0 %2482 }
 0x3ff   : > { %v2521_v61 = vpop.xlane.xlu1 %2520  ;;  %v2438_v45 = vadd.f32 %v2437_v23, %v2436_v52  ;;  %v2454_v21 = vadd.f32 %v2453_v26, %v2452_v33  ;;  %v2470_v56 = vadd.f32 %v2469_v31, %v2468_v54  ;;  %v2486_v1 = vadd.f32 %v2485_v30, %v2483_v47 }
 0x401   : > { %v2441_v62 = vsel %vm2440_vm3, %v2438_v45, %v2423_v3  ;;  %v2455_v20 = vrot.slane %v2454_v21, 1  ;;  %v2471_v5 = vrot.slane %v2470_v56, 2  ;;  %v2487_v53 = vrot.slane %v2486_v1, 4 }
 0x402   : > { %v2501_v7 = vpop.xlane.xlu0 %2500 }
 0x403   : > { %v2539_v8 = vpop.xlane.xlu1 %2538  ;;  %v2456_v9 = vadd.f32 %v2455_v20, %v2454_v21  ;;  %v2472_v11 = vadd.f32 %v2471_v5, %v2470_v56  ;;  %v2488_v46 = vadd.f32 %v2487_v53, %v2486_v1  ;;  %v2504_v12 = vadd.f32 %v2503_v32, %v2501_v7 }
 0x405   : > { %v2459_v13 = vsel %vm5911_vm5, %v2456_v9, %v2441_v62  ;;  %v2473_v15 = vrot.slane %v2472_v11, 1  ;;  %v2489_v16 = vrot.slane %v2488_v46, 2  ;;  %v2505_v57 = vrot.slane %v2504_v12, 4 }
 0x406   : > { %v2519_v63 = vpop.xlane.xlu0 %2518 }
 0x407   : > { %v5922_v17 = vpop.xlane.xlu1 %2556  ;;  %v2474_v18 = vadd.f32 %v2473_v15, %v2472_v11  ;;  %v2490_v19 = vadd.f32 %v2489_v16, %v2488_v46  ;;  %v2506_v22 = vadd.f32 %v2505_v57, %v2504_v12  ;;  %v2522_v58 = vadd.f32 %v2521_v61, %v2519_v63 }
 0x409   : > { %v5925_v0 = vsel %vm2476_vm7, %v2474_v18, %v2459_v13  ;;  %v2491_v4 = vrot.slane %v2490_v19, 1  ;;  %v2507_v24 = vrot.slane %v2506_v22, 2  ;;  %v2523_v27 = vrot.slane %v2522_v58, 4 }
 0x40a   : > { %v2537_v34 = vpop.xlane.xlu0 %2536 }
 0x40b   : > { %v5942_v35 = vpop.xlane.xlu1 %2574  ;;  %v5946_v36 = vadd.f32 %v2491_v4, %v2490_v19  ;;  %v5948_v37 = vadd.f32 %v2507_v24, %v2506_v22  ;;  %v5950_v38 = vadd.f32 %v2523_v27, %v2522_v58  ;;  %v5952_v39 = vadd.f32 %v2539_v8, %v2537_v34 }
 0x40c   : > { %4488 = shalt.err (!%p4485_p8)
}
 0x40d   : > { %s4489_s30 = scalar_lea.hbm %s5932_s15, 256  ;;  %s4493_s12 = scalar_lea.hbm %s6321_s6, 512 }
 0x40e   : > { %p4490_p12 = scmp.ne.s32.totalorder %s5932_s15, %s4489_s30  ;;  %p4494_p10 = scmp.lt.u32.totalorder %s5932_s15, %s6321_s6 }
 0x40f   : > { %p4495_p11 = scmp.lt.u32.totalorder %s4493_s12, %s4489_s30  ;;  %p4497_p0 = scmp.lt.u32.totalorder %s4489_s30, %s5932_s15 }
 0x410   : > { %p4491_p6 = pnand %p4490_p12, %p6386_p5 }
 0x411   : > { %p4496_p13 = por %p4495_p11, %p4494_p10 }
 0x412   : > { %p4492_p3 = pneg %p4491_p6 }
 0x413   : > { %p4498_p9 = por %p4497_p0, %p4496_p13 }
 0x415   : > { %p4499_p1 = pnand %p4498_p9, %p4492_p3 }
 0x417   : > { %4502 = shalt.err (!%p4499_p1)
}
 0x418   : > { %s4634_s13 = smov 128   ;;  %s4635_s19 = smov 8   ;;  %v2495_v40 = vsel %vm5937_vm9, %v5946_v36, %v5925_v0  ;;  %v2509_v59 = vrot.slane %v5948_v37, 1  ;;  %v2525_v41 = vrot.slane %v5950_v38, 2  ;;  %v2541_v10 = vrot.slane %v5952_v39, 4 }
 0x419   : > { %4249 = dma.vmem_to_hbm [thread:$0]  (%p6386_p5), %s5944_s3, 256, %s5932_s15, %s5956_s22, %s4634_s13, %s4634_s13, %s4635_s19  }
 0x41a   : > { %s5988_s30 = scalar_lea.hbm %s6320_s5, %s3367_s8  ;;  %s3056_s15 = scalar_lea.sflag [#allocation4], %s4854_s0 }
 0x41b   : > { %s4503_s8 = scalar_lea.vmem %s5992_s11, 256  ;;  %s4636_s14 = smov [#allocation8]  }
 0x41c   : > { %p4504_p2 = scmp.ne.s32.totalorder %s5992_s11, %s4503_s8  ;;  %s4507_s3 = sshll.u32 %s4636_s14, 4  ;;  %s4508_s3 = int_to_ptr.vmem [resolvable:$false] %s4507_s3 }
 0x41d   : > { %s4509_s17 = scalar_lea.vmem %s4508_s3, 512  ;;  %p4510_p8 = scmp.lt.s32.totalorder %s5992_s11, %s4508_s3 }
 0x41e   : > { %p4505_p7 = pnand %p4504_p2, %p6386_p5  ;;  %p4511_p12 = scmp.lt.s32.totalorder %s4509_s17, %s4503_s8 }
 0x420   : > { %p4506_p4 = pneg %p4505_p7  ;;  %p4512_p6 = por %p4511_p12, %p4510_p8 }
 0x422   : > { %p4513_p3 = pnand %p4512_p6, %p4506_p4 }
 0x424   : > { %4516 = shalt.err (!%p4513_p3)
}
 0x425   : > { %s4517_s16 = scalar_lea.hbm %s5988_s30, 256  ;;  %s4521_s18 = scalar_lea.hbm %s6320_s5, 512 }
 0x426   : > { %p4518_p10 = scmp.ne.s32.totalorder %s5988_s30, %s4517_s16  ;;  %p4522_p0 = scmp.lt.u32.totalorder %s5988_s30, %s6320_s5 }
 0x427   : > { %p4523_p9 = scmp.lt.u32.totalorder %s4521_s18, %s4517_s16  ;;  %p4525_p2 = scmp.lt.u32.totalorder %s4517_s16, %s5988_s30 }
 0x428   : > { %p4519_p11 = pnand %p4518_p10, %p6386_p5 }
 0x429   : > { %p4524_p1 = por %p4523_p9, %p4522_p0 }
 0x42a   : > { %p4520_p13 = pneg %p4519_p11 }
 0x42b   : > { %p4526_p7 = por %p4525_p2, %p4524_p1 }
 0x42d   : > { %p4527_p4 = pnand %p4526_p7, %p4520_p13 }
 0x42f   : > { %4530 = shalt.err (!%p4527_p4)
}
 0x430   : > { %4248 = dma.vmem_to_hbm [thread:$0]  (%p6386_p5), %s5992_s11, 256, %s5988_s30, %s3056_s15, %s4634_s13, %s4634_s13, %s4635_s19   ;;  %vm2512_vm11 = vmand %vm1918_vm1, %vm2511_vm10  ;;  %vm2529_vm12 = vcmp.eq.s32.totalorder %v5448_v29, 34  ;;  %v2555_v30 = vpop.xlane.xlu0 %2554  ;;  %v2593_v42 = vpop.xlane.xlu1 %2592  ;;  %v2510_v43 = vadd.f32 %v2509_v59, %v5948_v37  ;;  %v2526_v60 = vadd.f32 %v2525_v41, %v5950_v38  ;;  %v2542_v44 = vadd.f32 %v2541_v10, %v5952_v39 }
 0x431   : > { %v2558_v55 = vadd.f32 %v5922_v17, %v2555_v30  ;;  %vm6039_vm13 = vmand %vm1918_vm1, %vm2529_vm12  ;;  %vm2547_vm14 = vcmp.eq.s32.totalorder %v5448_v29, 35  ;;  %vm2565_vm0 = vcmp.eq.s32.totalorder %v5448_v29, 36  ;;  %vm2583_vm3 = vcmp.eq.s32.totalorder %v5448_v29, 37  ;;  %s3339_s11 = sshll.u32 %s4854_s0, 3  ;;  %s3363_s0 = sshll.u32 %s4617_s27, 7 }
 0x432   : > { %v2513_v48 = vsel %vm2512_vm11, %v2510_v43, %v2495_v40  ;;  %v2527_v2 = vrot.slane %v2526_v60, 1  ;;  %v2543_v50 = vrot.slane %v2542_v44, 2  ;;  %vm2548_vm15 = vmand %vm1918_vm1, %vm2547_vm14  ;;  %vm2601_vm5 = vcmp.eq.s32.totalorder %v5448_v29, 38  ;;  %s424_s13 = scalar_lea.vmem [#allocation11], %s3339_s11  ;;  %s6264_s8 = scalar_lea.hbm %s6322_s7, %s3363_s0 }
 0x433   : > { %v2559_v51 = vrot.slane %v2558_v55, 4  ;;  %vm6052_vm2 = vmand %vm1918_vm1, %vm2565_vm0  ;;  %vm2619_vm7 = vcmp.eq.s32.totalorder %v5448_v29, 39  ;;  %vm2637_vm9 = vcmp.eq.s32.totalorder %v5448_v29, 40  ;;  %vm2655_vm11 = vcmp.eq.s32.totalorder %v5448_v29, 41  ;;  %s3116_s19 = sshll.u32 %s424_s13, 4  ;;  %s4637_s14 = smov [#allocation11]   ;;  %s6266_s19 = int_to_ptr.vmem [resolvable:$true] %s3116_s19 }
 0x434   : > { %v2573_v32 = vpop.xlane.xlu0 %2572  ;;  %v2611_v14 = vpop.xlane.xlu1 %2610  ;;  %v2528_v52 = vadd.f32 %v2527_v2, %v2526_v60  ;;  %v2544_v33 = vadd.f32 %v2543_v50, %v2542_v44  ;;  %vm2584_vm4 = vmand %vm1918_vm1, %vm2583_vm3  ;;  %vm2691_vm14 = vcmp.eq.s32.totalorder %v5448_v29, 43  ;;  %vm2709_vm0 = vcmp.eq.s32.totalorder %v5448_v29, 44  ;;  %s4531_s27 = scalar_lea.vmem %s6266_s19, 128  ;;  %s4535_s3 = sshll.u32 %s4637_s14, 4  ;;  %s4536_s3 = int_to_ptr.vmem [resolvable:$false] %s4535_s3 }
 0x435   : > { %v2560_v54 = vadd.f32 %v2559_v51, %v2558_v55  ;;  %v2576_v3 = vadd.f32 %v5942_v35, %v2573_v32  ;;  %vm6064_vm6 = vmand %vm1918_vm1, %vm2601_vm5  ;;  %vm2745_vm3 = vcmp.eq.s32.totalorder %v5448_v29, 46  ;;  %vm2763_vm5 = vcmp.eq.s32.totalorder %v5448_v29, 47  ;;  %p4532_p8 = scmp.ne.s32.totalorder %s6266_s19, %s4531_s27  ;;  %s4537_s17 = scalar_lea.vmem %s4536_s3, 256 }
 0x436   : > { %v2531_v23 = vsel %vm6039_vm13, %v2528_v52, %v2513_v48  ;;  %v2545_v26 = vrot.slane %v2544_v33, 1  ;;  %vm2620_vm8 = vmand %vm1918_vm1, %vm2619_vm7  ;;  %vm2673_vm13 = vcmp.eq.s32.totalorder %v5448_v29, 42  ;;  %vm2781_vm7 = vcmp.eq.s32.totalorder %v5448_v29, 48  ;;  %p4538_p3 = scmp.lt.s32.totalorder %s6266_s19, %s4536_s3  ;;  %p4539_p10 = scmp.lt.s32.totalorder %s4537_s17, %s4531_s27 }
 0x437   : > { %v2561_v31 = vrot.slane %v2560_v54, 2  ;;  %v2577_v47 = vrot.slane %v2576_v3, 4  ;;  %vm2638_vm10 = vmand %vm1918_vm1, %vm2637_vm9  ;;  %p4533_p12 = pnand %p4532_p8, %p6386_p5 }
 0x438   : > { %v2591_v61 = vpop.xlane.xlu0 %2590  ;;  %v2629_v45 = vpop.xlane.xlu1 %2628  ;;  %v2546_v21 = vadd.f32 %v2545_v26, %v2544_v33  ;;  %vm2656_vm12 = vmand %vm1918_vm1, %vm2655_vm11  ;;  %p4540_p11 = por %p4539_p10, %p4538_p3 }
 0x439   : > { %v2562_v56 = vadd.f32 %v2561_v31, %v2560_v54  ;;  %v2578_v1 = vadd.f32 %v2577_v47, %v2576_v3  ;;  %v2594_v62 = vadd.f32 %v2593_v42, %v2591_v61  ;;  %vm6128_vm11 = vmand %vm1918_vm1, %vm2745_vm3  ;;  %vm2907_vm3 = vcmp.eq.s32.totalorder %v5448_v29, 55  ;;  %p4534_p6 = pneg %p4533_p12 }
 0x43a   : > { %v2549_v20 = vsel %vm2548_vm15, %v2546_v21, %v2531_v23  ;;  %vm6087_vm15 = vmand %vm1918_vm1, %vm2673_vm13  ;;  %vm2853_vm13 = vcmp.eq.s32.totalorder %v5448_v29, 52 }
 0x43b   : > { %v2563_v5 = vrot.slane %v2562_v56, 1  ;;  %v2579_v53 = vrot.slane %v2578_v1, 2  ;;  %v2595_v6 = vrot.slane %v2594_v62, 4  ;;  %p4541_p13 = pnand %p4540_p11, %p4534_p6 }
 0x43c   : > { %v2609_v8 = vpop.xlane.xlu0 %2608  ;;  %v2647_v9 = vpop.xlane.xlu1 %2646 }
 0x43d   : > { %v2564_v11 = vadd.f32 %v2563_v5, %v2562_v56  ;;  %v2580_v46 = vadd.f32 %v2579_v53, %v2578_v1  ;;  %v2596_v12 = vadd.f32 %v2595_v6, %v2594_v62  ;;  %v2612_v13 = vadd.f32 %v2611_v14, %v2609_v8 }
 0x43f   : > { %v2567_v15 = vsel %vm6052_vm2, %v2564_v11, %v2549_v20  ;;  %v2581_v16 = vrot.slane %v2580_v46, 1  ;;  %v2597_v57 = vrot.slane %v2596_v12, 2  ;;  %v2613_v63 = vrot.slane %v2612_v13, 4 }
 0x440   : > { %v2627_v17 = vpop.xlane.xlu0 %2626  ;;  %v2665_v18 = vpop.xlane.xlu1 %2664  ;;  %vm2727_vm2 = vcmp.eq.s32.totalorder %v5448_v29, 45 }
 0x441   : > { %v2582_v19 = vadd.f32 %v2581_v16, %v2580_v46  ;;  %v2598_v22 = vadd.f32 %v2597_v57, %v2596_v12  ;;  %v2614_v58 = vadd.f32 %v2613_v63, %v2612_v13  ;;  %v2630_v0 = vadd.f32 %v2629_v45, %v2627_v17  ;;  %vm6119_vm9 = vmand %vm1918_vm1, %vm2727_vm2 }
 0x442   : > { %vm2889_vm2 = vcmp.eq.s32.totalorder %v5448_v29, 54 }
 0x443   : > { %v2585_v4 = vsel %vm2584_vm4, %v2582_v19, %v2567_v15  ;;  %v2599_v24 = vrot.slane %v2598_v22, 1  ;;  %v2615_v27 = vrot.slane %v2614_v58, 2  ;;  %v2631_v28 = vrot.slane %v2630_v0, 4  ;;  %vm2692_vm4 = vmand %vm1918_vm1, %vm2691_vm14 }
 0x444   : > { %v2645_v35 = vpop.xlane.xlu0 %2644  ;;  %v2683_v36 = vpop.xlane.xlu1 %2682  ;;  %vm2764_vm14 = vmand %vm1918_vm1, %vm2763_vm5  ;;  %vm2925_vm5 = vcmp.eq.s32.totalorder %v5448_v29, 56 }
 0x445   : > { %v2600_v37 = vadd.f32 %v2599_v24, %v2598_v22  ;;  %v2616_v38 = vadd.f32 %v2615_v27, %v2614_v58  ;;  %v2632_v39 = vadd.f32 %v2631_v28, %v2630_v0  ;;  %v2648_v40 = vadd.f32 %v2647_v9, %v2645_v35 }
 0x447   : > { %v2603_v59 = vsel %vm6064_vm6, %v2600_v37, %v2585_v4  ;;  %v2617_v41 = vrot.slane %v2616_v38, 1  ;;  %v2633_v10 = vrot.slane %v2632_v39, 2  ;;  %v2649_v30 = vrot.slane %v2648_v40, 4  ;;  %vm6107_vm6 = vmand %vm1918_vm1, %vm2709_vm0 }
 0x448   : > { %v2663_v42 = vpop.xlane.xlu0 %2662  ;;  %v2701_v43 = vpop.xlane.xlu1 %2700  ;;  %vm6147_vm0 = vmand %vm1918_vm1, %vm2781_vm7  ;;  %vm2943_vm7 = vcmp.eq.s32.totalorder %v5448_v29, 57 }
 0x449   : > { %v2618_v60 = vadd.f32 %v2617_v41, %v2616_v38  ;;  %v2634_v44 = vadd.f32 %v2633_v10, %v2632_v39  ;;  %v2650_v55 = vadd.f32 %v2649_v30, %v2648_v40  ;;  %v2666_v7 = vadd.f32 %v2665_v18, %v2663_v42 }
 0x44b   : > { %v2621_v48 = vsel %vm2620_vm8, %v2618_v60, %v2603_v59  ;;  %v2635_v2 = vrot.slane %v2634_v44, 1  ;;  %v2651_v50 = vrot.slane %v2650_v55, 2  ;;  %v2667_v46 = vrot.slane %v2666_v7, 4 }
 0x44c   : > { %v2681_v51 = vpop.xlane.xlu0 %2680  ;;  %v2719_v49 = vpop.xlane.xlu1 %2718  ;;  %vm2799_vm8 = vcmp.eq.s32.totalorder %v5448_v29, 49 }
 0x44d   : > { %v2636_v32 = vadd.f32 %v2635_v2, %v2634_v44  ;;  %v2652_v14 = vadd.f32 %v2651_v50, %v2650_v55  ;;  %v2684_v11 = vadd.f32 %v2683_v36, %v2681_v51  ;;  %v2668_v57 = vadd.f32 %v2667_v46, %v2666_v7 }
 0x44f   : > { %v2639_v52 = vsel %vm2638_vm10, %v2636_v32, %v2621_v48  ;;  %v2653_v33 = vrot.slane %v2652_v14, 1  ;;  %v2685_v16 = vrot.slane %v2684_v11, 4  ;;  %v2669_v4 = vrot.slane %v2668_v57, 2 }
 0x450   : > { %v2699_v54 = vpop.xlane.xlu0 %2698  ;;  %v2737_v3 = vpop.xlane.xlu1 %2736  ;;  %vm2817_vm10 = vcmp.eq.s32.totalorder %v5448_v29, 50 }
 0x451   : > { %v2654_v23 = vadd.f32 %v2653_v33, %v2652_v14  ;;  %v2702_v12 = vadd.f32 %v2701_v43, %v2699_v54  ;;  %v2686_v58 = vadd.f32 %v2685_v16, %v2684_v11  ;;  %v2670_v37 = vadd.f32 %v2669_v4, %v2668_v57 }
 0x453   : > { %v6079_v26 = vsel %vm2656_vm12, %v2654_v23, %v2639_v52  ;;  %v2703_v63 = vrot.slane %v2702_v12, 4  ;;  %v2687_v35 = vrot.slane %v2686_v58, 2  ;;  %v2671_v60 = vrot.slane %v2670_v37, 1 }
 0x454   : > { %v2717_v31 = vpop.xlane.xlu0 %2716  ;;  %v2755_v47 = vpop.xlane.xlu1 %2754  ;;  %vm2835_vm12 = vcmp.eq.s32.totalorder %v5448_v29, 51 }
 0x455   : > { %v2720_v17 = vadd.f32 %v2719_v49, %v2717_v31  ;;  %v2704_v24 = vadd.f32 %v2703_v63, %v2702_v12  ;;  %v2688_v30 = vadd.f32 %v2687_v35, %v2686_v58  ;;  %v2672_v54 = vadd.f32 %v2671_v60, %v2670_v37 }
 0x457   : > { %v2721_v27 = vrot.slane %v2720_v17, 4  ;;  %v2705_v38 = vrot.slane %v2704_v24, 2  ;;  %v2689_v14 = vrot.slane %v2688_v30, 1  ;;  %v2675_v7 = vsel %vm6087_vm15, %v2672_v54, %v6079_v26 }
 0x458   : > { %v2735_v61 = vpop.xlane.xlu0 %2734  ;;  %v2773_v45 = vpop.xlane.xlu1 %2772  ;;  %vm2871_vm15 = vcmp.eq.s32.totalorder %v5448_v29, 53 }
 0x459   : > { %v2738_v0 = vadd.f32 %v2737_v3, %v2735_v61  ;;  %v2722_v39 = vadd.f32 %v2721_v27, %v2720_v17  ;;  %v2706_v55 = vadd.f32 %v2705_v38, %v2704_v24 }
 0x45b   : > { %v2739_v36 = vrot.slane %v2738_v0, 4  ;;  %v2723_v48 = vrot.slane %v2722_v39, 2 }
 0x45c   : > { %v2753_v21 = vpop.xlane.xlu0 %2752  ;;  %v2791_v56 = vpop.xlane.xlu1 %2790 }
 0x45d   : > { %v2756_v18 = vadd.f32 %v2755_v47, %v2753_v21  ;;  %v2740_v42 = vadd.f32 %v2739_v36, %v2738_v0  ;;  %v2707_v47 = vrot.slane %v2706_v55, 1  ;;  %v2724_v61 = vadd.f32 %v2723_v48, %v2722_v39 }
 0x45f   : > { %v2757_v59 = vrot.slane %v2756_v18, 4  ;;  %v2741_v52 = vrot.slane %v2740_v42, 2  ;;  %v2708_v46 = vadd.f32 %v2707_v47, %v2706_v55  ;;  %v2725_v12 = vrot.slane %v2724_v61, 1 }
 0x460   : > { %v2771_v1 = vpop.xlane.xlu0 %2770  ;;  %v2809_v62 = vpop.xlane.xlu1 %2808 }
 0x461   : > { %v2774_v40 = vadd.f32 %v2773_v45, %v2771_v1  ;;  %v2758_v50 = vadd.f32 %v2757_v59, %v2756_v18  ;;  %v2726_v37 = vadd.f32 %v2725_v12, %v2724_v61 }
 0x463   : > { %v2775_v2 = vrot.slane %v2774_v40, 4  ;;  %v2759_v21 = vrot.slane %v2758_v50, 2 }
 0x464   : > { %v2789_v20 = vpop.xlane.xlu0 %2788  ;;  %v2827_v5 = vpop.xlane.xlu1 %2826 }
 0x465   : > { %v2792_v43 = vadd.f32 %v2791_v56, %v2789_v20  ;;  %v2776_v45 = vadd.f32 %v2775_v2, %v2774_v40  ;;  %v2760_v57 = vadd.f32 %v2759_v21, %v2758_v50 }
 0x467   : > { %v2793_v33 = vrot.slane %v2792_v43, 4  ;;  %v2761_v40 = vrot.slane %v2760_v57, 1 }
 0x468   : > { %v2807_v53 = vpop.xlane.xlu0 %2806  ;;  %v2845_v6 = vpop.xlane.xlu1 %2844 }
 0x469   : > { %v2810_v44 = vadd.f32 %v2809_v62, %v2807_v53  ;;  %v2742_v53 = vadd.f32 %v2741_v52, %v2740_v42 }
 0x46b   : > { %v2811_v3 = vrot.slane %v2810_v44, 4  ;;  %v2743_v4 = vrot.slane %v2742_v53, 1 }
 0x46c   : > { %v2825_v8 = vpop.xlane.xlu0 %2824  ;;  %v2863_v9 = vpop.xlane.xlu1 %2862 }
 0x46d   : > { %v2828_v51 = vadd.f32 %v2827_v5, %v2825_v8  ;;  %v2690_v5 = vadd.f32 %v2689_v14, %v2688_v30  ;;  %v2812_v8 = vadd.f32 %v2811_v3, %v2810_v44  ;;  %v2744_v42 = vadd.f32 %v2743_v4, %v2742_v53 }
 0x46f   : > { %v2829_v56 = vrot.slane %v2828_v51, 4  ;;  %v2693_v0 = vsel %vm2692_vm4, %v2690_v5, %v2675_v7  ;;  %vm6157_vm4 = vmand %vm1918_vm1, %vm2799_vm8 }
 0x470   : > { %v2843_v13 = vpop.xlane.xlu0 %2842  ;;  %v6081_v15 = vpop.xlane.xlu1 %2880  ;;  %v2711_v36 = vsel %vm6107_vm6, %v2708_v46, %v2693_v0  ;;  %vm6168_vm6 = vmand %vm1918_vm1, %vm2817_vm10 }
 0x471   : > { %v2846_v23 = vadd.f32 %v2845_v6, %v2843_v13  ;;  %v2794_v6 = vadd.f32 %v2793_v33, %v2792_v43  ;;  %v2777_v13 = vrot.slane %v2776_v45, 2  ;;  %v2830_v63 = vadd.f32 %v2829_v56, %v2828_v51  ;;  %vm2836_vm8 = vmand %vm1918_vm1, %vm2835_vm12 }
 0x472   : > { %v2762_v33 = vadd.f32 %v2761_v40, %v2760_v57  ;;  %vm2872_vm10 = vmand %vm1918_vm1, %vm2871_vm15 }
 0x473   : > { %v2778_v38 = vadd.f32 %v2777_v13, %v2776_v45  ;;  %v2831_v59 = vrot.slane %v2830_v63, 2  ;;  %vm6200_vm12 = vmand %vm1918_vm1, %vm2889_vm2  ;;  %vm2997_vm2 = vcmp.eq.s32.totalorder %v5448_v29, 60 }
 0x474   : > { %v2861_v19 = vpop.xlane.xlu0 %2860  ;;  %v2899_v22 = vpop.xlane.xlu1 %2898  ;;  %vm6213_vm15 = vmand %vm1918_vm1, %vm2925_vm5 }
 0x475   : > { %v2864_v1 = vadd.f32 %v2863_v9, %v2861_v19  ;;  %v2847_v9 = vrot.slane %v2846_v23, 4  ;;  %v2832_v54 = vadd.f32 %v2831_v59, %v2830_v63 }
 0x477   : > { %v2865_v17 = vrot.slane %v2864_v1, 4  ;;  %v2848_v27 = vadd.f32 %v2847_v9, %v2846_v23  ;;  %v2833_v46 = vrot.slane %v2832_v54, 1 }
 0x478   : > { %v2879_v28 = vpop.xlane.xlu0 %2878  ;;  %v2917_v34 = vpop.xlane.xlu1 %2916 }
 0x479   : > { %v2882_v11 = vadd.f32 %v6081_v15, %v2879_v28  ;;  %v2795_v15 = vrot.slane %v2794_v6, 2  ;;  %v2849_v2 = vrot.slane %v2848_v27, 2 }
 0x47b   : > { %v2883_v18 = vrot.slane %v2882_v11, 4  ;;  %v2796_v43 = vadd.f32 %v2795_v15, %v2794_v6 }
 0x47c   : > { %v2897_v41 = vpop.xlane.xlu0 %2896  ;;  %v2935_v10 = vpop.xlane.xlu1 %2934 }
 0x47d   : > { %v2900_v16 = vadd.f32 %v2899_v22, %v2897_v41  ;;  %v2813_v22 = vrot.slane %v2812_v8, 2  ;;  %v2866_v41 = vadd.f32 %v2865_v17, %v2864_v1  ;;  %v2884_v50 = vadd.f32 %v2883_v18, %v2882_v11 }
 0x47e   : > { %v2797_v45 = vrot.slane %v2796_v43, 1 }
 0x47f   : > { %v2814_v48 = vadd.f32 %v2813_v22, %v2812_v8  ;;  %v2867_v3 = vrot.slane %v2866_v41, 2 }
 0x480   : > { %v2915_v49 = vpop.xlane.xlu0 %2914  ;;  %v2953_v32 = vpop.xlane.xlu1 %2952  ;;  %v2798_v26 = vadd.f32 %v2797_v45, %v2796_v43 }
 0x481   : > { %v2918_v19 = vadd.f32 %v2917_v34, %v2915_v49  ;;  %v2901_v34 = vrot.slane %v2900_v16, 4  ;;  %v2729_v49 = vsel %vm6119_vm9, %v2726_v37, %v2711_v36  ;;  %v2815_v1 = vrot.slane %v2814_v48, 1  ;;  %vm6185_vm9 = vmand %vm1918_vm1, %vm2853_vm13 }
 0x482   : > { %v2747_v61 = vsel %vm6128_vm11, %v2744_v42, %v2729_v49  ;;  %v2868_v12 = vadd.f32 %v2867_v3, %v2866_v41  ;;  %v2834_v36 = vadd.f32 %v2833_v46, %v2832_v54  ;;  %vm2961_vm11 = vcmp.eq.s32.totalorder %v5448_v29, 58  ;;  %vm2908_vm13 = vmand %vm1918_vm1, %vm2907_vm3 }
 0x483   : > { %v2902_v14 = vadd.f32 %v2901_v34, %v2900_v16  ;;  %v2765_v9 = vsel %vm2764_vm14, %v2762_v33, %v2747_v61  ;;  %vm2979_vm14 = vcmp.eq.s32.totalorder %v5448_v29, 59  ;;  %vm3015_vm3 = vcmp.eq.s32.totalorder %v5448_v29, 61 }
 0x484   : > { %v2933_v62 = vpop.xlane.xlu0 %2932  ;;  %v2971_v20 = vpop.xlane.xlu1 %2970  ;;  %v2869_v37 = vrot.slane %v2868_v12, 1  ;;  %vm2980_vm5 = vmand %vm1918_vm1, %vm2979_vm14 }
 0x485   : > { %v2936_v24 = vadd.f32 %v2935_v10, %v2933_v62  ;;  %v2919_v10 = vrot.slane %v2918_v19, 4  ;;  %v2850_v62 = vadd.f32 %v2849_v2, %v2848_v27  ;;  %v2903_v6 = vrot.slane %v2902_v14, 2 }
 0x486   : > { %v2870_v49 = vadd.f32 %v2869_v37, %v2868_v12 }
 0x487   : > { %v2937_v60 = vrot.slane %v2936_v24, 4  ;;  %v2920_v23 = vadd.f32 %v2919_v10, %v2918_v19  ;;  %v2851_v0 = vrot.slane %v2850_v62, 1  ;;  %v2904_v18 = vadd.f32 %v2903_v6, %v2902_v14 }
 0x488   : > { %v2951_v58 = vpop.xlane.xlu0 %2950  ;;  %v2989_v35 = vpop.xlane.xlu1 %2988 }
 0x489   : > { %v2954_v28 = vadd.f32 %v2953_v32, %v2951_v58  ;;  %v2779_v32 = vrot.slane %v2778_v38, 1  ;;  %v2938_v21 = vadd.f32 %v2937_v60, %v2936_v24  ;;  %v2921_v13 = vrot.slane %v2920_v23, 2 }
 0x48a   : > { %v2816_v58 = vadd.f32 %v2815_v1, %v2814_v48  ;;  %v2852_v42 = vadd.f32 %v2851_v0, %v2850_v62  ;;  %v2905_v55 = vrot.slane %v2904_v18, 1 }
 0x48b   : > { %v2955_v51 = vrot.slane %v2954_v28, 4  ;;  %v2780_v53 = vadd.f32 %v2779_v32, %v2778_v38  ;;  %v2939_v57 = vrot.slane %v2938_v21, 2  ;;  %v2922_v38 = vadd.f32 %v2921_v13, %v2920_v23 }
 0x48c   : > { %v2969_v30 = vpop.xlane.xlu0 %2968  ;;  %v3007_v47 = vpop.xlane.xlu1 %3006 }
 0x48d   : > { %v2972_v44 = vadd.f32 %v2971_v20, %v2969_v30  ;;  %v2885_v20 = vrot.slane %v2884_v50, 2  ;;  %v2956_v5 = vadd.f32 %v2955_v51, %v2954_v28  ;;  %v2783_v22 = vsel %vm6147_vm0, %v2780_v53, %v2765_v9  ;;  %vm2944_vm0 = vmand %vm1918_vm1, %vm2943_vm7 }
 0x48e   : > { %v2801_v40 = vsel %vm6157_vm4, %v2798_v26, %v2783_v22  ;;  %v2940_v59 = vadd.f32 %v2939_v57, %v2938_v21  ;;  %v2923_v32 = vrot.slane %v2922_v38, 1  ;;  %vm6230_vm4 = vmand %vm1918_vm1, %vm2961_vm11 }
 0x48f   : > { %v2973_v52 = vrot.slane %v2972_v44, 4  ;;  %v2886_v4 = vadd.f32 %v2885_v20, %v2884_v50  ;;  %v2957_v15 = vrot.slane %v2956_v5, 2  ;;  %v2819_v30 = vsel %vm6168_vm6, %v2816_v58, %v2801_v40  ;;  %vm6243_vm7 = vmand %vm1918_vm1, %vm2997_vm2 }
 0x490   : > { %v2987_v31 = vpop.xlane.xlu0 %2986  ;;  %v3025_v24 = vpop.xlane.xlu1 %3024  ;;  %v2837_v51 = vsel %vm2836_vm8, %v2834_v36, %v2819_v30  ;;  %v2941_v54 = vrot.slane %v2940_v59, 1  ;;  %v2924_v53 = vadd.f32 %v2923_v32, %v2922_v38  ;;  %vm3033_vm6 = vcmp.eq.s32.totalorder %v5448_v29, 62 }
 0x491   : > { %v2990_v56 = vadd.f32 %v2989_v35, %v2987_v31  ;;  %v2974_v7 = vadd.f32 %v2973_v52, %v2972_v44  ;;  %v2887_v43 = vrot.slane %v2886_v4, 1  ;;  %v2958_v60 = vadd.f32 %v2957_v15, %v2956_v5 }
 0x492   : > { %vm3051_vm8 = vcmp.eq.s32.totalorder %v5448_v29, 63 }
 0x493   : > { %v2991_v8 = vrot.slane %v2990_v56, 4  ;;  %v2975_v28 = vrot.slane %v2974_v7, 2  ;;  %v2888_v61 = vadd.f32 %v2887_v43, %v2886_v4  ;;  %v2959_v45 = vrot.slane %v2958_v60, 1  ;;  %vm3052_vm11 = vmand %vm1918_vm1, %vm3051_vm8 }
 0x494   : > { %v3005_v16 = vpop.xlane.xlu0 %3004  ;;  %v3043_v52 = vpop.xlane.xlu1 %3042 }
 0x495   : > { %v2992_v63 = vadd.f32 %v2991_v8, %v2990_v56  ;;  %v3008_v17 = vadd.f32 %v3007_v47, %v3005_v16  ;;  %v2976_v48 = vadd.f32 %v2975_v28, %v2974_v7  ;;  %v2855_v47 = vsel %vm6185_vm9, %v2852_v42, %v2837_v51  ;;  %vm3016_vm9 = vmand %vm1918_vm1, %vm3015_vm3 }
 0x496   : > { %v2906_v56 = vadd.f32 %v2905_v55, %v2904_v18  ;;  %v2873_v5 = vsel %vm2872_vm10, %v2870_v49, %v2855_v47  ;;  %v2942_v8 = vadd.f32 %v2941_v54, %v2940_v59  ;;  %v2960_v13 = vadd.f32 %v2959_v45, %v2958_v60  ;;  %vm3034_vm10 = vmand %vm1918_vm1, %vm3033_vm6 }
 0x497   : > { %v3009_v35 = vrot.slane %v3008_v17, 4  ;;  %v2993_v34 = vrot.slane %v2992_v63, 2  ;;  %v2977_v1 = vrot.slane %v2976_v48, 1  ;;  %v2891_v12 = vsel %vm6200_vm12, %v2888_v61, %v2873_v5 }
 0x498   : > { %v3023_v39 = vpop.xlane.xlu0 %3022  ;;  %v2909_v16 = vsel %vm2908_vm13, %v2906_v56, %v2891_v12 }
 0x499   : > { %v3010_v41 = vadd.f32 %v3009_v35, %v3008_v17  ;;  %v3026_v10 = vadd.f32 %v3025_v24, %v3023_v39  ;;  %v2994_v14 = vadd.f32 %v2993_v34, %v2992_v63  ;;  %v2978_v57 = vadd.f32 %v2977_v1, %v2976_v48 }
 0x49a   : > { %v2927_v19 = vsel %vm6213_vm15, %v2924_v53, %v2909_v16 }
 0x49b   : > { %v3011_v2 = vrot.slane %v3010_v41, 2  ;;  %v3027_v50 = vrot.slane %v3026_v10, 4  ;;  %v2995_v6 = vrot.slane %v2994_v14, 1  ;;  %v2945_v0 = vsel %vm2944_vm0, %v2942_v8, %v2927_v19 }
 0x49c   : > { %v3041_v33 = vpop.xlane.xlu0 %3040  ;;  %v2963_v22 = vsel %vm6230_vm4, %v2960_v13, %v2945_v0 }
 0x49d   : > { %v3012_v3 = vadd.f32 %v3011_v2, %v3010_v41  ;;  %v3028_v23 = vadd.f32 %v3027_v50, %v3026_v10  ;;  %v3044_v31 = vadd.f32 %v3043_v52, %v3041_v33  ;;  %v2996_v58 = vadd.f32 %v2995_v6, %v2994_v14 }
 0x49e   : > { %v2981_v18 = vsel %vm2980_vm5, %v2978_v57, %v2963_v22 }
 0x49f   : > { %v3029_v62 = vrot.slane %v3028_v23, 2  ;;  %v3045_v20 = vrot.slane %v3044_v31, 4  ;;  %v3013_v9 = vrot.slane %v3012_v3, 1  ;;  %v2999_v35 = vsel %vm6243_vm7, %v2996_v58, %v2981_v18 }
 0x4a1   : > { %v3030_v11 = vadd.f32 %v3029_v62, %v3028_v23  ;;  %v3046_v46 = vadd.f32 %v3045_v20, %v3044_v31  ;;  %v3014_v15 = vadd.f32 %v3013_v9, %v3012_v3 }
 0x4a3   : > { %v3031_v63 = vrot.slane %v3030_v11, 1  ;;  %v3047_v17 = vrot.slane %v3046_v46, 2  ;;  %v3017_v29 = vsel %vm3016_vm9, %v3014_v15, %v2999_v35 }
 0x4a5   : > { %v3048_v24 = vadd.f32 %v3047_v17, %v3046_v46  ;;  %v3032_v27 = vadd.f32 %v3031_v63, %v3030_v11 }
 0x4a7   : > { %v3049_v28 = vrot.slane %v3048_v24, 1  ;;  %v3035_v37 = vsel %vm3034_vm10, %v3032_v27, %v3017_v29 }
 0x4a9   : > { %v3050_v36 = vadd.f32 %v3049_v28, %v3048_v24 }
 0x4ab   : > { %v3053_v38 = vsel %vm3052_vm11, %v3050_v36, %v3035_v37 }
 0x4ac   : > { %3054 = vst [vmem:[%s424_s13] sm:$0xff] %v3053_v38 }
 0x4ad   : > { %4544 = shalt.err (!%p4541_p13)
}
 0x4ae   : > { %s4545_s16 = scalar_lea.hbm %s6264_s8, 128  ;;  %s4549_s18 = scalar_lea.hbm %s6322_s7, 256 }
 0x4af   : > { %p4546_p0 = scmp.ne.s32.totalorder %s6264_s8, %s4545_s16  ;;  %p4550_p2 = scmp.lt.u32.totalorder %s6264_s8, %s6322_s7 }
 0x4b0   : > { %p4551_p7 = scmp.lt.u32.totalorder %s4549_s18, %s4545_s16  ;;  %p4553_p8 = scmp.lt.u32.totalorder %s4545_s16, %s6264_s8 }
 0x4b1   : > { %p4547_p9 = pnand %p4546_p0, %p6386_p5 }
 0x4b2   : > { %p4552_p4 = por %p4551_p7, %p4550_p2 }
 0x4b3   : > { %p4548_p1 = pneg %p4547_p9 }
 0x4b4   : > { %p4554_p12 = por %p4553_p8, %p4552_p4 }
 0x4b6   : > { %p4555_p6 = pnand %p4554_p12, %p4548_p1 }
 0x4b8   : > { %4558 = shalt.err (!%p4555_p6)
}
 0x4b9   : > { %4250 = dma.vmem_to_hbm [thread:$0]  (%p6386_p5), %s6266_s19, 128, %s6264_s8, %s5956_s22  }
 0x4ba PF: > { %s3128_s11 = sand.u32 1, %s4605_s24   ;;  %p6417_p3 = scmp.ne.s32.totalorder %s6333_s10, 0 }
 0x4bb   : > { %p6418_p10 = scmp.ge.s32.totalorder %s4625_s29, 2  ;;  %s3129_s0 = scalar_lea.sflag [#allocation4], %s3128_s11 }
 0x4bd   : > { %p4266_p11 = pnand %p6418_p10, %p6417_p3 }
 0x4bf   : > { %4596 = dma.done.wait (!%p4266_p11), %s3129_s0, 256  }
 0x4c0   : > { %4598 = vsyncadd (!%p4266_p11), %s3129_s0, 4294967040  ;;  %s6419_s13 = sadd.s32 4294967294, %s4625_s29  }
 0x4c1   : > { %s3137_s30 = sand.u32 1, %s6419_s13  }
 0x4c2   : > { %s3138_s15 = scalar_lea.sflag [#allocation10], %s3137_s30 }
 0x4c3   : > { %4600 = dma.done.wait (!%p4266_p11), %s3138_s15, 384  }
 0x4c4   : > { %4602 = vsyncadd (!%p4266_p11), %s3138_s15, 4294966912  ;;  %s30_s29 = sadd.s32 1, %s4625_s29   ;;  %s6420_s20 = sld [smem:[#allocation18_spill]] }
 0x4c5   : > { %p27_p5 = scmp.ge.s32.totalorder %s30_s29, 4   ;;  %s6421_s22 = sld [smem:[#allocation17_spill]] }
 0x4c6   : > { %s6422_s24 = smov %s4609_s25  ;;  %s6423_s25 = smov %s4613_s26 }
 0x4c7   : > { %s6425_s27 = smov %s4621_s28  ;;  %29 = sbr.rel (!%p27_p5) target bundleno = 13 (0xd), region = 140 }
 0x4ca   : > { %s6424_s26 = smov %s6420_s20 }
 0x4cb   : > { %s6426_s28 = smov %s6421_s22 }
 0x4ce   :  { %3152 = vsyncpa [#allocation3], 1 }
 0x4cf   :  { %3154 = vsyncpa [#allocation3 + $0x1], 1 }
 0x4d0   :  { %3155 = vsyncpa [#allocation6], 1 }
 0x4d1   :  { %3157 = vsyncpa [#allocation6 + $0x1], 1 }
 0x4d2   :  { %3158 = vsyncpa [#allocation4], 1 }
 0x4d3   :  { %3160 = vsyncpa [#allocation4 + $0x1], 1 }
 0x4d4   :  { %3161 = vsyncpa [#allocation10], 1 }
 0x4d5   :  { %3163 = vsyncpa [#allocation10 + $0x1], 1 }

</bundles_post_ra>
